<compile_context>
chip_gen: v6e
topology: v6e:2x2x1
jax: 0.10.0
libtpu: 0.0.40
codegen_flags: <defaults>
</compile_context>

<pallas_src>
import functools
import math

import jax
import jax.numpy as jnp
from jax import lax
from jax.experimental import pallas as pl
from jax.experimental.pallas import tpu as pltpu


# --------------------------------------------------------------------------
# Fused Pallas kernel: LSTM stack + multi-head attention
# --------------------------------------------------------------------------
def _fused_kernel(*refs, num_layers, num_heads, hidden_size, seq_len, batch):
    L, NH, H, T, B = num_layers, num_heads, hidden_size, seq_len, batch
    HS = H // NH
    n_in = 1 + 3 * L + 6

    x_ref = refs[0]                           # (T, B, D_in)  time-major input
    lstm_w = refs[1:1 + 3 * L]                # per layer: wih_t, whh_t, bias
    wq_t_ref, bq_ref, wk_t_ref, bk_ref, wv_t_ref, bv_ref = refs[1 + 3 * L:n_in]
    ctx_ref, attn_ref = refs[n_in:n_in + 2]   # (B, L, H), (NH*B, L, T)
    gx_sc, seq_sc, enc_sc, h_sc, c_sc, hid_sc = refs[n_in + 2:]

    # ---------------- LSTM stack ----------------
    for l in range(L):
        wih_t_ref = lstm_w[3 * l]             # (D_in_l, 4H), gate order [i|f|o|g]
        whh_t_ref = lstm_w[3 * l + 1]         # (H, 4H)
        b_ref = lstm_w[3 * l + 2]             # (1, 4H)
        is_last = (l == L - 1)

        # Hoisted input projection: one big MXU matmul over all timesteps.
        if l == 0:
            inp = x_ref[...].reshape(T * B, -1)
        else:
            inp = seq_sc[...].reshape(T * B, H)
        gx = jnp.dot(inp, wih_t_ref[...],
                     preferred_element_type=jnp.float32) + b_ref[...]
        gx_sc[...] = gx.reshape(T, B, 4 * H)

        h_sc[...] = jnp.zeros_like(h_sc)
        c_sc[...] = jnp.zeros_like(c_sc)

        def body(t, carry, whh_t_ref=whh_t_ref, is_last=is_last):
            gates = gx_sc[t] + jnp.dot(h_sc[...], whh_t_ref[...],
                                       preferred_element_type=jnp.float32)
            sig = jax.nn.sigmoid(gates[:, :3 * H])   # [i | f | o] in one shot
            i_g = sig[:, 0:H]
            f_g = sig[:, H:2 * H]
            o_g = sig[:, 2 * H:3 * H]
            g_g = jnp.tanh(gates[:, 3 * H:])
            c_new = f_g * c_sc[...] + i_g * g_g
            h_new = o_g * jnp.tanh(c_new)
            c_sc[...] = c_new
            h_sc[...] = h_new
            if is_last:
                # Last layer writes encoder outputs batch-major (row b*T + t)
                # so attention consumes them without any transpose.
                for b in range(B):
                    enc_sc[pl.ds(b * T + t, 1), :] = h_new[b:b + 1, :]
            else:
                seq_sc[t] = h_new                    # time-major for next layer
            return carry

        lax.fori_loop(0, T, body, 0, unroll=(T <= 32))
        hid_sc[pl.ds(l * B, B), :] = h_sc[...]       # torch h_n layout (L*B, H)

    # ---------------- Multi-head attention ----------------
    hid = hid_sc[...]                                # (L*B, H) == contiguous h_n
    q = jnp.dot(hid, wq_t_ref[...],
                preferred_element_type=jnp.float32) + bq_ref[...]
    Qm = q.reshape(B, L, H)                          # reproduces torch .view()

    enc = enc_sc[...]                                # (B*T, H), rows (b, t)
    k = jnp.dot(enc, wk_t_ref[...],
                preferred_element_type=jnp.float32) + bk_ref[...]
    v = jnp.dot(enc, wv_t_ref[...],
                preferred_element_type=jnp.float32) + bv_ref[...]
    Km = k.reshape(B, T, H)
    Vm = v.reshape(B, T, H)

    # Batch all heads into one leading dim g = h*B + b (single batched matmul).
    Qg = jnp.concatenate([Qm[:, :, h * HS:(h + 1) * HS] for h in range(NH)], axis=0)
    Kg = jnp.concatenate([Km[:, :, h * HS:(h + 1) * HS] for h in range(NH)], axis=0)
    Vg = jnp.concatenate([Vm[:, :, h * HS:(h + 1) * HS] for h in range(NH)], axis=0)

    scale = 1.0 / math.sqrt(HS)
    s = jnp.einsum('gld,gtd->glt', Qg, Kg,
                   preferred_element_type=jnp.float32) * scale    # (NH*B, L, T)
    s_max = jnp.max(s, axis=-1, keepdims=True)
    p = jnp.exp(s - s_max)
    denom = jnp.sum(p, axis=-1, keepdims=True)
    # approx=True would push this to the EUP but perturbs softmax ~1e-4; keep exact.
    w = p * pl.reciprocal(denom, approx=False)
    attn_ref[...] = w                                 # one full-tile store

    ctx_g = jnp.einsum('glt,gtd->gld', w, Vg,
                       preferred_element_type=jnp.float32)        # (NH*B, L, HS)
    # Re-interleave heads back into the lane dimension -> (B, L, NH*HS).
    ctx = jnp.concatenate([ctx_g[h * B:(h + 1) * B] for h in range(NH)], axis=-1)
    ctx_ref[...] = ctx                                # one full-tile store


# --------------------------------------------------------------------------
# Wrapper: weight prep (gate reorder + transpose) and pallas_call plumbing
# --------------------------------------------------------------------------
@functools.partial(jax.jit, static_argnames=("num_layers", "num_heads"))
def lstm_attention_forward(x, params, *, num_layers, num_heads):
    B, T, Din = x.shape
    H = params['w_hh_l0'].shape[1]
    L, NH = num_layers, num_heads
    HS = H // NH

    def prep_lstm_w(w):                       # (4H, D), gates [i,f,g,o] -> [i,f,o,g]
        w4 = w.reshape(4, H, -1)
        w_r = jnp.concatenate([w4[0], w4[1], w4[3], w4[2]], axis=0)
        return jnp.transpose(w_r)             # (D, 4H)

    def prep_lstm_b(b_ih, b_hh):
        b = (b_ih + b_hh).reshape(4, H)
        return jnp.concatenate([b[0], b[1], b[3], b[2]], axis=0).reshape(1, 4 * H)

    # Single small input relayout; all per-layer activation transposes are gone
    # because intermediates never leave the kernel.
    x_tm = jnp.swapaxes(x, 0, 1)              # (T, B, Din)

    args = [x_tm]
    for l in range(L):
        args.append(prep_lstm_w(params[f'w_ih_l{l}']))
        args.append(prep_lstm_w(params[f'w_hh_l{l}']))
        args.append(prep_lstm_b(params[f'b_ih_l{l}'], params[f'b_hh_l{l}']))
    args += [params['w_q'].T, params['b_q'].reshape(1, -1),
             params['w_k'].T, params['b_k'].reshape(1, -1),
             params['w_v'].T, params['b_v'].reshape(1, -1)]

    # Advisory cost estimate for XLA scheduling around the sequential kernel.
    lstm_flops, d_in = 0, Din
    for _ in range(L):
        lstm_flops += 2 * T * B * (d_in + H) * 4 * H
        d_in = H
    attn_flops = (2 * L * B * H * H + 4 * B * T * H * H
                  + 4 * B * NH * L * T * HS)
    transcendentals = L * T * B * 5 * H + B * NH * L * T
    param_elems = sum(int(p.size) for p in params.values())
    bytes_accessed = 4 * (int(x.size) + param_elems + B * L * H + B * NH * L * T)
    cost = pl.CostEstimate(flops=lstm_flops + attn_flops,
                           transcendentals=transcendentals,
                           bytes_accessed=bytes_accessed)

    kernel = functools.partial(_fused_kernel, num_layers=L, num_heads=NH,
                               hidden_size=H, seq_len=T, batch=B)

    ctx, attn_g = pl.pallas_call(
        kernel,
        out_shape=(jax.ShapeDtypeStruct((B, L, H), jnp.float32),
                   jax.ShapeDtypeStruct((NH * B, L, T), jnp.float32)),
        in_specs=[pl.BlockSpec(memory_space=pltpu.MemorySpace.VMEM)] * len(args),
        out_specs=(pl.BlockSpec(memory_space=pltpu.MemorySpace.VMEM),
                   pl.BlockSpec(memory_space=pltpu.MemorySpace.VMEM)),
        scratch_shapes=[
            pltpu.VMEM((T, B, 4 * H), jnp.float32),   # hoisted gate pre-activations
            pltpu.VMEM((T, B, H), jnp.float32),       # time-major layer outputs
            pltpu.VMEM((B * T, H), jnp.float32),      # batch-major encoder outputs
            pltpu.VMEM((B, H), jnp.float32),          # h state
            pltpu.VMEM((B, H), jnp.float32),          # c state
            pltpu.VMEM((L * B, H), jnp.float32),      # h_n stack (torch layout)
        ],
        cost_estimate=cost,
    )(*args)

    # Tiny wrapper-side fixup of the head-grouped attention weights.
    attn = jnp.transpose(attn_g.reshape(NH, B, L, T), (1, 0, 2, 3))
    return ctx, attn


# --------------------------------------------------------------------------
# Deterministic parameter init (shapes per the module's __init__)
# --------------------------------------------------------------------------
def init_params(key, input_size, hidden_size, num_layers):
    params = {}
    stdv = 1.0 / math.sqrt(hidden_size)
    keys = jax.random.split(key, 4 * num_layers + 6)
    ki = iter(keys)
    for l in range(num_layers):
        d_in = input_size if l == 0 else hidden_size
        params[f'w_ih_l{l}'] = jax.random.uniform(
            next(ki), (4 * hidden_size, d_in), jnp.float32, -stdv, stdv)
        params[f'w_hh_l{l}'] = jax.random.uniform(
            next(ki), (4 * hidden_size, hidden_size), jnp.float32, -stdv, stdv)
        params[f'b_ih_l{l}'] = jax.random.uniform(
            next(ki), (4 * hidden_size,), jnp.float32, -stdv, stdv)
        params[f'b_hh_l{l}'] = jax.random.uniform(
            next(ki), (4 * hidden_size,), jnp.float32, -stdv, stdv)
    for name in ('q', 'k', 'v'):
        params[f'w_{name}'] = jax.random.uniform(
            next(ki), (hidden_size, hidden_size), jnp.float32, -stdv, stdv)
        params[f'b_{name}'] = jax.random.uniform(
            next(ki), (hidden_size,), jnp.float32, -stdv, stdv)
    return params


# --------------------------------------------------------------------------
# Pure-JAX reference (mirrors the PyTorch forward semantics)
# --------------------------------------------------------------------------
def reference_forward(x, params, *, num_layers, num_heads):
    B, T, _ = x.shape
    H = params['w_hh_l0'].shape[1]
    y = x
    finals = []
    for l in range(num_layers):
        w_ih = params[f'w_ih_l{l}']
        w_hh = params[f'w_hh_l{l}']
        b_ih = params[f'b_ih_l{l}']
        b_hh = params[f'b_hh_l{l}']

        def step(carry, x_t, w_ih=w_ih, w_hh=w_hh, b_ih=b_ih, b_hh=b_hh):
            h, c = carry
            gates = x_t @ w_ih.T + b_ih + h @ w_hh.T + b_hh
            i, f, g, o = jnp.split(gates, 4, axis=-1)
            c = jax.nn.sigmoid(f) * c + jax.nn.sigmoid(i) * jnp.tanh(g)
            h = jax.nn.sigmoid(o) * jnp.tanh(c)
            return (h, c), h

        init = (jnp.zeros((B, H)), jnp.zeros((B, H)))
        (h_fin, _), ys = lax.scan(step, init, jnp.swapaxes(y, 0, 1))
        y = jnp.swapaxes(ys, 0, 1)
        finals.append(h_fin)

    enc = y
    hidden = jnp.stack(finals, 0)                       # (L, B, H)
    L, NH = num_layers, num_heads
    HS = H // NH
    q = hidden @ params['w_q'].T + params['b_q']        # (L, B, H)
    Q = q.reshape(B, L, NH, HS).transpose(0, 2, 1, 3)
    k = enc @ params['w_k'].T + params['b_k']
    K = k.reshape(B, T, NH, HS).transpose(0, 2, 1, 3)
    v = enc @ params['w_v'].T + params['b_v']
    V = v.reshape(B, T, NH, HS).transpose(0, 2, 1, 3)
    s = jnp.einsum('bhld,bhtd->bhlt', Q, K) / math.sqrt(HS)
    w = jax.nn.softmax(s, axis=-1)
    ctx = jnp.einsum('bhlt,bhtd->bhld', w, V).transpose(0, 2, 1, 3).reshape(B, L, H)
    return ctx, w


if __name__ == "__main__":
    B, T, I, H, L, NH = 2, 8, 16, 32, 2, 4
    key = jax.random.PRNGKey(0)
    kx, kp = jax.random.split(key)
    x = jax.random.normal(kx, (B, T, I), jnp.float32)
    params = init_params(kp, I, H, L)

    ctx, attn = lstm_attention_forward(x, params, num_layers=L, num_heads=NH)
    jax.block_until_ready((ctx, attn))

    ctx_ref, attn_ref = reference_forward(x, params, num_layers=L, num_heads=NH)
    assert ctx.shape == (B, L, H), ctx.shape
    assert attn.shape == (B, NH, L, T), attn.shape
    assert jnp.allclose(ctx, ctx_ref, atol=1e-4, rtol=1e-4)
    assert jnp.allclose(attn, attn_ref, atol=1e-4, rtol=1e-4)
    print("KERNEL_OK")
</pallas_src>

<mosaic_0001>
module attributes {stable_mosaic.version = 11 : i64} {
  func.func @_fused_kernel(%arg0: memref<8x2x16xf32, #tpu.memory_space<vmem>>, %arg1: memref<16x128xf32, #tpu.memory_space<vmem>>, %arg2: memref<32x128xf32, #tpu.memory_space<vmem>>, %arg3: memref<1x128xf32, #tpu.memory_space<vmem>>, %arg4: memref<32x128xf32, #tpu.memory_space<vmem>>, %arg5: memref<32x128xf32, #tpu.memory_space<vmem>>, %arg6: memref<1x128xf32, #tpu.memory_space<vmem>>, %arg7: memref<32x32xf32, #tpu.memory_space<vmem>>, %arg8: memref<1x32xf32, #tpu.memory_space<vmem>>, %arg9: memref<32x32xf32, #tpu.memory_space<vmem>>, %arg10: memref<1x32xf32, #tpu.memory_space<vmem>>, %arg11: memref<32x32xf32, #tpu.memory_space<vmem>>, %arg12: memref<1x32xf32, #tpu.memory_space<vmem>>, %arg13: memref<2x2x32xf32, #tpu.memory_space<vmem>>, %arg14: memref<8x2x8xf32, #tpu.memory_space<vmem>>, %arg15: memref<8x2x128xf32, #tpu.memory_space<vmem>>, %arg16: memref<8x2x32xf32, #tpu.memory_space<vmem>>, %arg17: memref<16x32xf32, #tpu.memory_space<vmem>>, %arg18: memref<2x32xf32, #tpu.memory_space<vmem>>, %arg19: memref<2x32xf32, #tpu.memory_space<vmem>>, %arg20: memref<4x32xf32, #tpu.memory_space<vmem>>) attributes {dimension_semantics = [], scalar_prefetch = 0 : i64, scratch_operands = 6 : i64, tpu.core_type = #tpu.core_type<tc>} {
    %c0 = arith.constant 0 : index
    %c0_0 = arith.constant 0 : index
    %c0_1 = arith.constant 0 : index
    %0 = vector.load %arg0[%c0, %c0_0, %c0_1] : memref<8x2x16xf32, #tpu.memory_space<vmem>>, vector<8x2x16xf32>
    %1 = vector.shape_cast %0 : vector<8x2x16xf32> to vector<16x16xf32>
    %c0_2 = arith.constant 0 : index
    %c0_3 = arith.constant 0 : index
    %2 = vector.load %arg1[%c0_2, %c0_3] : memref<16x128xf32, #tpu.memory_space<vmem>>, vector<16x128xf32>
    %cst = arith.constant dense<0.000000e+00> : vector<16x128xf32>
    %3 = tpu.matmul %1, %2, %cst {dimension_numbers = #tpu.dot_dimension_numbers<[1], [0], [0], [1], [0, 0, 1, 1], [], []>} : vector<16x16xf32>, vector<16x128xf32>, vector<16x128xf32> -> vector<16x128xf32>
    %c0_4 = arith.constant 0 : index
    %c0_5 = arith.constant 0 : index
    %4 = vector.load %arg3[%c0_4, %c0_5] : memref<1x128xf32, #tpu.memory_space<vmem>>, vector<1x128xf32>
    %5 = vector.broadcast %4 : vector<1x128xf32> to vector<16x128xf32>
    %6 = arith.addf %3, %5 : vector<16x128xf32>
    %7 = vector.shape_cast %6 : vector<16x128xf32> to vector<8x2x128xf32>
    %c0_6 = arith.constant 0 : index
    %c0_7 = arith.constant 0 : index
    %c0_8 = arith.constant 0 : index
    %8 = vector.load %arg15[%c0_6, %c0_7, %c0_8] : memref<8x2x128xf32, #tpu.memory_space<vmem>>, vector<8x2x128xf32>
    tpu.vector_store %arg15[%c0_6, %c0_7, %c0_8], %7 {strides = array<i32>} : memref<8x2x128xf32, #tpu.memory_space<vmem>>, vector<8x2x128xf32>,
    %cst_9 = arith.constant 0.000000e+00 : f32
    %9 = vector.broadcast %cst_9 : f32 to vector<2x32xf32>
    %c0_10 = arith.constant 0 : index
    %c0_11 = arith.constant 0 : index
    %10 = vector.load %arg18[%c0_10, %c0_11] : memref<2x32xf32, #tpu.memory_space<vmem>>, vector<2x32xf32>
    tpu.vector_store %arg18[%c0_10, %c0_11], %9 {strides = array<i32>} : memref<2x32xf32, #tpu.memory_space<vmem>>, vector<2x32xf32>,
    %cst_12 = arith.constant 0.000000e+00 : f32
    %11 = vector.broadcast %cst_12 : f32 to vector<2x32xf32>
    %c0_13 = arith.constant 0 : index
    %c0_14 = arith.constant 0 : index
    %12 = vector.load %arg19[%c0_13, %c0_14] : memref<2x32xf32, #tpu.memory_space<vmem>>, vector<2x32xf32>
    tpu.vector_store %arg19[%c0_13, %c0_14], %11 {strides = array<i32>} : memref<2x32xf32, #tpu.memory_space<vmem>>, vector<2x32xf32>,
    %c0_i32 = arith.constant 0 : i32
    %13 = arith.index_cast %c0_i32 : i32 to index
    %c0_15 = arith.constant 0 : index
    %c0_16 = arith.constant 0 : index
    %14 = vector.load %arg15[%13, %c0_15, %c0_16] : memref<8x2x128xf32, #tpu.memory_space<vmem>>, vector<1x2x128xf32>
    %15 = vector.shape_cast %14 : vector<1x2x128xf32> to vector<2x128xf32>
    %c0_17 = arith.constant 0 : index
    %c0_18 = arith.constant 0 : index
    %16 = vector.load %arg18[%c0_17, %c0_18] : memref<2x32xf32, #tpu.memory_space<vmem>>, vector<2x32xf32>
    %c0_19 = arith.constant 0 : index
    %c0_20 = arith.constant 0 : index
    %17 = vector.load %arg2[%c0_19, %c0_20] : memref<32x128xf32, #tpu.memory_space<vmem>>, vector<32x128xf32>
    %cst_21 = arith.constant dense<0.000000e+00> : vector<2x128xf32>
    %18 = tpu.matmul %16, %17, %cst_21 {dimension_numbers = #tpu.dot_dimension_numbers<[1], [0], [0], [1], [0, 0, 1, 1], [], []>} : vector<2x32xf32>, vector<32x128xf32>, vector<2x128xf32> -> vector<2x128xf32>
    %19 = arith.addf %15, %18 : vector<2x128xf32>
    %20 = vector.extract_strided_slice %19 {offsets = [0, 0], sizes = [2, 96], strides = [1, 1]} : vector<2x128xf32> to vector<2x96xf32>
    %21 = arith.negf %20 : vector<2x96xf32>
    %22 = math.exp %21 : vector<2x96xf32>
    %cst_22 = arith.constant 1.000000e+00 : f32
    %23 = vector.broadcast %cst_22 : f32 to vector<2x96xf32>
    %24 = arith.addf %23, %22 : vector<2x96xf32>
    %25 = arith.divf %23, %24 : vector<2x96xf32>
    %26 = vector.extract_strided_slice %25 {offsets = [0, 0], sizes = [2, 32], strides = [1, 1]} : vector<2x96xf32> to vector<2x32xf32>
    %27 = vector.extract_strided_slice %25 {offsets = [0, 32], sizes = [2, 32], strides = [1, 1]} : vector<2x96xf32> to vector<2x32xf32>
    %28 = vector.extract_strided_slice %25 {offsets = [0, 64], sizes = [2, 32], strides = [1, 1]} : vector<2x96xf32> to vector<2x32xf32>
    %29 = vector.extract_strided_slice %19 {offsets = [0, 96], sizes = [2, 32], strides = [1, 1]} : vector<2x128xf32> to vector<2x32xf32>
    %30 = math.tanh %29 : vector<2x32xf32>
    %c0_23 = arith.constant 0 : index
    %c0_24 = arith.constant 0 : index
    %31 = vector.load %arg19[%c0_23, %c0_24] : memref<2x32xf32, #tpu.memory_space<vmem>>, vector<2x32xf32>
    %32 = arith.mulf %27, %31 : vector<2x32xf32>
    %33 = arith.mulf %26, %30 : vector<2x32xf32>
    %34 = arith.addf %32, %33 : vector<2x32xf32>
    %35 = math.tanh %34 : vector<2x32xf32>
    %36 = arith.mulf %28, %35 : vector<2x32xf32>
    %c0_25 = arith.constant 0 : index
    %c0_26 = arith.constant 0 : index
    %37 = vector.load %arg19[%c0_25, %c0_26] : memref<2x32xf32, #tpu.memory_space<vmem>>, vector<2x32xf32>
    tpu.vector_store %arg19[%c0_25, %c0_26], %34 {strides = array<i32>} : memref<2x32xf32, #tpu.memory_space<vmem>>, vector<2x32xf32>,
    %c0_27 = arith.constant 0 : index
    %c0_28 = arith.constant 0 : index
    %38 = vector.load %arg18[%c0_27, %c0_28] : memref<2x32xf32, #tpu.memory_space<vmem>>, vector<2x32xf32>
    tpu.vector_store %arg18[%c0_27, %c0_28], %36 {strides = array<i32>} : memref<2x32xf32, #tpu.memory_space<vmem>>, vector<2x32xf32>,
    %39 = arith.index_cast %c0_i32 : i32 to index
    %c0_29 = arith.constant 0 : index
    %c0_30 = arith.constant 0 : index
    %40 = vector.load %arg16[%39, %c0_29, %c0_30] : memref<8x2x32xf32, #tpu.memory_space<vmem>>, vector<1x2x32xf32>
    %41 = vector.shape_cast %40 : vector<1x2x32xf32> to vector<2x32xf32>
    %42 = vector.shape_cast %36 : vector<2x32xf32> to vector<1x2x32xf32>
    tpu.vector_store %arg16[%39, %c0_29, %c0_30], %42 {strides = array<i32>} : memref<8x2x32xf32, #tpu.memory_space<vmem>>, vector<1x2x32xf32>,
    %c1_i32 = arith.constant 1 : i32
    %43 = arith.index_cast %c1_i32 : i32 to index
    %c0_31 = arith.constant 0 : index
    %c0_32 = arith.constant 0 : index
    %44 = vector.load %arg15[%43, %c0_31, %c0_32] : memref<8x2x128xf32, #tpu.memory_space<vmem>>, vector<1x2x128xf32>
    %45 = vector.shape_cast %44 : vector<1x2x128xf32> to vector<2x128xf32>
    %c0_33 = arith.constant 0 : index
    %c0_34 = arith.constant 0 : index
    %46 = vector.load %arg18[%c0_33, %c0_34] : memref<2x32xf32, #tpu.memory_space<vmem>>, vector<2x32xf32>
    %c0_35 = arith.constant 0 : index
    %c0_36 = arith.constant 0 : index
    %47 = vector.load %arg2[%c0_35, %c0_36] : memref<32x128xf32, #tpu.memory_space<vmem>>, vector<32x128xf32>
    %cst_37 = arith.constant dense<0.000000e+00> : vector<2x128xf32>
    %48 = tpu.matmul %46, %47, %cst_37 {dimension_numbers = #tpu.dot_dimension_numbers<[1], [0], [0], [1], [0, 0, 1, 1], [], []>} : vector<2x32xf32>, vector<32x128xf32>, vector<2x128xf32> -> vector<2x128xf32>
    %49 = arith.addf %45, %48 : vector<2x128xf32>
    %50 = vector.extract_strided_slice %49 {offsets = [0, 0], sizes = [2, 96], strides = [1, 1]} : vector<2x128xf32> to vector<2x96xf32>
    %51 = arith.negf %50 : vector<2x96xf32>
    %52 = math.exp %51 : vector<2x96xf32>
    %cst_38 = arith.constant 1.000000e+00 : f32
    %53 = vector.broadcast %cst_38 : f32 to vector<2x96xf32>
    %54 = arith.addf %53, %52 : vector<2x96xf32>
    %55 = arith.divf %53, %54 : vector<2x96xf32>
    %56 = vector.extract_strided_slice %55 {offsets = [0, 0], sizes = [2, 32], strides = [1, 1]} : vector<2x96xf32> to vector<2x32xf32>
    %57 = vector.extract_strided_slice %55 {offsets = [0, 32], sizes = [2, 32], strides = [1, 1]} : vector<2x96xf32> to vector<2x32xf32>
    %58 = vector.extract_strided_slice %55 {offsets = [0, 64], sizes = [2, 32], strides = [1, 1]} : vector<2x96xf32> to vector<2x32xf32>
    %59 = vector.extract_strided_slice %49 {offsets = [0, 96], sizes = [2, 32], strides = [1, 1]} : vector<2x128xf32> to vector<2x32xf32>
    %60 = math.tanh %59 : vector<2x32xf32>
    %c0_39 = arith.constant 0 : index
    %c0_40 = arith.constant 0 : index
    %61 = vector.load %arg19[%c0_39, %c0_40] : memref<2x32xf32, #tpu.memory_space<vmem>>, vector<2x32xf32>
    %62 = arith.mulf %57, %61 : vector<2x32xf32>
    %63 = arith.mulf %56, %60 : vector<2x32xf32>
    %64 = arith.addf %62, %63 : vector<2x32xf32>
    %65 = math.tanh %64 : vector<2x32xf32>
    %66 = arith.mulf %58, %65 : vector<2x32xf32>
    %c0_41 = arith.constant 0 : index
    %c0_42 = arith.constant 0 : index
    %67 = vector.load %arg19[%c0_41, %c0_42] : memref<2x32xf32, #tpu.memory_space<vmem>>, vector<2x32xf32>
    tpu.vector_store %arg19[%c0_41, %c0_42], %64 {strides = array<i32>} : memref<2x32xf32, #tpu.memory_space<vmem>>, vector<2x32xf32>,
    %c0_43 = arith.constant 0 : index
    %c0_44 = arith.constant 0 : index
    %68 = vector.load %arg18[%c0_43, %c0_44] : memref<2x32xf32, #tpu.memory_space<vmem>>, vector<2x32xf32>
    tpu.vector_store %arg18[%c0_43, %c0_44], %66 {strides = array<i32>} : memref<2x32xf32, #tpu.memory_space<vmem>>, vector<2x32xf32>,
    %69 = arith.index_cast %c1_i32 : i32 to index
    %c0_45 = arith.constant 0 : index
    %c0_46 = arith.constant 0 : index
    %70 = vector.load %arg16[%69, %c0_45, %c0_46] : memref<8x2x32xf32, #tpu.memory_space<vmem>>, vector<1x2x32xf32>
    %71 = vector.shape_cast %70 : vector<1x2x32xf32> to vector<2x32xf32>
    %72 = vector.shape_cast %66 : vector<2x32xf32> to vector<1x2x32xf32>
    tpu.vector_store %arg16[%69, %c0_45, %c0_46], %72 {strides = array<i32>} : memref<8x2x32xf32, #tpu.memory_space<vmem>>, vector<1x2x32xf32>,
    %c2_i32 = arith.constant 2 : i32
    %73 = arith.index_cast %c2_i32 : i32 to index
    %c0_47 = arith.constant 0 : index
    %c0_48 = arith.constant 0 : index
    %74 = vector.load %arg15[%73, %c0_47, %c0_48] : memref<8x2x128xf32, #tpu.memory_space<vmem>>, vector<1x2x128xf32>
    %75 = vector.shape_cast %74 : vector<1x2x128xf32> to vector<2x128xf32>
    %c0_49 = arith.constant 0 : index
    %c0_50 = arith.constant 0 : index
    %76 = vector.load %arg18[%c0_49, %c0_50] : memref<2x32xf32, #tpu.memory_space<vmem>>, vector<2x32xf32>
    %c0_51 = arith.constant 0 : index
    %c0_52 = arith.constant 0 : index
    %77 = vector.load %arg2[%c0_51, %c0_52] : memref<32x128xf32, #tpu.memory_space<vmem>>, vector<32x128xf32>
    %cst_53 = arith.constant dense<0.000000e+00> : vector<2x128xf32>
    %78 = tpu.matmul %76, %77, %cst_53 {dimension_numbers = #tpu.dot_dimension_numbers<[1], [0], [0], [1], [0, 0, 1, 1], [], []>} : vector<2x32xf32>, vector<32x128xf32>, vector<2x128xf32> -> vector<2x128xf32>
    %79 = arith.addf %75, %78 : vector<2x128xf32>
    %80 = vector.extract_strided_slice %79 {offsets = [0, 0], sizes = [2, 96], strides = [1, 1]} : vector<2x128xf32> to vector<2x96xf32>
    %81 = arith.negf %80 : vector<2x96xf32>
    %82 = math.exp %81 : vector<2x96xf32>
    %cst_54 = arith.constant 1.000000e+00 : f32
    %83 = vector.broadcast %cst_54 : f32 to vector<2x96xf32>
    %84 = arith.addf %83, %82 : vector<2x96xf32>
    %85 = arith.divf %83, %84 : vector<2x96xf32>
    %86 = vector.extract_strided_slice %85 {offsets = [0, 0], sizes = [2, 32], strides = [1, 1]} : vector<2x96xf32> to vector<2x32xf32>
    %87 = vector.extract_strided_slice %85 {offsets = [0, 32], sizes = [2, 32], strides = [1, 1]} : vector<2x96xf32> to vector<2x32xf32>
    %88 = vector.extract_strided_slice %85 {offsets = [0, 64], sizes = [2, 32], strides = [1, 1]} : vector<2x96xf32> to vector<2x32xf32>
    %89 = vector.extract_strided_slice %79 {offsets = [0, 96], sizes = [2, 32], strides = [1, 1]} : vector<2x128xf32> to vector<2x32xf32>
    %90 = math.tanh %89 : vector<2x32xf32>
    %c0_55 = arith.constant 0 : index
    %c0_56 = arith.constant 0 : index
    %91 = vector.load %arg19[%c0_55, %c0_56] : memref<2x32xf32, #tpu.memory_space<vmem>>, vector<2x32xf32>
    %92 = arith.mulf %87, %91 : vector<2x32xf32>
    %93 = arith.mulf %86, %90 : vector<2x32xf32>
    %94 = arith.addf %92, %93 : vector<2x32xf32>
    %95 = math.tanh %94 : vector<2x32xf32>
    %96 = arith.mulf %88, %95 : vector<2x32xf32>
    %c0_57 = arith.constant 0 : index
    %c0_58 = arith.constant 0 : index
    %97 = vector.load %arg19[%c0_57, %c0_58] : memref<2x32xf32, #tpu.memory_space<vmem>>, vector<2x32xf32>
    tpu.vector_store %arg19[%c0_57, %c0_58], %94 {strides = array<i32>} : memref<2x32xf32, #tpu.memory_space<vmem>>, vector<2x32xf32>,
    %c0_59 = arith.constant 0 : index
    %c0_60 = arith.constant 0 : index
    %98 = vector.load %arg18[%c0_59, %c0_60] : memref<2x32xf32, #tpu.memory_space<vmem>>, vector<2x32xf32>
    tpu.vector_store %arg18[%c0_59, %c0_60], %96 {strides = array<i32>} : memref<2x32xf32, #tpu.memory_space<vmem>>, vector<2x32xf32>,
    %99 = arith.index_cast %c2_i32 : i32 to index
    %c0_61 = arith.constant 0 : index
    %c0_62 = arith.constant 0 : index
    %100 = vector.load %arg16[%99, %c0_61, %c0_62] : memref<8x2x32xf32, #tpu.memory_space<vmem>>, vector<1x2x32xf32>
    %101 = vector.shape_cast %100 : vector<1x2x32xf32> to vector<2x32xf32>
    %102 = vector.shape_cast %96 : vector<2x32xf32> to vector<1x2x32xf32>
    tpu.vector_store %arg16[%99, %c0_61, %c0_62], %102 {strides = array<i32>} : memref<8x2x32xf32, #tpu.memory_space<vmem>>, vector<1x2x32xf32>,
    %c3_i32 = arith.constant 3 : i32
    %103 = arith.index_cast %c3_i32 : i32 to index
    %c0_63 = arith.constant 0 : index
    %c0_64 = arith.constant 0 : index
    %104 = vector.load %arg15[%103, %c0_63, %c0_64] : memref<8x2x128xf32, #tpu.memory_space<vmem>>, vector<1x2x128xf32>
    %105 = vector.shape_cast %104 : vector<1x2x128xf32> to vector<2x128xf32>
    %c0_65 = arith.constant 0 : index
    %c0_66 = arith.constant 0 : index
    %106 = vector.load %arg18[%c0_65, %c0_66] : memref<2x32xf32, #tpu.memory_space<vmem>>, vector<2x32xf32>
    %c0_67 = arith.constant 0 : index
    %c0_68 = arith.constant 0 : index
    %107 = vector.load %arg2[%c0_67, %c0_68] : memref<32x128xf32, #tpu.memory_space<vmem>>, vector<32x128xf32>
    %cst_69 = arith.constant dense<0.000000e+00> : vector<2x128xf32>
    %108 = tpu.matmul %106, %107, %cst_69 {dimension_numbers = #tpu.dot_dimension_numbers<[1], [0], [0], [1], [0, 0, 1, 1], [], []>} : vector<2x32xf32>, vector<32x128xf32>, vector<2x128xf32> -> vector<2x128xf32>
    %109 = arith.addf %105, %108 : vector<2x128xf32>
    %110 = vector.extract_strided_slice %109 {offsets = [0, 0], sizes = [2, 96], strides = [1, 1]} : vector<2x128xf32> to vector<2x96xf32>
    %111 = arith.negf %110 : vector<2x96xf32>
    %112 = math.exp %111 : vector<2x96xf32>
    %cst_70 = arith.constant 1.000000e+00 : f32
    %113 = vector.broadcast %cst_70 : f32 to vector<2x96xf32>
    %114 = arith.addf %113, %112 : vector<2x96xf32>
    %115 = arith.divf %113, %114 : vector<2x96xf32>
    %116 = vector.extract_strided_slice %115 {offsets = [0, 0], sizes = [2, 32], strides = [1, 1]} : vector<2x96xf32> to vector<2x32xf32>
    %117 = vector.extract_strided_slice %115 {offsets = [0, 32], sizes = [2, 32], strides = [1, 1]} : vector<2x96xf32> to vector<2x32xf32>
    %118 = vector.extract_strided_slice %115 {offsets = [0, 64], sizes = [2, 32], strides = [1, 1]} : vector<2x96xf32> to vector<2x32xf32>
    %119 = vector.extract_strided_slice %109 {offsets = [0, 96], sizes = [2, 32], strides = [1, 1]} : vector<2x128xf32> to vector<2x32xf32>
    %120 = math.tanh %119 : vector<2x32xf32>
    %c0_71 = arith.constant 0 : index
    %c0_72 = arith.constant 0 : index
    %121 = vector.load %arg19[%c0_71, %c0_72] : memref<2x32xf32, #tpu.memory_space<vmem>>, vector<2x32xf32>
    %122 = arith.mulf %117, %121 : vector<2x32xf32>
    %123 = arith.mulf %116, %120 : vector<2x32xf32>
    %124 = arith.addf %122, %123 : vector<2x32xf32>
    %125 = math.tanh %124 : vector<2x32xf32>
    %126 = arith.mulf %118, %125 : vector<2x32xf32>
    %c0_73 = arith.constant 0 : index
    %c0_74 = arith.constant 0 : index
    %127 = vector.load %arg19[%c0_73, %c0_74] : memref<2x32xf32, #tpu.memory_space<vmem>>, vector<2x32xf32>
    tpu.vector_store %arg19[%c0_73, %c0_74], %124 {strides = array<i32>} : memref<2x32xf32, #tpu.memory_space<vmem>>, vector<2x32xf32>,
    %c0_75 = arith.constant 0 : index
    %c0_76 = arith.constant 0 : index
    %128 = vector.load %arg18[%c0_75, %c0_76] : memref<2x32xf32, #tpu.memory_space<vmem>>, vector<2x32xf32>
    tpu.vector_store %arg18[%c0_75, %c0_76], %126 {strides = array<i32>} : memref<2x32xf32, #tpu.memory_space<vmem>>, vector<2x32xf32>,
    %129 = arith.index_cast %c3_i32 : i32 to index
    %c0_77 = arith.constant 0 : index
    %c0_78 = arith.constant 0 : index
    %130 = vector.load %arg16[%129, %c0_77, %c0_78] : memref<8x2x32xf32, #tpu.memory_space<vmem>>, vector<1x2x32xf32>
    %131 = vector.shape_cast %130 : vector<1x2x32xf32> to vector<2x32xf32>
    %132 = vector.shape_cast %126 : vector<2x32xf32> to vector<1x2x32xf32>
    tpu.vector_store %arg16[%129, %c0_77, %c0_78], %132 {strides = array<i32>} : memref<8x2x32xf32, #tpu.memory_space<vmem>>, vector<1x2x32xf32>,
    %c4_i32 = arith.constant 4 : i32
    %133 = arith.index_cast %c4_i32 : i32 to index
    %c0_79 = arith.constant 0 : index
    %c0_80 = arith.constant 0 : index
    %134 = vector.load %arg15[%133, %c0_79, %c0_80] : memref<8x2x128xf32, #tpu.memory_space<vmem>>, vector<1x2x128xf32>
    %135 = vector.shape_cast %134 : vector<1x2x128xf32> to vector<2x128xf32>
    %c0_81 = arith.constant 0 : index
    %c0_82 = arith.constant 0 : index
    %136 = vector.load %arg18[%c0_81, %c0_82] : memref<2x32xf32, #tpu.memory_space<vmem>>, vector<2x32xf32>
    %c0_83 = arith.constant 0 : index
    %c0_84 = arith.constant 0 : index
    %137 = vector.load %arg2[%c0_83, %c0_84] : memref<32x128xf32, #tpu.memory_space<vmem>>, vector<32x128xf32>
    %cst_85 = arith.constant dense<0.000000e+00> : vector<2x128xf32>
    %138 = tpu.matmul %136, %137, %cst_85 {dimension_numbers = #tpu.dot_dimension_numbers<[1], [0], [0], [1], [0, 0, 1, 1], [], []>} : vector<2x32xf32>, vector<32x128xf32>, vector<2x128xf32> -> vector<2x128xf32>
    %139 = arith.addf %135, %138 : vector<2x128xf32>
    %140 = vector.extract_strided_slice %139 {offsets = [0, 0], sizes = [2, 96], strides = [1, 1]} : vector<2x128xf32> to vector<2x96xf32>
    %141 = arith.negf %140 : vector<2x96xf32>
    %142 = math.exp %141 : vector<2x96xf32>
    %cst_86 = arith.constant 1.000000e+00 : f32
    %143 = vector.broadcast %cst_86 : f32 to vector<2x96xf32>
    %144 = arith.addf %143, %142 : vector<2x96xf32>
    %145 = arith.divf %143, %144 : vector<2x96xf32>
    %146 = vector.extract_strided_slice %145 {offsets = [0, 0], sizes = [2, 32], strides = [1, 1]} : vector<2x96xf32> to vector<2x32xf32>
    %147 = vector.extract_strided_slice %145 {offsets = [0, 32], sizes = [2, 32], strides = [1, 1]} : vector<2x96xf32> to vector<2x32xf32>
    %148 = vector.extract_strided_slice %145 {offsets = [0, 64], sizes = [2, 32], strides = [1, 1]} : vector<2x96xf32> to vector<2x32xf32>
    %149 = vector.extract_strided_slice %139 {offsets = [0, 96], sizes = [2, 32], strides = [1, 1]} : vector<2x128xf32> to vector<2x32xf32>
    %150 = math.tanh %149 : vector<2x32xf32>
    %c0_87 = arith.constant 0 : index
    %c0_88 = arith.constant 0 : index
    %151 = vector.load %arg19[%c0_87, %c0_88] : memref<2x32xf32, #tpu.memory_space<vmem>>, vector<2x32xf32>
    %152 = arith.mulf %147, %151 : vector<2x32xf32>
    %153 = arith.mulf %146, %150 : vector<2x32xf32>
    %154 = arith.addf %152, %153 : vector<2x32xf32>
    %155 = math.tanh %154 : vector<2x32xf32>
    %156 = arith.mulf %148, %155 : vector<2x32xf32>
    %c0_89 = arith.constant 0 : index
    %c0_90 = arith.constant 0 : index
    %157 = vector.load %arg19[%c0_89, %c0_90] : memref<2x32xf32, #tpu.memory_space<vmem>>, vector<2x32xf32>
    tpu.vector_store %arg19[%c0_89, %c0_90], %154 {strides = array<i32>} : memref<2x32xf32, #tpu.memory_space<vmem>>, vector<2x32xf32>,
    %c0_91 = arith.constant 0 : index
    %c0_92 = arith.constant 0 : index
    %158 = vector.load %arg18[%c0_91, %c0_92] : memref<2x32xf32, #tpu.memory_space<vmem>>, vector<2x32xf32>
    tpu.vector_store %arg18[%c0_91, %c0_92], %156 {strides = array<i32>} : memref<2x32xf32, #tpu.memory_space<vmem>>, vector<2x32xf32>,
    %159 = arith.index_cast %c4_i32 : i32 to index
    %c0_93 = arith.constant 0 : index
    %c0_94 = arith.constant 0 : index
    %160 = vector.load %arg16[%159, %c0_93, %c0_94] : memref<8x2x32xf32, #tpu.memory_space<vmem>>, vector<1x2x32xf32>
    %161 = vector.shape_cast %160 : vector<1x2x32xf32> to vector<2x32xf32>
    %162 = vector.shape_cast %156 : vector<2x32xf32> to vector<1x2x32xf32>
    tpu.vector_store %arg16[%159, %c0_93, %c0_94], %162 {strides = array<i32>} : memref<8x2x32xf32, #tpu.memory_space<vmem>>, vector<1x2x32xf32>,
    %c5_i32 = arith.constant 5 : i32
    %163 = arith.index_cast %c5_i32 : i32 to index
    %c0_95 = arith.constant 0 : index
    %c0_96 = arith.constant 0 : index
    %164 = vector.load %arg15[%163, %c0_95, %c0_96] : memref<8x2x128xf32, #tpu.memory_space<vmem>>, vector<1x2x128xf32>
    %165 = vector.shape_cast %164 : vector<1x2x128xf32> to vector<2x128xf32>
    %c0_97 = arith.constant 0 : index
    %c0_98 = arith.constant 0 : index
    %166 = vector.load %arg18[%c0_97, %c0_98] : memref<2x32xf32, #tpu.memory_space<vmem>>, vector<2x32xf32>
    %c0_99 = arith.constant 0 : index
    %c0_100 = arith.constant 0 : index
    %167 = vector.load %arg2[%c0_99, %c0_100] : memref<32x128xf32, #tpu.memory_space<vmem>>, vector<32x128xf32>
    %cst_101 = arith.constant dense<0.000000e+00> : vector<2x128xf32>
    %168 = tpu.matmul %166, %167, %cst_101 {dimension_numbers = #tpu.dot_dimension_numbers<[1], [0], [0], [1], [0, 0, 1, 1], [], []>} : vector<2x32xf32>, vector<32x128xf32>, vector<2x128xf32> -> vector<2x128xf32>
    %169 = arith.addf %165, %168 : vector<2x128xf32>
    %170 = vector.extract_strided_slice %169 {offsets = [0, 0], sizes = [2, 96], strides = [1, 1]} : vector<2x128xf32> to vector<2x96xf32>
    %171 = arith.negf %170 : vector<2x96xf32>
    %172 = math.exp %171 : vector<2x96xf32>
    %cst_102 = arith.constant 1.000000e+00 : f32
    %173 = vector.broadcast %cst_102 : f32 to vector<2x96xf32>
    %174 = arith.addf %173, %172 : vector<2x96xf32>
    %175 = arith.divf %173, %174 : vector<2x96xf32>
    %176 = vector.extract_strided_slice %175 {offsets = [0, 0], sizes = [2, 32], strides = [1, 1]} : vector<2x96xf32> to vector<2x32xf32>
    %177 = vector.extract_strided_slice %175 {offsets = [0, 32], sizes = [2, 32], strides = [1, 1]} : vector<2x96xf32> to vector<2x32xf32>
    %178 = vector.extract_strided_slice %175 {offsets = [0, 64], sizes = [2, 32], strides = [1, 1]} : vector<2x96xf32> to vector<2x32xf32>
    %179 = vector.extract_strided_slice %169 {offsets = [0, 96], sizes = [2, 32], strides = [1, 1]} : vector<2x128xf32> to vector<2x32xf32>
    %180 = math.tanh %179 : vector<2x32xf32>
    %c0_103 = arith.constant 0 : index
    %c0_104 = arith.constant 0 : index
    %181 = vector.load %arg19[%c0_103, %c0_104] : memref<2x32xf32, #tpu.memory_space<vmem>>, vector<2x32xf32>
    %182 = arith.mulf %177, %181 : vector<2x32xf32>
    %183 = arith.mulf %176, %180 : vector<2x32xf32>
    %184 = arith.addf %182, %183 : vector<2x32xf32>
    %185 = math.tanh %184 : vector<2x32xf32>
    %186 = arith.mulf %178, %185 : vector<2x32xf32>
    %c0_105 = arith.constant 0 : index
    %c0_106 = arith.constant 0 : index
    %187 = vector.load %arg19[%c0_105, %c0_106] : memref<2x32xf32, #tpu.memory_space<vmem>>, vector<2x32xf32>
    tpu.vector_store %arg19[%c0_105, %c0_106], %184 {strides = array<i32>} : memref<2x32xf32, #tpu.memory_space<vmem>>, vector<2x32xf32>,
    %c0_107 = arith.constant 0 : index
    %c0_108 = arith.constant 0 : index
    %188 = vector.load %arg18[%c0_107, %c0_108] : memref<2x32xf32, #tpu.memory_space<vmem>>, vector<2x32xf32>
    tpu.vector_store %arg18[%c0_107, %c0_108], %186 {strides = array<i32>} : memref<2x32xf32, #tpu.memory_space<vmem>>, vector<2x32xf32>,
    %189 = arith.index_cast %c5_i32 : i32 to index
    %c0_109 = arith.constant 0 : index
    %c0_110 = arith.constant 0 : index
    %190 = vector.load %arg16[%189, %c0_109, %c0_110] : memref<8x2x32xf32, #tpu.memory_space<vmem>>, vector<1x2x32xf32>
    %191 = vector.shape_cast %190 : vector<1x2x32xf32> to vector<2x32xf32>
    %192 = vector.shape_cast %186 : vector<2x32xf32> to vector<1x2x32xf32>
    tpu.vector_store %arg16[%189, %c0_109, %c0_110], %192 {strides = array<i32>} : memref<8x2x32xf32, #tpu.memory_space<vmem>>, vector<1x2x32xf32>,
    %c6_i32 = arith.constant 6 : i32
    %193 = arith.index_cast %c6_i32 : i32 to index
    %c0_111 = arith.constant 0 : index
    %c0_112 = arith.constant 0 : index
    %194 = vector.load %arg15[%193, %c0_111, %c0_112] : memref<8x2x128xf32, #tpu.memory_space<vmem>>, vector<1x2x128xf32>
    %195 = vector.shape_cast %194 : vector<1x2x128xf32> to vector<2x128xf32>
    %c0_113 = arith.constant 0 : index
    %c0_114 = arith.constant 0 : index
    %196 = vector.load %arg18[%c0_113, %c0_114] : memref<2x32xf32, #tpu.memory_space<vmem>>, vector<2x32xf32>
    %c0_115 = arith.constant 0 : index
    %c0_116 = arith.constant 0 : index
    %197 = vector.load %arg2[%c0_115, %c0_116] : memref<32x128xf32, #tpu.memory_space<vmem>>, vector<32x128xf32>
    %cst_117 = arith.constant dense<0.000000e+00> : vector<2x128xf32>
    %198 = tpu.matmul %196, %197, %cst_117 {dimension_numbers = #tpu.dot_dimension_numbers<[1], [0], [0], [1], [0, 0, 1, 1], [], []>} : vector<2x32xf32>, vector<32x128xf32>, vector<2x128xf32> -> vector<2x128xf32>
    %199 = arith.addf %195, %198 : vector<2x128xf32>
    %200 = vector.extract_strided_slice %199 {offsets = [0, 0], sizes = [2, 96], strides = [1, 1]} : vector<2x128xf32> to vector<2x96xf32>
    %201 = arith.negf %200 : vector<2x96xf32>
    %202 = math.exp %201 : vector<2x96xf32>
    %cst_118 = arith.constant 1.000000e+00 : f32
    %203 = vector.broadcast %cst_118 : f32 to vector<2x96xf32>
    %204 = arith.addf %203, %202 : vector<2x96xf32>
    %205 = arith.divf %203, %204 : vector<2x96xf32>
    %206 = vector.extract_strided_slice %205 {offsets = [0, 0], sizes = [2, 32], strides = [1, 1]} : vector<2x96xf32> to vector<2x32xf32>
    %207 = vector.extract_strided_slice %205 {offsets = [0, 32], sizes = [2, 32], strides = [1, 1]} : vector<2x96xf32> to vector<2x32xf32>
    %208 = vector.extract_strided_slice %205 {offsets = [0, 64], sizes = [2, 32], strides = [1, 1]} : vector<2x96xf32> to vector<2x32xf32>
    %209 = vector.extract_strided_slice %199 {offsets = [0, 96], sizes = [2, 32], strides = [1, 1]} : vector<2x128xf32> to vector<2x32xf32>
    %210 = math.tanh %209 : vector<2x32xf32>
    %c0_119 = arith.constant 0 : index
    %c0_120 = arith.constant 0 : index
    %211 = vector.load %arg19[%c0_119, %c0_120] : memref<2x32xf32, #tpu.memory_space<vmem>>, vector<2x32xf32>
    %212 = arith.mulf %207, %211 : vector<2x32xf32>
    %213 = arith.mulf %206, %210 : vector<2x32xf32>
    %214 = arith.addf %212, %213 : vector<2x32xf32>
    %215 = math.tanh %214 : vector<2x32xf32>
    %216 = arith.mulf %208, %215 : vector<2x32xf32>
    %c0_121 = arith.constant 0 : index
    %c0_122 = arith.constant 0 : index
    %217 = vector.load %arg19[%c0_121, %c0_122] : memref<2x32xf32, #tpu.memory_space<vmem>>, vector<2x32xf32>
    tpu.vector_store %arg19[%c0_121, %c0_122], %214 {strides = array<i32>} : memref<2x32xf32, #tpu.memory_space<vmem>>, vector<2x32xf32>,
    %c0_123 = arith.constant 0 : index
    %c0_124 = arith.constant 0 : index
    %218 = vector.load %arg18[%c0_123, %c0_124] : memref<2x32xf32, #tpu.memory_space<vmem>>, vector<2x32xf32>
    tpu.vector_store %arg18[%c0_123, %c0_124], %216 {strides = array<i32>} : memref<2x32xf32, #tpu.memory_space<vmem>>, vector<2x32xf32>,
    %219 = arith.index_cast %c6_i32 : i32 to index
    %c0_125 = arith.constant 0 : index
    %c0_126 = arith.constant 0 : index
    %220 = vector.load %arg16[%219, %c0_125, %c0_126] : memref<8x2x32xf32, #tpu.memory_space<vmem>>, vector<1x2x32xf32>
    %221 = vector.shape_cast %220 : vector<1x2x32xf32> to vector<2x32xf32>
    %222 = vector.shape_cast %216 : vector<2x32xf32> to vector<1x2x32xf32>
    tpu.vector_store %arg16[%219, %c0_125, %c0_126], %222 {strides = array<i32>} : memref<8x2x32xf32, #tpu.memory_space<vmem>>, vector<1x2x32xf32>,
    %c7_i32 = arith.constant 7 : i32
    %223 = arith.index_cast %c7_i32 : i32 to index
    %c0_127 = arith.constant 0 : index
    %c0_128 = arith.constant 0 : index
    %224 = vector.load %arg15[%223, %c0_127, %c0_128] : memref<8x2x128xf32, #tpu.memory_space<vmem>>, vector<1x2x128xf32>
    %225 = vector.shape_cast %224 : vector<1x2x128xf32> to vector<2x128xf32>
    %c0_129 = arith.constant 0 : index
    %c0_130 = arith.constant 0 : index
    %226 = vector.load %arg18[%c0_129, %c0_130] : memref<2x32xf32, #tpu.memory_space<vmem>>, vector<2x32xf32>
    %c0_131 = arith.constant 0 : index
    %c0_132 = arith.constant 0 : index
    %227 = vector.load %arg2[%c0_131, %c0_132] : memref<32x128xf32, #tpu.memory_space<vmem>>, vector<32x128xf32>
    %cst_133 = arith.constant dense<0.000000e+00> : vector<2x128xf32>
    %228 = tpu.matmul %226, %227, %cst_133 {dimension_numbers = #tpu.dot_dimension_numbers<[1], [0], [0], [1], [0, 0, 1, 1], [], []>} : vector<2x32xf32>, vector<32x128xf32>, vector<2x128xf32> -> vector<2x128xf32>
    %229 = arith.addf %225, %228 : vector<2x128xf32>
    %230 = vector.extract_strided_slice %229 {offsets = [0, 0], sizes = [2, 96], strides = [1, 1]} : vector<2x128xf32> to vector<2x96xf32>
    %231 = arith.negf %230 : vector<2x96xf32>
    %232 = math.exp %231 : vector<2x96xf32>
    %cst_134 = arith.constant 1.000000e+00 : f32
    %233 = vector.broadcast %cst_134 : f32 to vector<2x96xf32>
    %234 = arith.addf %233, %232 : vector<2x96xf32>
    %235 = arith.divf %233, %234 : vector<2x96xf32>
    %236 = vector.extract_strided_slice %235 {offsets = [0, 0], sizes = [2, 32], strides = [1, 1]} : vector<2x96xf32> to vector<2x32xf32>
    %237 = vector.extract_strided_slice %235 {offsets = [0, 32], sizes = [2, 32], strides = [1, 1]} : vector<2x96xf32> to vector<2x32xf32>
    %238 = vector.extract_strided_slice %235 {offsets = [0, 64], sizes = [2, 32], strides = [1, 1]} : vector<2x96xf32> to vector<2x32xf32>
    %239 = vector.extract_strided_slice %229 {offsets = [0, 96], sizes = [2, 32], strides = [1, 1]} : vector<2x128xf32> to vector<2x32xf32>
    %240 = math.tanh %239 : vector<2x32xf32>
    %c0_135 = arith.constant 0 : index
    %c0_136 = arith.constant 0 : index
    %241 = vector.load %arg19[%c0_135, %c0_136] : memref<2x32xf32, #tpu.memory_space<vmem>>, vector<2x32xf32>
    %242 = arith.mulf %237, %241 : vector<2x32xf32>
    %243 = arith.mulf %236, %240 : vector<2x32xf32>
    %244 = arith.addf %242, %243 : vector<2x32xf32>
    %245 = math.tanh %244 : vector<2x32xf32>
    %246 = arith.mulf %238, %245 : vector<2x32xf32>
    %c0_137 = arith.constant 0 : index
    %c0_138 = arith.constant 0 : index
    %247 = vector.load %arg19[%c0_137, %c0_138] : memref<2x32xf32, #tpu.memory_space<vmem>>, vector<2x32xf32>
    tpu.vector_store %arg19[%c0_137, %c0_138], %244 {strides = array<i32>} : memref<2x32xf32, #tpu.memory_space<vmem>>, vector<2x32xf32>,
    %c0_139 = arith.constant 0 : index
    %c0_140 = arith.constant 0 : index
    %248 = vector.load %arg18[%c0_139, %c0_140] : memref<2x32xf32, #tpu.memory_space<vmem>>, vector<2x32xf32>
    tpu.vector_store %arg18[%c0_139, %c0_140], %246 {strides = array<i32>} : memref<2x32xf32, #tpu.memory_space<vmem>>, vector<2x32xf32>,
    %249 = arith.index_cast %c7_i32 : i32 to index
    %c0_141 = arith.constant 0 : index
    %c0_142 = arith.constant 0 : index
    %250 = vector.load %arg16[%249, %c0_141, %c0_142] : memref<8x2x32xf32, #tpu.memory_space<vmem>>, vector<1x2x32xf32>
    %251 = vector.shape_cast %250 : vector<1x2x32xf32> to vector<2x32xf32>
    %252 = vector.shape_cast %246 : vector<2x32xf32> to vector<1x2x32xf32>
    tpu.vector_store %arg16[%249, %c0_141, %c0_142], %252 {strides = array<i32>} : memref<8x2x32xf32, #tpu.memory_space<vmem>>, vector<1x2x32xf32>,
    %c8_i32 = arith.constant 8 : i32
    %c0_143 = arith.constant 0 : index
    %c0_144 = arith.constant 0 : index
    %253 = vector.load %arg18[%c0_143, %c0_144] : memref<2x32xf32, #tpu.memory_space<vmem>>, vector<2x32xf32>
    %c0_145 = arith.constant 0 : index
    %c0_146 = arith.constant 0 : index
    %254 = vector.load %arg20[%c0_145, %c0_146] : memref<4x32xf32, #tpu.memory_space<vmem>>, vector<2x32xf32>
    tpu.vector_store %arg20[%c0_145, %c0_146], %253 {strides = array<i32>} : memref<4x32xf32, #tpu.memory_space<vmem>>, vector<2x32xf32>,
    %c0_147 = arith.constant 0 : index
    %c0_148 = arith.constant 0 : index
    %c0_149 = arith.constant 0 : index
    %255 = vector.load %arg16[%c0_147, %c0_148, %c0_149] : memref<8x2x32xf32, #tpu.memory_space<vmem>>, vector<8x2x32xf32>
    %256 = vector.shape_cast %255 : vector<8x2x32xf32> to vector<16x32xf32>
    %c0_150 = arith.constant 0 : index
    %c0_151 = arith.constant 0 : index
    %257 = vector.load %arg4[%c0_150, %c0_151] : memref<32x128xf32, #tpu.memory_space<vmem>>, vector<32x128xf32>
    %cst_152 = arith.constant dense<0.000000e+00> : vector<16x128xf32>
    %258 = tpu.matmul %256, %257, %cst_152 {dimension_numbers = #tpu.dot_dimension_numbers<[1], [0], [0], [1], [0, 0, 1, 1], [], []>} : vector<16x32xf32>, vector<32x128xf32>, vector<16x128xf32> -> vector<16x128xf32>
    %c0_153 = arith.constant 0 : index
    %c0_154 = arith.constant 0 : index
    %259 = vector.load %arg6[%c0_153, %c0_154] : memref<1x128xf32, #tpu.memory_space<vmem>>, vector<1x128xf32>
    %260 = vector.broadcast %259 : vector<1x128xf32> to vector<16x128xf32>
    %261 = arith.addf %258, %260 : vector<16x128xf32>
    %262 = vector.shape_cast %261 : vector<16x128xf32> to vector<8x2x128xf32>
    %c0_155 = arith.constant 0 : index
    %c0_156 = arith.constant 0 : index
    %c0_157 = arith.constant 0 : index
    %263 = vector.load %arg15[%c0_155, %c0_156, %c0_157] : memref<8x2x128xf32, #tpu.memory_space<vmem>>, vector<8x2x128xf32>
    tpu.vector_store %arg15[%c0_155, %c0_156, %c0_157], %262 {strides = array<i32>} : memref<8x2x128xf32, #tpu.memory_space<vmem>>, vector<8x2x128xf32>,
    %cst_158 = arith.constant 0.000000e+00 : f32
    %264 = vector.broadcast %cst_158 : f32 to vector<2x32xf32>
    %c0_159 = arith.constant 0 : index
    %c0_160 = arith.constant 0 : index
    %265 = vector.load %arg18[%c0_159, %c0_160] : memref<2x32xf32, #tpu.memory_space<vmem>>, vector<2x32xf32>
    tpu.vector_store %arg18[%c0_159, %c0_160], %264 {strides = array<i32>} : memref<2x32xf32, #tpu.memory_space<vmem>>, vector<2x32xf32>,
    %cst_161 = arith.constant 0.000000e+00 : f32
    %266 = vector.broadcast %cst_161 : f32 to vector<2x32xf32>
    %c0_162 = arith.constant 0 : index
    %c0_163 = arith.constant 0 : index
    %267 = vector.load %arg19[%c0_162, %c0_163] : memref<2x32xf32, #tpu.memory_space<vmem>>, vector<2x32xf32>
    tpu.vector_store %arg19[%c0_162, %c0_163], %266 {strides = array<i32>} : memref<2x32xf32, #tpu.memory_space<vmem>>, vector<2x32xf32>,
    %c0_i32_164 = arith.constant 0 : i32
    %268 = arith.index_cast %c0_i32_164 : i32 to index
    %c0_165 = arith.constant 0 : index
    %c0_166 = arith.constant 0 : index
    %269 = vector.load %arg15[%268, %c0_165, %c0_166] : memref<8x2x128xf32, #tpu.memory_space<vmem>>, vector<1x2x128xf32>
    %270 = vector.shape_cast %269 : vector<1x2x128xf32> to vector<2x128xf32>
    %c0_167 = arith.constant 0 : index
    %c0_168 = arith.constant 0 : index
    %271 = vector.load %arg18[%c0_167, %c0_168] : memref<2x32xf32, #tpu.memory_space<vmem>>, vector<2x32xf32>
    %c0_169 = arith.constant 0 : index
    %c0_170 = arith.constant 0 : index
    %272 = vector.load %arg5[%c0_169, %c0_170] : memref<32x128xf32, #tpu.memory_space<vmem>>, vector<32x128xf32>
    %cst_171 = arith.constant dense<0.000000e+00> : vector<2x128xf32>
    %273 = tpu.matmul %271, %272, %cst_171 {dimension_numbers = #tpu.dot_dimension_numbers<[1], [0], [0], [1], [0, 0, 1, 1], [], []>} : vector<2x32xf32>, vector<32x128xf32>, vector<2x128xf32> -> vector<2x128xf32>
    %274 = arith.addf %270, %273 : vector<2x128xf32>
    %275 = vector.extract_strided_slice %274 {offsets = [0, 0], sizes = [2, 96], strides = [1, 1]} : vector<2x128xf32> to vector<2x96xf32>
    %276 = arith.negf %275 : vector<2x96xf32>
    %277 = math.exp %276 : vector<2x96xf32>
    %cst_172 = arith.constant 1.000000e+00 : f32
    %278 = vector.broadcast %cst_172 : f32 to vector<2x96xf32>
    %279 = arith.addf %278, %277 : vector<2x96xf32>
    %280 = arith.divf %278, %279 : vector<2x96xf32>
    %281 = vector.extract_strided_slice %280 {offsets = [0, 0], sizes = [2, 32], strides = [1, 1]} : vector<2x96xf32> to vector<2x32xf32>
    %282 = vector.extract_strided_slice %280 {offsets = [0, 32], sizes = [2, 32], strides = [1, 1]} : vector<2x96xf32> to vector<2x32xf32>
    %283 = vector.extract_strided_slice %280 {offsets = [0, 64], sizes = [2, 32], strides = [1, 1]} : vector<2x96xf32> to vector<2x32xf32>
    %284 = vector.extract_strided_slice %274 {offsets = [0, 96], sizes = [2, 32], strides = [1, 1]} : vector<2x128xf32> to vector<2x32xf32>
    %285 = math.tanh %284 : vector<2x32xf32>
    %c0_173 = arith.constant 0 : index
    %c0_174 = arith.constant 0 : index
    %286 = vector.load %arg19[%c0_173, %c0_174] : memref<2x32xf32, #tpu.memory_space<vmem>>, vector<2x32xf32>
    %287 = arith.mulf %282, %286 : vector<2x32xf32>
    %288 = arith.mulf %281, %285 : vector<2x32xf32>
    %289 = arith.addf %287, %288 : vector<2x32xf32>
    %290 = math.tanh %289 : vector<2x32xf32>
    %291 = arith.mulf %283, %290 : vector<2x32xf32>
    %c0_175 = arith.constant 0 : index
    %c0_176 = arith.constant 0 : index
    %292 = vector.load %arg19[%c0_175, %c0_176] : memref<2x32xf32, #tpu.memory_space<vmem>>, vector<2x32xf32>
    tpu.vector_store %arg19[%c0_175, %c0_176], %289 {strides = array<i32>} : memref<2x32xf32, #tpu.memory_space<vmem>>, vector<2x32xf32>,
    %c0_177 = arith.constant 0 : index
    %c0_178 = arith.constant 0 : index
    %293 = vector.load %arg18[%c0_177, %c0_178] : memref<2x32xf32, #tpu.memory_space<vmem>>, vector<2x32xf32>
    tpu.vector_store %arg18[%c0_177, %c0_178], %291 {strides = array<i32>} : memref<2x32xf32, #tpu.memory_space<vmem>>, vector<2x32xf32>,
    %294 = vector.extract_strided_slice %291 {offsets = [0, 0], sizes = [1, 32], strides = [1, 1]} : vector<2x32xf32> to vector<1x32xf32>
    %c0_i32_179 = arith.constant 0 : i32
    %295 = arith.addi %c0_i32_179, %c0_i32_164 : i32
    %296 = arith.index_cast %295 : i32 to index
    %c0_180 = arith.constant 0 : index
    %297 = vector.load %arg17[%296, %c0_180] : memref<16x32xf32, #tpu.memory_space<vmem>>, vector<1x32xf32>
    tpu.vector_store %arg17[%296, %c0_180], %294 {strides = array<i32>} : memref<16x32xf32, #tpu.memory_space<vmem>>, vector<1x32xf32>,
    %298 = vector.extract_strided_slice %291 {offsets = [1, 0], sizes = [1, 32], strides = [1, 1]} : vector<2x32xf32> to vector<1x32xf32>
    %c8_i32_181 = arith.constant 8 : i32
    %299 = arith.addi %c8_i32_181, %c0_i32_164 : i32
    %300 = arith.index_cast %299 : i32 to index
    %c0_182 = arith.constant 0 : index
    %301 = vector.load %arg17[%300, %c0_182] : memref<16x32xf32, #tpu.memory_space<vmem>>, vector<1x32xf32>
    tpu.vector_store %arg17[%300, %c0_182], %298 {strides = array<i32>} : memref<16x32xf32, #tpu.memory_space<vmem>>, vector<1x32xf32>,
    %c1_i32_183 = arith.constant 1 : i32
    %302 = arith.index_cast %c1_i32_183 : i32 to index
    %c0_184 = arith.constant 0 : index
    %c0_185 = arith.constant 0 : index
    %303 = vector.load %arg15[%302, %c0_184, %c0_185] : memref<8x2x128xf32, #tpu.memory_space<vmem>>, vector<1x2x128xf32>
    %304 = vector.shape_cast %303 : vector<1x2x128xf32> to vector<2x128xf32>
    %c0_186 = arith.constant 0 : index
    %c0_187 = arith.constant 0 : index
    %305 = vector.load %arg18[%c0_186, %c0_187] : memref<2x32xf32, #tpu.memory_space<vmem>>, vector<2x32xf32>
    %c0_188 = arith.constant 0 : index
    %c0_189 = arith.constant 0 : index
    %306 = vector.load %arg5[%c0_188, %c0_189] : memref<32x128xf32, #tpu.memory_space<vmem>>, vector<32x128xf32>
    %cst_190 = arith.constant dense<0.000000e+00> : vector<2x128xf32>
    %307 = tpu.matmul %305, %306, %cst_190 {dimension_numbers = #tpu.dot_dimension_numbers<[1], [0], [0], [1], [0, 0, 1, 1], [], []>} : vector<2x32xf32>, vector<32x128xf32>, vector<2x128xf32> -> vector<2x128xf32>
    %308 = arith.addf %304, %307 : vector<2x128xf32>
    %309 = vector.extract_strided_slice %308 {offsets = [0, 0], sizes = [2, 96], strides = [1, 1]} : vector<2x128xf32> to vector<2x96xf32>
    %310 = arith.negf %309 : vector<2x96xf32>
    %311 = math.exp %310 : vector<2x96xf32>
    %cst_191 = arith.constant 1.000000e+00 : f32
    %312 = vector.broadcast %cst_191 : f32 to vector<2x96xf32>
    %313 = arith.addf %312, %311 : vector<2x96xf32>
    %314 = arith.divf %312, %313 : vector<2x96xf32>
    %315 = vector.extract_strided_slice %314 {offsets = [0, 0], sizes = [2, 32], strides = [1, 1]} : vector<2x96xf32> to vector<2x32xf32>
    %316 = vector.extract_strided_slice %314 {offsets = [0, 32], sizes = [2, 32], strides = [1, 1]} : vector<2x96xf32> to vector<2x32xf32>
    %317 = vector.extract_strided_slice %314 {offsets = [0, 64], sizes = [2, 32], strides = [1, 1]} : vector<2x96xf32> to vector<2x32xf32>
    %318 = vector.extract_strided_slice %308 {offsets = [0, 96], sizes = [2, 32], strides = [1, 1]} : vector<2x128xf32> to vector<2x32xf32>
    %319 = math.tanh %318 : vector<2x32xf32>
    %c0_192 = arith.constant 0 : index
    %c0_193 = arith.constant 0 : index
    %320 = vector.load %arg19[%c0_192, %c0_193] : memref<2x32xf32, #tpu.memory_space<vmem>>, vector<2x32xf32>
    %321 = arith.mulf %316, %320 : vector<2x32xf32>
    %322 = arith.mulf %315, %319 : vector<2x32xf32>
    %323 = arith.addf %321, %322 : vector<2x32xf32>
    %324 = math.tanh %323 : vector<2x32xf32>
    %325 = arith.mulf %317, %324 : vector<2x32xf32>
    %c0_194 = arith.constant 0 : index
    %c0_195 = arith.constant 0 : index
    %326 = vector.load %arg19[%c0_194, %c0_195] : memref<2x32xf32, #tpu.memory_space<vmem>>, vector<2x32xf32>
    tpu.vector_store %arg19[%c0_194, %c0_195], %323 {strides = array<i32>} : memref<2x32xf32, #tpu.memory_space<vmem>>, vector<2x32xf32>,
    %c0_196 = arith.constant 0 : index
    %c0_197 = arith.constant 0 : index
    %327 = vector.load %arg18[%c0_196, %c0_197] : memref<2x32xf32, #tpu.memory_space<vmem>>, vector<2x32xf32>
    tpu.vector_store %arg18[%c0_196, %c0_197], %325 {strides = array<i32>} : memref<2x32xf32, #tpu.memory_space<vmem>>, vector<2x32xf32>,
    %328 = vector.extract_strided_slice %325 {offsets = [0, 0], sizes = [1, 32], strides = [1, 1]} : vector<2x32xf32> to vector<1x32xf32>
    %c0_i32_198 = arith.constant 0 : i32
    %329 = arith.addi %c0_i32_198, %c1_i32_183 : i32
    %330 = arith.index_cast %329 : i32 to index
    %c0_199 = arith.constant 0 : index
    %331 = vector.load %arg17[%330, %c0_199] : memref<16x32xf32, #tpu.memory_space<vmem>>, vector<1x32xf32>
    tpu.vector_store %arg17[%330, %c0_199], %328 {strides = array<i32>} : memref<16x32xf32, #tpu.memory_space<vmem>>, vector<1x32xf32>,
    %332 = vector.extract_strided_slice %325 {offsets = [1, 0], sizes = [1, 32], strides = [1, 1]} : vector<2x32xf32> to vector<1x32xf32>
    %c8_i32_200 = arith.constant 8 : i32
    %333 = arith.addi %c8_i32_200, %c1_i32_183 : i32
    %334 = arith.index_cast %333 : i32 to index
    %c0_201 = arith.constant 0 : index
    %335 = vector.load %arg17[%334, %c0_201] : memref<16x32xf32, #tpu.memory_space<vmem>>, vector<1x32xf32>
    tpu.vector_store %arg17[%334, %c0_201], %332 {strides = array<i32>} : memref<16x32xf32, #tpu.memory_space<vmem>>, vector<1x32xf32>,
    %c2_i32_202 = arith.constant 2 : i32
    %336 = arith.index_cast %c2_i32_202 : i32 to index
    %c0_203 = arith.constant 0 : index
    %c0_204 = arith.constant 0 : index
    %337 = vector.load %arg15[%336, %c0_203, %c0_204] : memref<8x2x128xf32, #tpu.memory_space<vmem>>, vector<1x2x128xf32>
    %338 = vector.shape_cast %337 : vector<1x2x128xf32> to vector<2x128xf32>
    %c0_205 = arith.constant 0 : index
    %c0_206 = arith.constant 0 : index
    %339 = vector.load %arg18[%c0_205, %c0_206] : memref<2x32xf32, #tpu.memory_space<vmem>>, vector<2x32xf32>
    %c0_207 = arith.constant 0 : index
    %c0_208 = arith.constant 0 : index
    %340 = vector.load %arg5[%c0_207, %c0_208] : memref<32x128xf32, #tpu.memory_space<vmem>>, vector<32x128xf32>
    %cst_209 = arith.constant dense<0.000000e+00> : vector<2x128xf32>
    %341 = tpu.matmul %339, %340, %cst_209 {dimension_numbers = #tpu.dot_dimension_numbers<[1], [0], [0], [1], [0, 0, 1, 1], [], []>} : vector<2x32xf32>, vector<32x128xf32>, vector<2x128xf32> -> vector<2x128xf32>
    %342 = arith.addf %338, %341 : vector<2x128xf32>
    %343 = vector.extract_strided_slice %342 {offsets = [0, 0], sizes = [2, 96], strides = [1, 1]} : vector<2x128xf32> to vector<2x96xf32>
    %344 = arith.negf %343 : vector<2x96xf32>
    %345 = math.exp %344 : vector<2x96xf32>
    %cst_210 = arith.constant 1.000000e+00 : f32
    %346 = vector.broadcast %cst_210 : f32 to vector<2x96xf32>
    %347 = arith.addf %346, %345 : vector<2x96xf32>
    %348 = arith.divf %346, %347 : vector<2x96xf32>
    %349 = vector.extract_strided_slice %348 {offsets = [0, 0], sizes = [2, 32], strides = [1, 1]} : vector<2x96xf32> to vector<2x32xf32>
    %350 = vector.extract_strided_slice %348 {offsets = [0, 32], sizes = [2, 32], strides = [1, 1]} : vector<2x96xf32> to vector<2x32xf32>
    %351 = vector.extract_strided_slice %348 {offsets = [0, 64], sizes = [2, 32], strides = [1, 1]} : vector<2x96xf32> to vector<2x32xf32>
    %352 = vector.extract_strided_slice %342 {offsets = [0, 96], sizes = [2, 32], strides = [1, 1]} : vector<2x128xf32> to vector<2x32xf32>
    %353 = math.tanh %352 : vector<2x32xf32>
    %c0_211 = arith.constant 0 : index
    %c0_212 = arith.constant 0 : index
    %354 = vector.load %arg19[%c0_211, %c0_212] : memref<2x32xf32, #tpu.memory_space<vmem>>, vector<2x32xf32>
    %355 = arith.mulf %350, %354 : vector<2x32xf32>
    %356 = arith.mulf %349, %353 : vector<2x32xf32>
    %357 = arith.addf %355, %356 : vector<2x32xf32>
    %358 = math.tanh %357 : vector<2x32xf32>
    %359 = arith.mulf %351, %358 : vector<2x32xf32>
    %c0_213 = arith.constant 0 : index
    %c0_214 = arith.constant 0 : index
    %360 = vector.load %arg19[%c0_213, %c0_214] : memref<2x32xf32, #tpu.memory_space<vmem>>, vector<2x32xf32>
    tpu.vector_store %arg19[%c0_213, %c0_214], %357 {strides = array<i32>} : memref<2x32xf32, #tpu.memory_space<vmem>>, vector<2x32xf32>,
    %c0_215 = arith.constant 0 : index
    %c0_216 = arith.constant 0 : index
    %361 = vector.load %arg18[%c0_215, %c0_216] : memref<2x32xf32, #tpu.memory_space<vmem>>, vector<2x32xf32>
    tpu.vector_store %arg18[%c0_215, %c0_216], %359 {strides = array<i32>} : memref<2x32xf32, #tpu.memory_space<vmem>>, vector<2x32xf32>,
    %362 = vector.extract_strided_slice %359 {offsets = [0, 0], sizes = [1, 32], strides = [1, 1]} : vector<2x32xf32> to vector<1x32xf32>
    %c0_i32_217 = arith.constant 0 : i32
    %363 = arith.addi %c0_i32_217, %c2_i32_202 : i32
    %364 = arith.index_cast %363 : i32 to index
    %c0_218 = arith.constant 0 : index
    %365 = vector.load %arg17[%364, %c0_218] : memref<16x32xf32, #tpu.memory_space<vmem>>, vector<1x32xf32>
    tpu.vector_store %arg17[%364, %c0_218], %362 {strides = array<i32>} : memref<16x32xf32, #tpu.memory_space<vmem>>, vector<1x32xf32>,
    %366 = vector.extract_strided_slice %359 {offsets = [1, 0], sizes = [1, 32], strides = [1, 1]} : vector<2x32xf32> to vector<1x32xf32>
    %c8_i32_219 = arith.constant 8 : i32
    %367 = arith.addi %c8_i32_219, %c2_i32_202 : i32
    %368 = arith.index_cast %367 : i32 to index
    %c0_220 = arith.constant 0 : index
    %369 = vector.load %arg17[%368, %c0_220] : memref<16x32xf32, #tpu.memory_space<vmem>>, vector<1x32xf32>
    tpu.vector_store %arg17[%368, %c0_220], %366 {strides = array<i32>} : memref<16x32xf32, #tpu.memory_space<vmem>>, vector<1x32xf32>,
    %c3_i32_221 = arith.constant 3 : i32
    %370 = arith.index_cast %c3_i32_221 : i32 to index
    %c0_222 = arith.constant 0 : index
    %c0_223 = arith.constant 0 : index
    %371 = vector.load %arg15[%370, %c0_222, %c0_223] : memref<8x2x128xf32, #tpu.memory_space<vmem>>, vector<1x2x128xf32>
    %372 = vector.shape_cast %371 : vector<1x2x128xf32> to vector<2x128xf32>
    %c0_224 = arith.constant 0 : index
    %c0_225 = arith.constant 0 : index
    %373 = vector.load %arg18[%c0_224, %c0_225] : memref<2x32xf32, #tpu.memory_space<vmem>>, vector<2x32xf32>
    %c0_226 = arith.constant 0 : index
    %c0_227 = arith.constant 0 : index
    %374 = vector.load %arg5[%c0_226, %c0_227] : memref<32x128xf32, #tpu.memory_space<vmem>>, vector<32x128xf32>
    %cst_228 = arith.constant dense<0.000000e+00> : vector<2x128xf32>
    %375 = tpu.matmul %373, %374, %cst_228 {dimension_numbers = #tpu.dot_dimension_numbers<[1], [0], [0], [1], [0, 0, 1, 1], [], []>} : vector<2x32xf32>, vector<32x128xf32>, vector<2x128xf32> -> vector<2x128xf32>
    %376 = arith.addf %372, %375 : vector<2x128xf32>
    %377 = vector.extract_strided_slice %376 {offsets = [0, 0], sizes = [2, 96], strides = [1, 1]} : vector<2x128xf32> to vector<2x96xf32>
    %378 = arith.negf %377 : vector<2x96xf32>
    %379 = math.exp %378 : vector<2x96xf32>
    %cst_229 = arith.constant 1.000000e+00 : f32
    %380 = vector.broadcast %cst_229 : f32 to vector<2x96xf32>
    %381 = arith.addf %380, %379 : vector<2x96xf32>
    %382 = arith.divf %380, %381 : vector<2x96xf32>
    %383 = vector.extract_strided_slice %382 {offsets = [0, 0], sizes = [2, 32], strides = [1, 1]} : vector<2x96xf32> to vector<2x32xf32>
    %384 = vector.extract_strided_slice %382 {offsets = [0, 32], sizes = [2, 32], strides = [1, 1]} : vector<2x96xf32> to vector<2x32xf32>
    %385 = vector.extract_strided_slice %382 {offsets = [0, 64], sizes = [2, 32], strides = [1, 1]} : vector<2x96xf32> to vector<2x32xf32>
    %386 = vector.extract_strided_slice %376 {offsets = [0, 96], sizes = [2, 32], strides = [1, 1]} : vector<2x128xf32> to vector<2x32xf32>
    %387 = math.tanh %386 : vector<2x32xf32>
    %c0_230 = arith.constant 0 : index
    %c0_231 = arith.constant 0 : index
    %388 = vector.load %arg19[%c0_230, %c0_231] : memref<2x32xf32, #tpu.memory_space<vmem>>, vector<2x32xf32>
    %389 = arith.mulf %384, %388 : vector<2x32xf32>
    %390 = arith.mulf %383, %387 : vector<2x32xf32>
    %391 = arith.addf %389, %390 : vector<2x32xf32>
    %392 = math.tanh %391 : vector<2x32xf32>
    %393 = arith.mulf %385, %392 : vector<2x32xf32>
    %c0_232 = arith.constant 0 : index
    %c0_233 = arith.constant 0 : index
    %394 = vector.load %arg19[%c0_232, %c0_233] : memref<2x32xf32, #tpu.memory_space<vmem>>, vector<2x32xf32>
    tpu.vector_store %arg19[%c0_232, %c0_233], %391 {strides = array<i32>} : memref<2x32xf32, #tpu.memory_space<vmem>>, vector<2x32xf32>,
    %c0_234 = arith.constant 0 : index
    %c0_235 = arith.constant 0 : index
    %395 = vector.load %arg18[%c0_234, %c0_235] : memref<2x32xf32, #tpu.memory_space<vmem>>, vector<2x32xf32>
    tpu.vector_store %arg18[%c0_234, %c0_235], %393 {strides = array<i32>} : memref<2x32xf32, #tpu.memory_space<vmem>>, vector<2x32xf32>,
    %396 = vector.extract_strided_slice %393 {offsets = [0, 0], sizes = [1, 32], strides = [1, 1]} : vector<2x32xf32> to vector<1x32xf32>
    %c0_i32_236 = arith.constant 0 : i32
    %397 = arith.addi %c0_i32_236, %c3_i32_221 : i32
    %398 = arith.index_cast %397 : i32 to index
    %c0_237 = arith.constant 0 : index
    %399 = vector.load %arg17[%398, %c0_237] : memref<16x32xf32, #tpu.memory_space<vmem>>, vector<1x32xf32>
    tpu.vector_store %arg17[%398, %c0_237], %396 {strides = array<i32>} : memref<16x32xf32, #tpu.memory_space<vmem>>, vector<1x32xf32>,
    %400 = vector.extract_strided_slice %393 {offsets = [1, 0], sizes = [1, 32], strides = [1, 1]} : vector<2x32xf32> to vector<1x32xf32>
    %c8_i32_238 = arith.constant 8 : i32
    %401 = arith.addi %c8_i32_238, %c3_i32_221 : i32
    %402 = arith.index_cast %401 : i32 to index
    %c0_239 = arith.constant 0 : index
    %403 = vector.load %arg17[%402, %c0_239] : memref<16x32xf32, #tpu.memory_space<vmem>>, vector<1x32xf32>
    tpu.vector_store %arg17[%402, %c0_239], %400 {strides = array<i32>} : memref<16x32xf32, #tpu.memory_space<vmem>>, vector<1x32xf32>,
    %c4_i32_240 = arith.constant 4 : i32
    %404 = arith.index_cast %c4_i32_240 : i32 to index
    %c0_241 = arith.constant 0 : index
    %c0_242 = arith.constant 0 : index
    %405 = vector.load %arg15[%404, %c0_241, %c0_242] : memref<8x2x128xf32, #tpu.memory_space<vmem>>, vector<1x2x128xf32>
    %406 = vector.shape_cast %405 : vector<1x2x128xf32> to vector<2x128xf32>
    %c0_243 = arith.constant 0 : index
    %c0_244 = arith.constant 0 : index
    %407 = vector.load %arg18[%c0_243, %c0_244] : memref<2x32xf32, #tpu.memory_space<vmem>>, vector<2x32xf32>
    %c0_245 = arith.constant 0 : index
    %c0_246 = arith.constant 0 : index
    %408 = vector.load %arg5[%c0_245, %c0_246] : memref<32x128xf32, #tpu.memory_space<vmem>>, vector<32x128xf32>
    %cst_247 = arith.constant dense<0.000000e+00> : vector<2x128xf32>
    %409 = tpu.matmul %407, %408, %cst_247 {dimension_numbers = #tpu.dot_dimension_numbers<[1], [0], [0], [1], [0, 0, 1, 1], [], []>} : vector<2x32xf32>, vector<32x128xf32>, vector<2x128xf32> -> vector<2x128xf32>
    %410 = arith.addf %406, %409 : vector<2x128xf32>
    %411 = vector.extract_strided_slice %410 {offsets = [0, 0], sizes = [2, 96], strides = [1, 1]} : vector<2x128xf32> to vector<2x96xf32>
    %412 = arith.negf %411 : vector<2x96xf32>
    %413 = math.exp %412 : vector<2x96xf32>
    %cst_248 = arith.constant 1.000000e+00 : f32
    %414 = vector.broadcast %cst_248 : f32 to vector<2x96xf32>
    %415 = arith.addf %414, %413 : vector<2x96xf32>
    %416 = arith.divf %414, %415 : vector<2x96xf32>
    %417 = vector.extract_strided_slice %416 {offsets = [0, 0], sizes = [2, 32], strides = [1, 1]} : vector<2x96xf32> to vector<2x32xf32>
    %418 = vector.extract_strided_slice %416 {offsets = [0, 32], sizes = [2, 32], strides = [1, 1]} : vector<2x96xf32> to vector<2x32xf32>
    %419 = vector.extract_strided_slice %416 {offsets = [0, 64], sizes = [2, 32], strides = [1, 1]} : vector<2x96xf32> to vector<2x32xf32>
    %420 = vector.extract_strided_slice %410 {offsets = [0, 96], sizes = [2, 32], strides = [1, 1]} : vector<2x128xf32> to vector<2x32xf32>
    %421 = math.tanh %420 : vector<2x32xf32>
    %c0_249 = arith.constant 0 : index
    %c0_250 = arith.constant 0 : index
    %422 = vector.load %arg19[%c0_249, %c0_250] : memref<2x32xf32, #tpu.memory_space<vmem>>, vector<2x32xf32>
    %423 = arith.mulf %418, %422 : vector<2x32xf32>
    %424 = arith.mulf %417, %421 : vector<2x32xf32>
    %425 = arith.addf %423, %424 : vector<2x32xf32>
    %426 = math.tanh %425 : vector<2x32xf32>
    %427 = arith.mulf %419, %426 : vector<2x32xf32>
    %c0_251 = arith.constant 0 : index
    %c0_252 = arith.constant 0 : index
    %428 = vector.load %arg19[%c0_251, %c0_252] : memref<2x32xf32, #tpu.memory_space<vmem>>, vector<2x32xf32>
    tpu.vector_store %arg19[%c0_251, %c0_252], %425 {strides = array<i32>} : memref<2x32xf32, #tpu.memory_space<vmem>>, vector<2x32xf32>,
    %c0_253 = arith.constant 0 : index
    %c0_254 = arith.constant 0 : index
    %429 = vector.load %arg18[%c0_253, %c0_254] : memref<2x32xf32, #tpu.memory_space<vmem>>, vector<2x32xf32>
    tpu.vector_store %arg18[%c0_253, %c0_254], %427 {strides = array<i32>} : memref<2x32xf32, #tpu.memory_space<vmem>>, vector<2x32xf32>,
    %430 = vector.extract_strided_slice %427 {offsets = [0, 0], sizes = [1, 32], strides = [1, 1]} : vector<2x32xf32> to vector<1x32xf32>
    %c0_i32_255 = arith.constant 0 : i32
    %431 = arith.addi %c0_i32_255, %c4_i32_240 : i32
    %432 = arith.index_cast %431 : i32 to index
    %c0_256 = arith.constant 0 : index
    %433 = vector.load %arg17[%432, %c0_256] : memref<16x32xf32, #tpu.memory_space<vmem>>, vector<1x32xf32>
    tpu.vector_store %arg17[%432, %c0_256], %430 {strides = array<i32>} : memref<16x32xf32, #tpu.memory_space<vmem>>, vector<1x32xf32>,
    %434 = vector.extract_strided_slice %427 {offsets = [1, 0], sizes = [1, 32], strides = [1, 1]} : vector<2x32xf32> to vector<1x32xf32>
    %c8_i32_257 = arith.constant 8 : i32
    %435 = arith.addi %c8_i32_257, %c4_i32_240 : i32
    %436 = arith.index_cast %435 : i32 to index
    %c0_258 = arith.constant 0 : index
    %437 = vector.load %arg17[%436, %c0_258] : memref<16x32xf32, #tpu.memory_space<vmem>>, vector<1x32xf32>
    tpu.vector_store %arg17[%436, %c0_258], %434 {strides = array<i32>} : memref<16x32xf32, #tpu.memory_space<vmem>>, vector<1x32xf32>,
    %c5_i32_259 = arith.constant 5 : i32
    %438 = arith.index_cast %c5_i32_259 : i32 to index
    %c0_260 = arith.constant 0 : index
    %c0_261 = arith.constant 0 : index
    %439 = vector.load %arg15[%438, %c0_260, %c0_261] : memref<8x2x128xf32, #tpu.memory_space<vmem>>, vector<1x2x128xf32>
    %440 = vector.shape_cast %439 : vector<1x2x128xf32> to vector<2x128xf32>
    %c0_262 = arith.constant 0 : index
    %c0_263 = arith.constant 0 : index
    %441 = vector.load %arg18[%c0_262, %c0_263] : memref<2x32xf32, #tpu.memory_space<vmem>>, vector<2x32xf32>
    %c0_264 = arith.constant 0 : index
    %c0_265 = arith.constant 0 : index
    %442 = vector.load %arg5[%c0_264, %c0_265] : memref<32x128xf32, #tpu.memory_space<vmem>>, vector<32x128xf32>
    %cst_266 = arith.constant dense<0.000000e+00> : vector<2x128xf32>
    %443 = tpu.matmul %441, %442, %cst_266 {dimension_numbers = #tpu.dot_dimension_numbers<[1], [0], [0], [1], [0, 0, 1, 1], [], []>} : vector<2x32xf32>, vector<32x128xf32>, vector<2x128xf32> -> vector<2x128xf32>
    %444 = arith.addf %440, %443 : vector<2x128xf32>
    %445 = vector.extract_strided_slice %444 {offsets = [0, 0], sizes = [2, 96], strides = [1, 1]} : vector<2x128xf32> to vector<2x96xf32>
    %446 = arith.negf %445 : vector<2x96xf32>
    %447 = math.exp %446 : vector<2x96xf32>
    %cst_267 = arith.constant 1.000000e+00 : f32
    %448 = vector.broadcast %cst_267 : f32 to vector<2x96xf32>
    %449 = arith.addf %448, %447 : vector<2x96xf32>
    %450 = arith.divf %448, %449 : vector<2x96xf32>
    %451 = vector.extract_strided_slice %450 {offsets = [0, 0], sizes = [2, 32], strides = [1, 1]} : vector<2x96xf32> to vector<2x32xf32>
    %452 = vector.extract_strided_slice %450 {offsets = [0, 32], sizes = [2, 32], strides = [1, 1]} : vector<2x96xf32> to vector<2x32xf32>
    %453 = vector.extract_strided_slice %450 {offsets = [0, 64], sizes = [2, 32], strides = [1, 1]} : vector<2x96xf32> to vector<2x32xf32>
    %454 = vector.extract_strided_slice %444 {offsets = [0, 96], sizes = [2, 32], strides = [1, 1]} : vector<2x128xf32> to vector<2x32xf32>
    %455 = math.tanh %454 : vector<2x32xf32>
    %c0_268 = arith.constant 0 : index
    %c0_269 = arith.constant 0 : index
    %456 = vector.load %arg19[%c0_268, %c0_269] : memref<2x32xf32, #tpu.memory_space<vmem>>, vector<2x32xf32>
    %457 = arith.mulf %452, %456 : vector<2x32xf32>
    %458 = arith.mulf %451, %455 : vector<2x32xf32>
    %459 = arith.addf %457, %458 : vector<2x32xf32>
    %460 = math.tanh %459 : vector<2x32xf32>
    %461 = arith.mulf %453, %460 : vector<2x32xf32>
    %c0_270 = arith.constant 0 : index
    %c0_271 = arith.constant 0 : index
    %462 = vector.load %arg19[%c0_270, %c0_271] : memref<2x32xf32, #tpu.memory_space<vmem>>, vector<2x32xf32>
    tpu.vector_store %arg19[%c0_270, %c0_271], %459 {strides = array<i32>} : memref<2x32xf32, #tpu.memory_space<vmem>>, vector<2x32xf32>,
    %c0_272 = arith.constant 0 : index
    %c0_273 = arith.constant 0 : index
    %463 = vector.load %arg18[%c0_272, %c0_273] : memref<2x32xf32, #tpu.memory_space<vmem>>, vector<2x32xf32>
    tpu.vector_store %arg18[%c0_272, %c0_273], %461 {strides = array<i32>} : memref<2x32xf32, #tpu.memory_space<vmem>>, vector<2x32xf32>,
    %464 = vector.extract_strided_slice %461 {offsets = [0, 0], sizes = [1, 32], strides = [1, 1]} : vector<2x32xf32> to vector<1x32xf32>
    %c0_i32_274 = arith.constant 0 : i32
    %465 = arith.addi %c0_i32_274, %c5_i32_259 : i32
    %466 = arith.index_cast %465 : i32 to index
    %c0_275 = arith.constant 0 : index
    %467 = vector.load %arg17[%466, %c0_275] : memref<16x32xf32, #tpu.memory_space<vmem>>, vector<1x32xf32>
    tpu.vector_store %arg17[%466, %c0_275], %464 {strides = array<i32>} : memref<16x32xf32, #tpu.memory_space<vmem>>, vector<1x32xf32>,
    %468 = vector.extract_strided_slice %461 {offsets = [1, 0], sizes = [1, 32], strides = [1, 1]} : vector<2x32xf32> to vector<1x32xf32>
    %c8_i32_276 = arith.constant 8 : i32
    %469 = arith.addi %c8_i32_276, %c5_i32_259 : i32
    %470 = arith.index_cast %469 : i32 to index
    %c0_277 = arith.constant 0 : index
    %471 = vector.load %arg17[%470, %c0_277] : memref<16x32xf32, #tpu.memory_space<vmem>>, vector<1x32xf32>
    tpu.vector_store %arg17[%470, %c0_277], %468 {strides = array<i32>} : memref<16x32xf32, #tpu.memory_space<vmem>>, vector<1x32xf32>,
    %c6_i32_278 = arith.constant 6 : i32
    %472 = arith.index_cast %c6_i32_278 : i32 to index
    %c0_279 = arith.constant 0 : index
    %c0_280 = arith.constant 0 : index
    %473 = vector.load %arg15[%472, %c0_279, %c0_280] : memref<8x2x128xf32, #tpu.memory_space<vmem>>, vector<1x2x128xf32>
    %474 = vector.shape_cast %473 : vector<1x2x128xf32> to vector<2x128xf32>
    %c0_281 = arith.constant 0 : index
    %c0_282 = arith.constant 0 : index
    %475 = vector.load %arg18[%c0_281, %c0_282] : memref<2x32xf32, #tpu.memory_space<vmem>>, vector<2x32xf32>
    %c0_283 = arith.constant 0 : index
    %c0_284 = arith.constant 0 : index
    %476 = vector.load %arg5[%c0_283, %c0_284] : memref<32x128xf32, #tpu.memory_space<vmem>>, vector<32x128xf32>
    %cst_285 = arith.constant dense<0.000000e+00> : vector<2x128xf32>
    %477 = tpu.matmul %475, %476, %cst_285 {dimension_numbers = #tpu.dot_dimension_numbers<[1], [0], [0], [1], [0, 0, 1, 1], [], []>} : vector<2x32xf32>, vector<32x128xf32>, vector<2x128xf32> -> vector<2x128xf32>
    %478 = arith.addf %474, %477 : vector<2x128xf32>
    %479 = vector.extract_strided_slice %478 {offsets = [0, 0], sizes = [2, 96], strides = [1, 1]} : vector<2x128xf32> to vector<2x96xf32>
    %480 = arith.negf %479 : vector<2x96xf32>
    %481 = math.exp %480 : vector<2x96xf32>
    %cst_286 = arith.constant 1.000000e+00 : f32
    %482 = vector.broadcast %cst_286 : f32 to vector<2x96xf32>
    %483 = arith.addf %482, %481 : vector<2x96xf32>
    %484 = arith.divf %482, %483 : vector<2x96xf32>
    %485 = vector.extract_strided_slice %484 {offsets = [0, 0], sizes = [2, 32], strides = [1, 1]} : vector<2x96xf32> to vector<2x32xf32>
    %486 = vector.extract_strided_slice %484 {offsets = [0, 32], sizes = [2, 32], strides = [1, 1]} : vector<2x96xf32> to vector<2x32xf32>
    %487 = vector.extract_strided_slice %484 {offsets = [0, 64], sizes = [2, 32], strides = [1, 1]} : vector<2x96xf32> to vector<2x32xf32>
    %488 = vector.extract_strided_slice %478 {offsets = [0, 96], sizes = [2, 32], strides = [1, 1]} : vector<2x128xf32> to vector<2x32xf32>
    %489 = math.tanh %488 : vector<2x32xf32>
    %c0_287 = arith.constant 0 : index
    %c0_288 = arith.constant 0 : index
    %490 = vector.load %arg19[%c0_287, %c0_288] : memref<2x32xf32, #tpu.memory_space<vmem>>, vector<2x32xf32>
    %491 = arith.mulf %486, %490 : vector<2x32xf32>
    %492 = arith.mulf %485, %489 : vector<2x32xf32>
    %493 = arith.addf %491, %492 : vector<2x32xf32>
    %494 = math.tanh %493 : vector<2x32xf32>
    %495 = arith.mulf %487, %494 : vector<2x32xf32>
    %c0_289 = arith.constant 0 : index
    %c0_290 = arith.constant 0 : index
    %496 = vector.load %arg19[%c0_289, %c0_290] : memref<2x32xf32, #tpu.memory_space<vmem>>, vector<2x32xf32>
    tpu.vector_store %arg19[%c0_289, %c0_290], %493 {strides = array<i32>} : memref<2x32xf32, #tpu.memory_space<vmem>>, vector<2x32xf32>,
    %c0_291 = arith.constant 0 : index
    %c0_292 = arith.constant 0 : index
    %497 = vector.load %arg18[%c0_291, %c0_292] : memref<2x32xf32, #tpu.memory_space<vmem>>, vector<2x32xf32>
    tpu.vector_store %arg18[%c0_291, %c0_292], %495 {strides = array<i32>} : memref<2x32xf32, #tpu.memory_space<vmem>>, vector<2x32xf32>,
    %498 = vector.extract_strided_slice %495 {offsets = [0, 0], sizes = [1, 32], strides = [1, 1]} : vector<2x32xf32> to vector<1x32xf32>
    %c0_i32_293 = arith.constant 0 : i32
    %499 = arith.addi %c0_i32_293, %c6_i32_278 : i32
    %500 = arith.index_cast %499 : i32 to index
    %c0_294 = arith.constant 0 : index
    %501 = vector.load %arg17[%500, %c0_294] : memref<16x32xf32, #tpu.memory_space<vmem>>, vector<1x32xf32>
    tpu.vector_store %arg17[%500, %c0_294], %498 {strides = array<i32>} : memref<16x32xf32, #tpu.memory_space<vmem>>, vector<1x32xf32>,
    %502 = vector.extract_strided_slice %495 {offsets = [1, 0], sizes = [1, 32], strides = [1, 1]} : vector<2x32xf32> to vector<1x32xf32>
    %c8_i32_295 = arith.constant 8 : i32
    %503 = arith.addi %c8_i32_295, %c6_i32_278 : i32
    %504 = arith.index_cast %503 : i32 to index
    %c0_296 = arith.constant 0 : index
    %505 = vector.load %arg17[%504, %c0_296] : memref<16x32xf32, #tpu.memory_space<vmem>>, vector<1x32xf32>
    tpu.vector_store %arg17[%504, %c0_296], %502 {strides = array<i32>} : memref<16x32xf32, #tpu.memory_space<vmem>>, vector<1x32xf32>,
    %c7_i32_297 = arith.constant 7 : i32
    %506 = arith.index_cast %c7_i32_297 : i32 to index
    %c0_298 = arith.constant 0 : index
    %c0_299 = arith.constant 0 : index
    %507 = vector.load %arg15[%506, %c0_298, %c0_299] : memref<8x2x128xf32, #tpu.memory_space<vmem>>, vector<1x2x128xf32>
    %508 = vector.shape_cast %507 : vector<1x2x128xf32> to vector<2x128xf32>
    %c0_300 = arith.constant 0 : index
    %c0_301 = arith.constant 0 : index
    %509 = vector.load %arg18[%c0_300, %c0_301] : memref<2x32xf32, #tpu.memory_space<vmem>>, vector<2x32xf32>
    %c0_302 = arith.constant 0 : index
    %c0_303 = arith.constant 0 : index
    %510 = vector.load %arg5[%c0_302, %c0_303] : memref<32x128xf32, #tpu.memory_space<vmem>>, vector<32x128xf32>
    %cst_304 = arith.constant dense<0.000000e+00> : vector<2x128xf32>
    %511 = tpu.matmul %509, %510, %cst_304 {dimension_numbers = #tpu.dot_dimension_numbers<[1], [0], [0], [1], [0, 0, 1, 1], [], []>} : vector<2x32xf32>, vector<32x128xf32>, vector<2x128xf32> -> vector<2x128xf32>
    %512 = arith.addf %508, %511 : vector<2x128xf32>
    %513 = vector.extract_strided_slice %512 {offsets = [0, 0], sizes = [2, 96], strides = [1, 1]} : vector<2x128xf32> to vector<2x96xf32>
    %514 = arith.negf %513 : vector<2x96xf32>
    %515 = math.exp %514 : vector<2x96xf32>
    %cst_305 = arith.constant 1.000000e+00 : f32
    %516 = vector.broadcast %cst_305 : f32 to vector<2x96xf32>
    %517 = arith.addf %516, %515 : vector<2x96xf32>
    %518 = arith.divf %516, %517 : vector<2x96xf32>
    %519 = vector.extract_strided_slice %518 {offsets = [0, 0], sizes = [2, 32], strides = [1, 1]} : vector<2x96xf32> to vector<2x32xf32>
    %520 = vector.extract_strided_slice %518 {offsets = [0, 32], sizes = [2, 32], strides = [1, 1]} : vector<2x96xf32> to vector<2x32xf32>
    %521 = vector.extract_strided_slice %518 {offsets = [0, 64], sizes = [2, 32], strides = [1, 1]} : vector<2x96xf32> to vector<2x32xf32>
    %522 = vector.extract_strided_slice %512 {offsets = [0, 96], sizes = [2, 32], strides = [1, 1]} : vector<2x128xf32> to vector<2x32xf32>
    %523 = math.tanh %522 : vector<2x32xf32>
    %c0_306 = arith.constant 0 : index
    %c0_307 = arith.constant 0 : index
    %524 = vector.load %arg19[%c0_306, %c0_307] : memref<2x32xf32, #tpu.memory_space<vmem>>, vector<2x32xf32>
    %525 = arith.mulf %520, %524 : vector<2x32xf32>
    %526 = arith.mulf %519, %523 : vector<2x32xf32>
    %527 = arith.addf %525, %526 : vector<2x32xf32>
    %528 = math.tanh %527 : vector<2x32xf32>
    %529 = arith.mulf %521, %528 : vector<2x32xf32>
    %c0_308 = arith.constant 0 : index
    %c0_309 = arith.constant 0 : index
    %530 = vector.load %arg19[%c0_308, %c0_309] : memref<2x32xf32, #tpu.memory_space<vmem>>, vector<2x32xf32>
    tpu.vector_store %arg19[%c0_308, %c0_309], %527 {strides = array<i32>} : memref<2x32xf32, #tpu.memory_space<vmem>>, vector<2x32xf32>,
    %c0_310 = arith.constant 0 : index
    %c0_311 = arith.constant 0 : index
    %531 = vector.load %arg18[%c0_310, %c0_311] : memref<2x32xf32, #tpu.memory_space<vmem>>, vector<2x32xf32>
    tpu.vector_store %arg18[%c0_310, %c0_311], %529 {strides = array<i32>} : memref<2x32xf32, #tpu.memory_space<vmem>>, vector<2x32xf32>,
    %532 = vector.extract_strided_slice %529 {offsets = [0, 0], sizes = [1, 32], strides = [1, 1]} : vector<2x32xf32> to vector<1x32xf32>
    %c0_i32_312 = arith.constant 0 : i32
    %533 = arith.addi %c0_i32_312, %c7_i32_297 : i32
    %534 = arith.index_cast %533 : i32 to index
    %c0_313 = arith.constant 0 : index
    %535 = vector.load %arg17[%534, %c0_313] : memref<16x32xf32, #tpu.memory_space<vmem>>, vector<1x32xf32>
    tpu.vector_store %arg17[%534, %c0_313], %532 {strides = array<i32>} : memref<16x32xf32, #tpu.memory_space<vmem>>, vector<1x32xf32>,
    %536 = vector.extract_strided_slice %529 {offsets = [1, 0], sizes = [1, 32], strides = [1, 1]} : vector<2x32xf32> to vector<1x32xf32>
    %c8_i32_314 = arith.constant 8 : i32
    %537 = arith.addi %c8_i32_314, %c7_i32_297 : i32
    %538 = arith.index_cast %537 : i32 to index
    %c0_315 = arith.constant 0 : index
    %539 = vector.load %arg17[%538, %c0_315] : memref<16x32xf32, #tpu.memory_space<vmem>>, vector<1x32xf32>
    tpu.vector_store %arg17[%538, %c0_315], %536 {strides = array<i32>} : memref<16x32xf32, #tpu.memory_space<vmem>>, vector<1x32xf32>,
    %c8_i32_316 = arith.constant 8 : i32
    %c0_317 = arith.constant 0 : index
    %c0_318 = arith.constant 0 : index
    %540 = vector.load %arg18[%c0_317, %c0_318] : memref<2x32xf32, #tpu.memory_space<vmem>>, vector<2x32xf32>
    %c2 = arith.constant 2 : index
    %c0_319 = arith.constant 0 : index
    %541 = vector.load %arg20[%c2, %c0_319] : memref<4x32xf32, #tpu.memory_space<vmem>>, vector<2x32xf32>
    tpu.vector_store %arg20[%c2, %c0_319], %540 {strides = array<i32>} : memref<4x32xf32, #tpu.memory_space<vmem>>, vector<2x32xf32>,
    %c0_320 = arith.constant 0 : index
    %c0_321 = arith.constant 0 : index
    %542 = vector.load %arg20[%c0_320, %c0_321] : memref<4x32xf32, #tpu.memory_space<vmem>>, vector<4x32xf32>
    %c0_322 = arith.constant 0 : index
    %c0_323 = arith.constant 0 : index
    %543 = vector.load %arg7[%c0_322, %c0_323] : memref<32x32xf32, #tpu.memory_space<vmem>>, vector<32x32xf32>
    %cst_324 = arith.constant dense<0.000000e+00> : vector<4x32xf32>
    %544 = tpu.matmul %542, %543, %cst_324 {dimension_numbers = #tpu.dot_dimension_numbers<[1], [0], [0], [1], [0, 0, 1, 1], [], []>} : vector<4x32xf32>, vector<32x32xf32>, vector<4x32xf32> -> vector<4x32xf32>
    %c0_325 = arith.constant 0 : index
    %c0_326 = arith.constant 0 : index
    %545 = vector.load %arg8[%c0_325, %c0_326] : memref<1x32xf32, #tpu.memory_space<vmem>>, vector<1x32xf32>
    %546 = vector.broadcast %545 : vector<1x32xf32> to vector<4x32xf32>
    %547 = arith.addf %544, %546 : vector<4x32xf32>
    %548 = vector.shape_cast %547 : vector<4x32xf32> to vector<2x2x32xf32>
    %c0_327 = arith.constant 0 : index
    %c0_328 = arith.constant 0 : index
    %549 = vector.load %arg17[%c0_327, %c0_328] : memref<16x32xf32, #tpu.memory_space<vmem>>, vector<16x32xf32>
    %c0_329 = arith.constant 0 : index
    %c0_330 = arith.constant 0 : index
    %550 = vector.load %arg9[%c0_329, %c0_330] : memref<32x32xf32, #tpu.memory_space<vmem>>, vector<32x32xf32>
    %cst_331 = arith.constant dense<0.000000e+00> : vector<16x32xf32>
    %551 = tpu.matmul %549, %550, %cst_331 {dimension_numbers = #tpu.dot_dimension_numbers<[1], [0], [0], [1], [0, 0, 1, 1], [], []>} : vector<16x32xf32>, vector<32x32xf32>, vector<16x32xf32> -> vector<16x32xf32>
    %c0_332 = arith.constant 0 : index
    %c0_333 = arith.constant 0 : index
    %552 = vector.load %arg10[%c0_332, %c0_333] : memref<1x32xf32, #tpu.memory_space<vmem>>, vector<1x32xf32>
    %553 = vector.broadcast %552 : vector<1x32xf32> to vector<16x32xf32>
    %554 = arith.addf %551, %553 : vector<16x32xf32>
    %c0_334 = arith.constant 0 : index
    %c0_335 = arith.constant 0 : index
    %555 = vector.load %arg11[%c0_334, %c0_335] : memref<32x32xf32, #tpu.memory_space<vmem>>, vector<32x32xf32>
    %cst_336 = arith.constant dense<0.000000e+00> : vector<16x32xf32>
    %556 = tpu.matmul %549, %555, %cst_336 {dimension_numbers = #tpu.dot_dimension_numbers<[1], [0], [0], [1], [0, 0, 1, 1], [], []>} : vector<16x32xf32>, vector<32x32xf32>, vector<16x32xf32> -> vector<16x32xf32>
    %c0_337 = arith.constant 0 : index
    %c0_338 = arith.constant 0 : index
    %557 = vector.load %arg12[%c0_337, %c0_338] : memref<1x32xf32, #tpu.memory_space<vmem>>, vector<1x32xf32>
    %558 = vector.broadcast %557 : vector<1x32xf32> to vector<16x32xf32>
    %559 = arith.addf %556, %558 : vector<16x32xf32>
    %560 = vector.shape_cast %554 : vector<16x32xf32> to vector<2x8x32xf32>
    %561 = vector.shape_cast %559 : vector<16x32xf32> to vector<2x8x32xf32>
    %562 = vector.extract_strided_slice %548 {offsets = [0, 0, 0], sizes = [2, 2, 8], strides = [1, 1, 1]} : vector<2x2x32xf32> to vector<2x2x8xf32>
    %563 = vector.extract_strided_slice %548 {offsets = [0, 0, 8], sizes = [2, 2, 8], strides = [1, 1, 1]} : vector<2x2x32xf32> to vector<2x2x8xf32>
    %564 = vector.extract_strided_slice %548 {offsets = [0, 0, 16], sizes = [2, 2, 8], strides = [1, 1, 1]} : vector<2x2x32xf32> to vector<2x2x8xf32>
    %565 = vector.extract_strided_slice %548 {offsets = [0, 0, 24], sizes = [2, 2, 8], strides = [1, 1, 1]} : vector<2x2x32xf32> to vector<2x2x8xf32>
    %566 = tpu.concatenate %562, %563, %564, %565 in 0 : vector<2x2x8xf32>, vector<2x2x8xf32>, vector<2x2x8xf32>, vector<2x2x8xf32> -> vector<8x2x8xf32>
    %567 = vector.extract_strided_slice %560 {offsets = [0, 0, 0], sizes = [2, 8, 8], strides = [1, 1, 1]} : vector<2x8x32xf32> to vector<2x8x8xf32>
    %568 = vector.extract_strided_slice %560 {offsets = [0, 0, 8], sizes = [2, 8, 8], strides = [1, 1, 1]} : vector<2x8x32xf32> to vector<2x8x8xf32>
    %569 = vector.extract_strided_slice %560 {offsets = [0, 0, 16], sizes = [2, 8, 8], strides = [1, 1, 1]} : vector<2x8x32xf32> to vector<2x8x8xf32>
    %570 = vector.extract_strided_slice %560 {offsets = [0, 0, 24], sizes = [2, 8, 8], strides = [1, 1, 1]} : vector<2x8x32xf32> to vector<2x8x8xf32>
    %571 = tpu.concatenate %567, %568, %569, %570 in 0 : vector<2x8x8xf32>, vector<2x8x8xf32>, vector<2x8x8xf32>, vector<2x8x8xf32> -> vector<8x8x8xf32>
    %572 = vector.extract_strided_slice %561 {offsets = [0, 0, 0], sizes = [2, 8, 8], strides = [1, 1, 1]} : vector<2x8x32xf32> to vector<2x8x8xf32>
    %573 = vector.extract_strided_slice %561 {offsets = [0, 0, 8], sizes = [2, 8, 8], strides = [1, 1, 1]} : vector<2x8x32xf32> to vector<2x8x8xf32>
    %574 = vector.extract_strided_slice %561 {offsets = [0, 0, 16], sizes = [2, 8, 8], strides = [1, 1, 1]} : vector<2x8x32xf32> to vector<2x8x8xf32>
    %575 = vector.extract_strided_slice %561 {offsets = [0, 0, 24], sizes = [2, 8, 8], strides = [1, 1, 1]} : vector<2x8x32xf32> to vector<2x8x8xf32>
    %576 = tpu.concatenate %572, %573, %574, %575 in 0 : vector<2x8x8xf32>, vector<2x8x8xf32>, vector<2x8x8xf32>, vector<2x8x8xf32> -> vector<8x8x8xf32>
    "tpu.trace_start"() <{level = 10 : i32, message = "gld,gtd->glt"}> : () -> ()
    %cst_339 = arith.constant dense<0.000000e+00> : vector<8x2x8xf32>
    %577 = tpu.matmul %566, %571, %cst_339 {dimension_numbers = #tpu.dot_dimension_numbers<[2], [2], [1], [1], [0, 0, 0, 1, 1, 1], [0], [0]>} : vector<8x2x8xf32>, vector<8x8x8xf32>, vector<8x2x8xf32> -> vector<8x2x8xf32>
    "tpu.trace_stop"() : () -> ()
    %cst_340 = arith.constant 0.353553385 : f32
    %578 = vector.broadcast %cst_340 : f32 to vector<8x2x8xf32>
    %579 = arith.mulf %577, %578 : vector<8x2x8xf32>
    %cst_341 = arith.constant dense<0xFF800000> : vector<8x2xf32>
    %580 = vector.multi_reduction <maximumf>, %579, %cst_341 [2] : vector<8x2x8xf32> to vector<8x2xf32>
    %581 = vector.shape_cast %580 : vector<8x2xf32> to vector<8x2x1xf32>
    %582 = vector.broadcast %581 : vector<8x2x1xf32> to vector<8x2x8xf32>
    %583 = arith.subf %579, %582 : vector<8x2x8xf32>
    %584 = math.exp %583 : vector<8x2x8xf32>
    %cst_342 = arith.constant dense<0.000000e+00> : vector<8x2xf32>
    %585 = vector.multi_reduction <add>, %584, %cst_342 [2] : vector<8x2x8xf32> to vector<8x2xf32>
    %586 = vector.shape_cast %585 : vector<8x2xf32> to vector<8x2x1xf32>
    %587 = tpu.reciprocal %586 : vector<8x2x1xf32> -> vector<8x2x1xf32>
    %588 = vector.broadcast %587 : vector<8x2x1xf32> to vector<8x2x8xf32>
    %589 = arith.mulf %584, %588 : vector<8x2x8xf32>
    %c0_343 = arith.constant 0 : index
    %c0_344 = arith.constant 0 : index
    %c0_345 = arith.constant 0 : index
    %590 = vector.load %arg14[%c0_343, %c0_344, %c0_345] : memref<8x2x8xf32, #tpu.memory_space<vmem>>, vector<8x2x8xf32>
    tpu.vector_store %arg14[%c0_343, %c0_344, %c0_345], %589 {strides = array<i32>} : memref<8x2x8xf32, #tpu.memory_space<vmem>>, vector<8x2x8xf32>,
    "tpu.trace_start"() <{level = 10 : i32, message = "glt,gtd->gld"}> : () -> ()
    %cst_346 = arith.constant dense<0.000000e+00> : vector<8x2x8xf32>
    %591 = tpu.matmul %589, %576, %cst_346 {dimension_numbers = #tpu.dot_dimension_numbers<[2], [1], [1], [2], [0, 0, 0, 1, 1, 2], [0], [0]>} : vector<8x2x8xf32>, vector<8x8x8xf32>, vector<8x2x8xf32> -> vector<8x2x8xf32>
    "tpu.trace_stop"() : () -> ()
    %592 = vector.extract_strided_slice %591 {offsets = [0, 0, 0], sizes = [2, 2, 8], strides = [1, 1, 1]} : vector<8x2x8xf32> to vector<2x2x8xf32>
    %593 = vector.extract_strided_slice %591 {offsets = [2, 0, 0], sizes = [2, 2, 8], strides = [1, 1, 1]} : vector<8x2x8xf32> to vector<2x2x8xf32>
    %594 = vector.extract_strided_slice %591 {offsets = [4, 0, 0], sizes = [2, 2, 8], strides = [1, 1, 1]} : vector<8x2x8xf32> to vector<2x2x8xf32>
    %595 = vector.extract_strided_slice %591 {offsets = [6, 0, 0], sizes = [2, 2, 8], strides = [1, 1, 1]} : vector<8x2x8xf32> to vector<2x2x8xf32>
    %596 = tpu.concatenate %592, %593, %594, %595 in 2 : vector<2x2x8xf32>, vector<2x2x8xf32>, vector<2x2x8xf32>, vector<2x2x8xf32> -> vector<2x2x32xf32>
    %c0_347 = arith.constant 0 : index
    %c0_348 = arith.constant 0 : index
    %c0_349 = arith.constant 0 : index
    %597 = vector.load %arg13[%c0_347, %c0_348, %c0_349] : memref<2x2x32xf32, #tpu.memory_space<vmem>>, vector<2x2x32xf32>
    tpu.vector_store %arg13[%c0_347, %c0_348, %c0_349], %596 {strides = array<i32>} : memref<2x2x32xf32, #tpu.memory_space<vmem>>, vector<2x2x32xf32>,
    return
  }
}

</mosaic_0001>

<bundles_post_ra>
// kernel: lstm_attention_forward.1
= control target key start
LH: loop header
LB: loop body
LE: loop exit
PB: predicated region body
PF: predicated region fallthrough
CT: control target
= control target key end

     0   :  { %v77_v3 = vlaneseq  ;;  %v4759_v7 = vmov 1983009808   ;;  %v4760_v20 = vmov 0.0   ;;  %vm238_vm0 = vcmask 254976   ;;  %s5530_s0 = inlined_call_operand.vmem [shape: f32[8,2,16], index: 0, kind: input, shape index: {}]   ;;  %s5531_s1 = inlined_call_operand.vmem [shape: f32[16,128], index: 1, kind: input, shape index: {}]   ;;  %s5532_s2 = inlined_call_operand.vmem [shape: f32[32,128], index: 2, kind: input, shape index: {}]   ;;  %s5533_s3 = inlined_call_operand.vmem [shape: f32[1,128], index: 3, kind: input, shape index: {}]   ;;  %s5534_s4 = inlined_call_operand.vmem [shape: f32[32,128], index: 4, kind: input, shape index: {}]   ;;  %s5535_s5 = inlined_call_operand.vmem [shape: f32[32,128], index: 5, kind: input, shape index: {}]   ;;  %s5536_s6 = inlined_call_operand.vmem [shape: f32[1,128], index: 6, kind: input, shape index: {}]   ;;  %s5537_s7 = inlined_call_operand.vmem [shape: f32[32,32], index: 7, kind: input, shape index: {}]   ;;  %s5538_s8 = inlined_call_operand.vmem [shape: f32[1,32], index: 8, kind: input, shape index: {}]   ;;  %s5539_s9 = inlined_call_operand.vmem [shape: f32[32,32], index: 9, kind: input, shape index: {}]   ;;  %s5540_s10 = inlined_call_operand.vmem [shape: f32[1,32], index: 10, kind: input, shape index: {}]   ;;  %s5541_s11 = inlined_call_operand.vmem [shape: f32[32,32], index: 11, kind: input, shape index: {}]   ;;  %s5542_s12 = inlined_call_operand.vmem [shape: f32[1,32], index: 12, kind: input, shape index: {}]   ;;  %s5543_s13 = inlined_call_operand.hbm [shape: f32[2,2,32], index: 13, kind: output, shape index: {0}]   ;;  %s5544_s14 = inlined_call_operand.vmem [shape: f32[8,2,8], index: 14, kind: output, shape index: {1}]  }
   0x1   :  { %v56_v0 = vld [vmem:[%s5531_s1 + $0x8] sm:$0xff]  ;;  %v55_v1 = vld [vmem:[%s5531_s1] sm:$0xff]  ;;  %v75_v8 = vunpack.c.l.s4 %v4759_v7  ;;  %v4881_v18 = vld [vmem:[%s5532_s2 + $0x18] sm:$0xff]  ;;  %4263 = vmatprep.subr.mxu1 %v4760_v20  ;;  %vm4761_vm1 = vmmov 0   ;;  %239 = vst.msk [vmem:[#allocation5] sm:$0x3] %vm238_vm0, %v4760_v20 }
   0x2   :  { %v47_v2 = vld [vmem:[%s5530_s0] sm:$0x3]  ;;  %4256 = vmatprep.subr.mxu0 %v56_v0  ;;  %v48_v4 = vld [vmem:[%s5530_s0 + $0x2] sm:$0x3]  ;;  %v49_v5 = vld [vmem:[%s5530_s0 + $0x4] sm:$0x3]  ;;  %4264 = vmatpush3.msra.mxu1 %v4881_v18 }
   0x3   :  { %v50_v6 = vld [vmem:[%s5530_s0 + $0x6] sm:$0x3]  ;;  %4257 = vmatpush3.msra.mxu0 %v56_v0  ;;  %v72_v9 = vcombine.low %v47_v2, %v48_v4  ;;  %v78_v10 = vshrl.u32 %v77_v3, 7  ;;  %v51_v11 = vld [vmem:[%s5530_s0 + $0x8] sm:$0x3]  ;;  %v76_v14 = vunpack.c.0.s8 %v75_v8  ;;  %v4887_v21 = vld [vmem:[%s5532_s2 + $0x10] sm:$0xff]  ;;  %4271 = vmatprep.mubr.msk.f32.mxu1 %vm4761_vm1, %v4760_v20 }
   0x4   :  { %v52_v12 = vld [vmem:[%s5530_s0 + $0xa] sm:$0x3]  ;;  %4258 = vmatprep.subr.mxu0 %v55_v1  ;;  %v73_v13 = vcombine.low %v49_v5, %v50_v6  ;;  %v53_v15 = vld [vmem:[%s5530_s0 + $0xc] sm:$0x3]  ;;  %v54_v16 = vld [vmem:[%s5530_s0 + $0xe] sm:$0x3] }
   0x5   :  { %v89_v17 = vcombine.low %v51_v11, %v52_v12  ;;  %4259 = vmatpush3.msra.mxu0 %v55_v1  ;;  %v90_v19 = vcombine.low %v53_v15, %v54_v16  ;;  %v4889_v22 = vsub.s32 %v76_v14, %v78_v10  ;;  %240 = vst.msk [vmem:[#allocation6] sm:$0x3] %vm238_vm0, %v4760_v20 }
   0x6   :  { %20 = vsyncpa [#allocation9], 0  ;;  %4265 = vmatprep.subr.mxu1 %v4760_v20  ;;  %v4902_v23 = vld [vmem:[%s5532_s2 + $0x8] sm:$0xff]  ;;  %4274 = vmatprep.subr.mxu0 %v4760_v20  ;;  %vm106_vm2 = vcmask 130048   ;;  %v4914_v28 = vld [vmem:[%s5532_s2] sm:$0xff]  ;;  %vm247_vm3 = vcmask 261120  }
   0x7   :  { %v80_v24 = vrot.slane %v72_v9, %v4889_v22  ;;  %v87_v25 = vrot.slane %v73_v13, %v4889_v22  ;;  %v97_v26 = vrot.slane %v89_v17, %v4889_v22  ;;  %v104_v27 = vrot.slane %v90_v19, %v4889_v22  ;;  %4266 = vmatpush3.msra.mxu1 %v4887_v21  ;;  %v4039_v32 = vld [vmem:[%s5533_s3] ss:$0 sm:$0xff]  ;;  %s4762_s3 = smov 32   ;;  %s4763_s24 = smov 96  }
   0x8   :  { %4267 = vmatprep.subr.mxu1 %v4760_v20  ;;  %v242_v31 = vld [vmem:[#allocation5] sm:$0x3]  ;;  %s4764_s1 = smov 64   ;;  %vm1531_vm4 = vcmask 253952   ;;  %vm1533_vm5 = vcmask 254977   ;;  %vm2704_vm6 = vcmask 64512  }
   0x9   :  { %v88_v29 = vcombine.low %v80_v24, %v87_v25  ;;  %v105_v30 = vcombine.low %v97_v26, %v104_v27  ;;  %4268 = vmatpush3.msra.mxu1 %v4902_v23  ;;  %s4767_s28 = smov 104   ;;  %vm3305_vm7 = vcmask 58368   ;;  %s4768_s2 = smov 8   ;;  %vm4014_vm8 = vcmask 195584  }
   0xa   :  { %4269 = vmatprep.subr.mxu1 %v4760_v20  ;;  %s4771_s23 = smov [#allocation8]  }
   0xb   :  { %4260 = vmatprep.mubr.msk.f32.mxu0 %vm106_vm2, %v88_v29  ;;  %4270 = vmatpush3.msra.mxu1 %v4914_v28  ;;  %s4024_s25 = sshll.u32 %s4771_s23, 4  ;;  %s4025_s25 = int_to_ptr.vmem [resolvable:$true] %s4024_s25 }
   0xc   :  { %4261 = vmatmul.mubr.msk.f32.vlgmr.msra.gmra.mxu0 %vm106_vm2, %v105_v30  ;;  %4285 = vmatprep.subr.mxu1 %v4760_v20  ;;  %v329_v52 = vld [vmem:[#allocation6] sm:$0x3]  ;;  %p4742_p1 = scmp.lt.s32.totalorder %s4025_s25, %s4025_s25 }
   0xd   :  { %4272 = vmatmul.mubr.msk.f32.vlgmr.msra.gmra.mxu1 %vm247_vm3, %v242_v31  ;;  %4275 = vmatpush3.msra.mxu0 %v4881_v18 }
   0xe   :  { %4276 = vmatprep.subr.mxu0 %v4760_v20  ;;  %4282 = vmatprep.mubr.msk.f32.mxu0 %vm4761_vm1, %v4760_v20 }
   0xf   :  { %4277 = vmatpush3.msra.mxu0 %v4887_v21  ;;  %4286 = vmatpush3.msra.mxu1 %v4881_v18 }
  0x10   :  { %4278 = vmatprep.subr.mxu0 %v4760_v20  ;;  %4287 = vmatprep.subr.mxu1 %v4760_v20 }
  0x11   :  { %4279 = vmatpush3.msra.mxu0 %v4902_v23  ;;  %4288 = vmatpush3.msra.mxu1 %v4887_v21 }
  0x12   :  { %4280 = vmatprep.subr.mxu0 %v4760_v20  ;;  %4289 = vmatprep.subr.mxu1 %v4760_v20 }
  0x13   :  { %4281 = vmatpush3.msra.mxu0 %v4914_v28  ;;  %4290 = vmatpush3.msra.mxu1 %v4902_v23 }
  0x14   :  { %4291 = vmatprep.subr.mxu1 %v4760_v20  ;;  %4293 = vmatprep.mubr.msk.f32.mxu1 %vm4761_vm1, %v4760_v20 }
  0x15   :  { %4292 = vmatpush3.msra.mxu1 %v4914_v28  ;;  %4296 = vmatprep.subr.mxu0 %v4760_v20 }
  0x16   :  { %4307 = vmatprep.subr.mxu1 %v4760_v20 }
  0xcc   :  { %v4262_v33 = vpop.f32.mrf.mxu0 }
  0xcd   :  { %v183_v34 = vadd.f32 %v4262_v33, %v4039_v32  ;;  %v317_v35 = vpop.f32.mrf.mxu1 }
  0xce   :  { %v177_v36 = vpop.f32.mrf.mxu0 }
  0xcf   :  { %v205_v37 = vcombine.high %v183_v34, %v183_v34  ;;  %v212_v38 = vrot.slane %v183_v34, %v4889_v22  ;;  %4044 = vst.sshfl [vmem:[#allocation2 + $0x8] sm:$0x3 pattern:$0x76325410] %v183_v34  ;;  %v178_v39 = vadd.f32 %v4039_v32, %v177_v36  ;;  %v4273_v40 = vpop.f32.mrf.mxu1 }
  0xd1   :  { %v219_v41 = vrot.slane %v205_v37, %v4889_v22  ;;  %v220_v42 = vcombine.high %v212_v38, %v212_v38  ;;  %4045 = vst.sshfl [vmem:[#allocation2 + $0xc] sm:$0x3 pattern:$0x76325410] %v205_v37  ;;  %v188_v43 = vcombine.high %v178_v39, %v178_v39  ;;  %v195_v44 = vrot.slane %v178_v39, %v4889_v22 }
  0xd2   :  { %4042 = vst.sshfl [vmem:[#allocation2] sm:$0x3 pattern:$0x76325410] %v178_v39 }
  0xd3   :  { %v221_v45 = vcombine.high %v219_v41, %v219_v41  ;;  %235 = vst [vmem:[#allocation2 + $0xa] sm:$0x3] %v220_v42  ;;  %v202_v46 = vrot.slane %v188_v43, %v4889_v22  ;;  %v203_v47 = vcombine.high %v195_v44, %v195_v44  ;;  %4043 = vst.sshfl [vmem:[#allocation2 + $0x4] sm:$0x3 pattern:$0x76325410] %v188_v43 }
  0xd5   :  { %237 = vst [vmem:[#allocation2 + $0xe] sm:$0x3] %v221_v45  ;;  %v204_v48 = vcombine.high %v202_v46, %v202_v46  ;;  %231 = vst [vmem:[#allocation2 + $0x2] sm:$0x3] %v203_v47 }
  0xd7   :  { %233 = vst [vmem:[#allocation2 + $0x6] sm:$0x3] %v204_v48 }
  0xd9   :  { %v241_v49 = vld [vmem:[#allocation2] sm:$0x3] }
  0xda   :  { %v321_v50 = vadd.f32 %v317_v35, %v241_v49  ;;  %v485_v34 = vld [vmem:[#allocation2 + $0x4] sm:$0x3] }
  0xdc   :  { %4577 = vtanh.f32 %v321_v50  ;;  %v4047_v53 = vmul.f32 -1.442695, %v321_v50  ;;  %v363_v6 = vld [vmem:[#allocation2 + $0x2] sm:$0x3] }
  0xde   :  { %4579 = vpow2.f32 %v4047_v53 }
  0xe9   :  { %v4578_v51 = vpop.eup %4577 }
  0xea   :  { %336 = vrot.lane.b32.xlu0 %v4578_v51, %s4762_s3 }
  0xeb   :  { %v4580_v54 = vpop.eup %4579 }
  0xec   :  { %v325_v55 = vadd.f32 1.0, %v4580_v54 }
  0xee   :  { %331 = vrot.lane.b32.xlu0 %v329_v52, %s4762_s3  ;;  %4581 = vrcp.f32 %v325_v55 }
  0xfb   :  { %v4582_v56 = vpop.eup %4581 }
 0x15c   :  { %v337_v57 = vpop.permute.xlu0 %336 }
 0x15d   :  { %v339_v58 = vmul.f32 %v4582_v56, %v337_v57 }
 0x15f   :  { %341 = vrot.lane.b32.xlu1 %v339_v58, %s4762_s3 }
 0x160   :  { %v332_v59 = vpop.permute.xlu0 %331 }
 0x161   :  { %v334_v60 = vmul.f32 %v4582_v56, %v332_v59 }
 0x1d1   :  { %v342_v61 = vpop.permute.xlu1 %341 }
 0x1d2   :  { %v344_v62 = vadd.f32 %v342_v61, %v334_v60 }
 0x1d4   :  { %4583 = vtanh.f32 %v344_v62 }
 0x1e1   :  { %v4584_v63 = vpop.eup %4583 }
 0x1e2   :  { %347 = vrot.lane.b32.xlu1 %v4584_v63, %s4762_s3 }
 0x1e6   :  { %352 = vrot.lane.b32.xlu1 %v344_v62, %s4763_s24 }
 0x254   :  { %v348_v0 = vpop.permute.xlu1 %347 }
 0x255   :  { %v350_v1 = vmul.f32 %v4582_v56, %v348_v0  ;;  %v607_v56 = vld [vmem:[#allocation2 + $0x6] sm:$0x3] }
 0x257   :  { %357 = vrot.lane.b32.xlu0 %v350_v1, %s4764_s1 }
 0x258   :  { %v353_v2 = vpop.permute.xlu1 %352 }
 0x259   :  { %355 = vst.msk [vmem:[#allocation6] sm:$0x3] %vm238_vm0, %v353_v2 }
 0x260   :  { %v450_v3 = vld [vmem:[#allocation6] sm:$0x3] }
 0x261   :  { %452 = vrot.lane.b32.xlu1 %v450_v3, %s4762_s3 }
 0x2c9   :  { %v358_v4 = vpop.permute.xlu0 %357 }
 0x2ca   :  { %360 = vst.msk [vmem:[#allocation5] sm:$0x3] %vm238_vm0, %v358_v4  ;;  %361 = vst.msk [vmem:[#allocation3] sm:$0x3] %vm238_vm0, %v358_v4 }
 0x2d1   :  { %v364_v5 = vld [vmem:[#allocation5] sm:$0x3] }
 0x2d2   :  { %4283 = vmatmul.mubr.msk.f32.vlgmr.msra.gmra.mxu0 %vm247_vm3, %v364_v5 }
 0x2d3   :  { %4297 = vmatpush3.msra.mxu0 %v4881_v18  ;;  %4304 = vmatprep.mubr.msk.f32.mxu0 %vm4761_vm1, %v4760_v20  ;;  %v453_v17 = vpop.permute.xlu1 %452 }
 0x2d4   :  { %4298 = vmatprep.subr.mxu0 %v4760_v20 }
 0x2d5   :  { %4299 = vmatpush3.msra.mxu0 %v4887_v21 }
 0x2d6   :  { %4300 = vmatprep.subr.mxu0 %v4760_v20 }
 0x2d7   :  { %4301 = vmatpush3.msra.mxu0 %v4902_v23 }
 0x2d8   :  { %4302 = vmatprep.subr.mxu0 %v4760_v20 }
 0x2d9   :  { %4303 = vmatpush3.msra.mxu0 %v4914_v28 }
 0x2da   :  { %4318 = vmatprep.subr.mxu0 %v4760_v20 }
 0x392   :  { %v438_v7 = vpop.f32.mrf.mxu0 }
 0x393   :  { %v442_v8 = vadd.f32 %v438_v7, %v363_v6 }
 0x394   :  { %v4284_v9 = vpop.f32.mrf.mxu0 }
 0x395   :  { %4585 = vtanh.f32 %v442_v8  ;;  %v4049_v11 = vmul.f32 -1.442695, %v442_v8 }
 0x397   :  { %4587 = vpow2.f32 %v4049_v11 }
 0x3a2   :  { %v4586_v10 = vpop.eup %4585 }
 0x3a3   :  { %457 = vrot.lane.b32.xlu0 %v4586_v10, %s4762_s3 }
 0x3a4   :  { %v4588_v12 = vpop.eup %4587 }
 0x3a5   :  { %v446_v13 = vadd.f32 1.0, %v4588_v12 }
 0x3a7   :  { %4589 = vrcp.f32 %v446_v13 }
 0x3b4   :  { %v4590_v14 = vpop.eup %4589 }
 0x3b5   :  { %v455_v19 = vmul.f32 %v4590_v14, %v453_v17 }
 0x415   :  { %v458_v15 = vpop.permute.xlu0 %457 }
 0x416   :  { %v460_v16 = vmul.f32 %v4590_v14, %v458_v15 }
 0x418   :  { %462 = vrot.lane.b32.xlu0 %v460_v16, %s4762_s3 }
 0x48a   :  { %v463_v24 = vpop.permute.xlu0 %462 }
 0x48b   :  { %v465_v25 = vadd.f32 %v463_v24, %v455_v19 }
 0x48d   :  { %4591 = vtanh.f32 %v465_v25 }
 0x49a   :  { %v4592_v26 = vpop.eup %4591 }
 0x49b   :  { %468 = vrot.lane.b32.xlu1 %v4592_v26, %s4762_s3 }
 0x49f   :  { %473 = vrot.lane.b32.xlu1 %v465_v25, %s4763_s24 }
 0x50d   :  { %v469_v27 = vpop.permute.xlu1 %468 }
 0x50e   :  { %v471_v29 = vmul.f32 %v4590_v14, %v469_v27  ;;  %v729_v14 = vld [vmem:[#allocation2 + $0x8] sm:$0x3] }
 0x510   :  { %478 = vrot.lane.b32.xlu0 %v471_v29, %s4764_s1 }
 0x511   :  { %v474_v30 = vpop.permute.xlu1 %473 }
 0x512   :  { %476 = vst.msk [vmem:[#allocation6] sm:$0x3] %vm238_vm0, %v474_v30 }
 0x519   :  { %v572_v31 = vld [vmem:[#allocation6] sm:$0x3] }
 0x51a   :  { %574 = vrot.lane.b32.xlu1 %v572_v31, %s4762_s3 }
 0x582   :  { %v479_v32 = vpop.permute.xlu0 %478 }
 0x583   :  { %481 = vst.msk [vmem:[#allocation5] sm:$0x3] %vm238_vm0, %v479_v32  ;;  %483 = vst.msk [vmem:[#allocation3 + $0x2] sm:$0x3] %vm238_vm0, %v479_v32 }
 0x58a   :  { %v486_v33 = vld [vmem:[#allocation5] sm:$0x3] }
 0x58b   :  { %4294 = vmatmul.mubr.msk.f32.vlgmr.msra.gmra.mxu1 %vm247_vm3, %v486_v33 }
 0x58c   :  { %4308 = vmatpush3.msra.mxu1 %v4881_v18  ;;  %4315 = vmatprep.mubr.msk.f32.mxu1 %vm4761_vm1, %v4760_v20  ;;  %v575_v45 = vpop.permute.xlu1 %574 }
 0x58d   :  { %4309 = vmatprep.subr.mxu1 %v4760_v20 }
 0x58e   :  { %4310 = vmatpush3.msra.mxu1 %v4887_v21 }
 0x58f   :  { %4311 = vmatprep.subr.mxu1 %v4760_v20 }
 0x590   :  { %4312 = vmatpush3.msra.mxu1 %v4902_v23 }
 0x591   :  { %4313 = vmatprep.subr.mxu1 %v4760_v20 }
 0x592   :  { %4314 = vmatpush3.msra.mxu1 %v4914_v28 }
 0x593   :  { %4329 = vmatprep.subr.mxu1 %v4760_v20 }
 0x64b   :  { %v560_v35 = vpop.f32.mrf.mxu1 }
 0x64c   :  { %v564_v36 = vadd.f32 %v560_v35, %v485_v34 }
 0x64d   :  { %v4295_v37 = vpop.f32.mrf.mxu1 }
 0x64e   :  { %4593 = vtanh.f32 %v564_v36  ;;  %v4051_v39 = vmul.f32 -1.442695, %v564_v36 }
 0x650   :  { %4595 = vpow2.f32 %v4051_v39 }
 0x65b   :  { %v4594_v38 = vpop.eup %4593 }
 0x65c   :  { %579 = vrot.lane.b32.xlu0 %v4594_v38, %s4762_s3 }
 0x65d   :  { %v4596_v40 = vpop.eup %4595 }
 0x65e   :  { %v568_v41 = vadd.f32 1.0, %v4596_v40 }
 0x660   :  { %4597 = vrcp.f32 %v568_v41 }
 0x66d   :  { %v4598_v42 = vpop.eup %4597 }
 0x66e   :  { %v577_v46 = vmul.f32 %v4598_v42, %v575_v45 }
 0x6ce   :  { %v580_v43 = vpop.permute.xlu0 %579 }
 0x6cf   :  { %v582_v44 = vmul.f32 %v4598_v42, %v580_v43 }
 0x6d1   :  { %584 = vrot.lane.b32.xlu0 %v582_v44, %s4762_s3 }
 0x743   :  { %v585_v47 = vpop.permute.xlu0 %584 }
 0x744   :  { %v587_v48 = vadd.f32 %v585_v47, %v577_v46 }
 0x746   :  { %4599 = vtanh.f32 %v587_v48 }
 0x753   :  { %v4600_v49 = vpop.eup %4599 }
 0x754   :  { %590 = vrot.lane.b32.xlu1 %v4600_v49, %s4762_s3 }
 0x758   :  { %595 = vrot.lane.b32.xlu1 %v587_v48, %s4763_s24 }
 0x7c6   :  { %v591_v50 = vpop.permute.xlu1 %590 }
 0x7c7   :  { %v593_v51 = vmul.f32 %v4598_v42, %v591_v50  ;;  %v851_v42 = vld [vmem:[#allocation2 + $0xa] sm:$0x3] }
 0x7c9   :  { %600 = vrot.lane.b32.xlu0 %v593_v51, %s4764_s1 }
 0x7ca   :  { %v596_v52 = vpop.permute.xlu1 %595 }
 0x7cb   :  { %598 = vst.msk [vmem:[#allocation6] sm:$0x3] %vm238_vm0, %v596_v52 }
 0x7d2   :  { %v694_v53 = vld [vmem:[#allocation6] sm:$0x3] }
 0x7d3   :  { %696 = vrot.lane.b32.xlu1 %v694_v53, %s4762_s3 }
 0x83b   :  { %v601_v54 = vpop.permute.xlu0 %600 }
 0x83c   :  { %603 = vst.msk [vmem:[#allocation5] sm:$0x3] %vm238_vm0, %v601_v54  ;;  %605 = vst.msk [vmem:[#allocation3 + $0x4] sm:$0x3] %vm238_vm0, %v601_v54 }
 0x843   :  { %v608_v55 = vld [vmem:[#allocation5] sm:$0x3] }
 0x844   :  { %4305 = vmatmul.mubr.msk.f32.vlgmr.msra.gmra.mxu0 %vm247_vm3, %v608_v55 }
 0x845   :  { %4319 = vmatpush3.msra.mxu0 %v4881_v18  ;;  %4326 = vmatprep.mubr.msk.f32.mxu0 %vm4761_vm1, %v4760_v20  ;;  %v697_v3 = vpop.permute.xlu1 %696 }
 0x846   :  { %4320 = vmatprep.subr.mxu0 %v4760_v20 }
 0x847   :  { %4321 = vmatpush3.msra.mxu0 %v4887_v21 }
 0x848   :  { %4322 = vmatprep.subr.mxu0 %v4760_v20 }
 0x849   :  { %4323 = vmatpush3.msra.mxu0 %v4902_v23 }
 0x84a   :  { %4324 = vmatprep.subr.mxu0 %v4760_v20 }
 0x84b   :  { %4325 = vmatpush3.msra.mxu0 %v4914_v28 }
 0x84c   :  { %4340 = vmatprep.subr.mxu0 %v4760_v20 }
 0x904   :  { %v682_v57 = vpop.f32.mrf.mxu0 }
 0x905   :  { %v686_v58 = vadd.f32 %v682_v57, %v607_v56 }
 0x906   :  { %v4306_v59 = vpop.f32.mrf.mxu0 }
 0x907   :  { %4601 = vtanh.f32 %v686_v58  ;;  %v4053_v61 = vmul.f32 -1.442695, %v686_v58  ;;  %v1219_v59 = vld [vmem:[#allocation3 + $0x2] sm:$0x3] }
 0x909   :  { %4603 = vpow2.f32 %v4053_v61 }
 0x914   :  { %v4602_v60 = vpop.eup %4601 }
 0x915   :  { %701 = vrot.lane.b32.xlu0 %v4602_v60, %s4762_s3  ;;  %v1220_v60 = vld [vmem:[#allocation3 + $0x4] sm:$0x3] }
 0x916   :  { %v4604_v62 = vpop.eup %4603 }
 0x917   :  { %v690_v63 = vadd.f32 1.0, %v4604_v62 }
 0x919   :  { %4605 = vrcp.f32 %v690_v63  ;;  %v1218_v63 = vld [vmem:[#allocation3] sm:$0x3] }
 0x926   :  { %v4606_v0 = vpop.eup %4605 }
 0x927   :  { %v699_v4 = vmul.f32 %v4606_v0, %v697_v3 }
 0x987   :  { %v702_v1 = vpop.permute.xlu0 %701 }
 0x988   :  { %v704_v2 = vmul.f32 %v4606_v0, %v702_v1 }
 0x98a   :  { %706 = vrot.lane.b32.xlu0 %v704_v2, %s4762_s3 }
 0x9fc   :  { %v707_v5 = vpop.permute.xlu0 %706 }
 0x9fd   :  { %v709_v6 = vadd.f32 %v707_v5, %v699_v4  ;;  %v973_v5 = vld [vmem:[#allocation2 + $0xc] sm:$0x3] }
 0x9ff   :  { %4607 = vtanh.f32 %v709_v6 }
 0xa0c   :  { %v4608_v7 = vpop.eup %4607 }
 0xa0d   :  { %712 = vrot.lane.b32.xlu1 %v4608_v7, %s4762_s3 }
 0xa11   :  { %717 = vrot.lane.b32.xlu1 %v709_v6, %s4763_s24 }
 0xa7f   :  { %v713_v8 = vpop.permute.xlu1 %712 }
 0xa80   :  { %v715_v9 = vmul.f32 %v4606_v0, %v713_v8  ;;  %v1245_v0 = vcombine.low %v1218_v63, %v1219_v59 }
 0xa82   :  { %722 = vrot.lane.b32.xlu0 %v715_v9, %s4764_s1  ;;  %v1253_v2 = vrot.slane %v1245_v0, %v4889_v22 }
 0xa83   :  { %v718_v10 = vpop.permute.xlu1 %717 }
 0xa84   :  { %720 = vst.msk [vmem:[#allocation6] sm:$0x3] %vm238_vm0, %v718_v10 }
 0xa8b   :  { %v816_v11 = vld [vmem:[#allocation6] sm:$0x3] }
 0xa8c   :  { %818 = vrot.lane.b32.xlu1 %v816_v11, %s4762_s3 }
 0xaf4   :  { %v723_v12 = vpop.permute.xlu0 %722 }
 0xaf5   :  { %725 = vst.msk [vmem:[#allocation5] sm:$0x3] %vm238_vm0, %v723_v12  ;;  %727 = vst.msk [vmem:[#allocation3 + $0x6] sm:$0x3] %vm238_vm0, %v723_v12 }
 0xafc   :  { %v730_v13 = vld [vmem:[#allocation5] sm:$0x3]  ;;  %v1221_v58 = vld [vmem:[#allocation3 + $0x6] sm:$0x3] }
 0xafd   :  { %4316 = vmatmul.mubr.msk.f32.vlgmr.msra.gmra.mxu1 %vm247_vm3, %v730_v13  ;;  %v1246_v62 = vcombine.low %v1220_v60, %v1221_v58 }
 0xafe   :  { %4330 = vmatpush3.msra.mxu1 %v4881_v18  ;;  %4337 = vmatprep.mubr.msk.f32.mxu1 %vm4761_vm1, %v4760_v20  ;;  %v819_v31 = vpop.permute.xlu1 %818 }
 0xaff   :  { %4331 = vmatprep.subr.mxu1 %v4760_v20  ;;  %v1260_v1 = vrot.slane %v1246_v62, %v4889_v22 }
 0xb00   :  { %4332 = vmatpush3.msra.mxu1 %v4887_v21 }
 0xb01   :  { %4333 = vmatprep.subr.mxu1 %v4760_v20  ;;  %v1261_v4 = vcombine.low %v1253_v2, %v1260_v1 }
 0xb02   :  { %4334 = vmatpush3.msra.mxu1 %v4902_v23 }
 0xb03   :  { %4335 = vmatprep.subr.mxu1 %v4760_v20 }
 0xb04   :  { %4336 = vmatpush3.msra.mxu1 %v4914_v28 }
 0xbbd   :  { %v804_v15 = vpop.f32.mrf.mxu1 }
 0xbbe   :  { %v808_v16 = vadd.f32 %v804_v15, %v729_v14 }
 0xbbf   :  { %v4317_v17 = vpop.f32.mrf.mxu1 }
 0xbc0   :  { %4609 = vtanh.f32 %v808_v16  ;;  %v4055_v24 = vmul.f32 -1.442695, %v808_v16 }
 0xbc2   :  { %4611 = vpow2.f32 %v4055_v24 }
 0xbcd   :  { %v4610_v19 = vpop.eup %4609 }
 0xbce   :  { %823 = vrot.lane.b32.xlu0 %v4610_v19, %s4762_s3 }
 0xbcf   :  { %v4612_v25 = vpop.eup %4611 }
 0xbd0   :  { %v812_v26 = vadd.f32 1.0, %v4612_v25 }
 0xbd2   :  { %4613 = vrcp.f32 %v812_v26 }
 0xbdf   :  { %v4614_v27 = vpop.eup %4613 }
 0xbe0   :  { %v821_v32 = vmul.f32 %v4614_v27, %v819_v31 }
 0xc40   :  { %v824_v29 = vpop.permute.xlu0 %823 }
 0xc41   :  { %v826_v30 = vmul.f32 %v4614_v27, %v824_v29 }
 0xc43   :  { %828 = vrot.lane.b32.xlu0 %v826_v30, %s4762_s3 }
 0xcb5   :  { %v829_v33 = vpop.permute.xlu0 %828 }
 0xcb6   :  { %v831_v34 = vadd.f32 %v829_v33, %v821_v32  ;;  %v1095_v33 = vld [vmem:[#allocation2 + $0xe] sm:$0x3] }
 0xcb8   :  { %4615 = vtanh.f32 %v831_v34 }
 0xcc5   :  { %v4616_v35 = vpop.eup %4615 }
 0xcc6   :  { %834 = vrot.lane.b32.xlu1 %v4616_v35, %s4762_s3 }
 0xcca   :  { %839 = vrot.lane.b32.xlu1 %v831_v34, %s4763_s24 }
 0xd38   :  { %v835_v36 = vpop.permute.xlu1 %834 }
 0xd39   :  { %v837_v37 = vmul.f32 %v4614_v27, %v835_v36 }
 0xd3b   :  { %844 = vrot.lane.b32.xlu0 %v837_v37, %s4764_s1 }
 0xd3c   :  { %v840_v38 = vpop.permute.xlu1 %839 }
 0xd3d   :  { %842 = vst.msk [vmem:[#allocation6] sm:$0x3] %vm238_vm0, %v840_v38 }
 0xd44   :  { %v938_v39 = vld [vmem:[#allocation6] sm:$0x3] }
 0xd45   :  { %940 = vrot.lane.b32.xlu1 %v938_v39, %s4762_s3 }
 0xdad   :  { %v845_v40 = vpop.permute.xlu0 %844 }
 0xdae   :  { %847 = vst.msk [vmem:[#allocation5] sm:$0x3] %vm238_vm0, %v845_v40  ;;  %849 = vst.msk [vmem:[#allocation3 + $0x8] sm:$0x3] %vm238_vm0, %v845_v40 }
 0xdb5   :  { %v852_v41 = vld [vmem:[#allocation5] sm:$0x3]  ;;  %v1222_v59 = vld [vmem:[#allocation3 + $0x8] sm:$0x3] }
 0xdb6   :  { %4327 = vmatmul.mubr.msk.f32.vlgmr.msra.gmra.mxu0 %vm247_vm3, %v852_v41 }
 0xdb7   :  { %4341 = vmatpush3.msra.mxu0 %v4881_v18  ;;  %4348 = vmatprep.mubr.msk.f32.mxu0 %vm4761_vm1, %v4760_v20 }
 0xdb8   :  { %4342 = vmatprep.subr.mxu0 %v4760_v20 }
 0xdb9   :  { %4343 = vmatpush3.msra.mxu0 %v4887_v21 }
 0xdba   :  { %4344 = vmatprep.subr.mxu0 %v4760_v20 }
 0xdbb   :  { %4345 = vmatpush3.msra.mxu0 %v4902_v23 }
 0xdbc   :  { %4346 = vmatprep.subr.mxu0 %v4760_v20 }
 0xdbd   :  { %4347 = vmatpush3.msra.mxu0 %v4914_v28  ;;  %v941_v28 = vpop.permute.xlu1 %940 }
 0xdbe   :  { %4362 = vmatprep.subr.mxu0 %v4760_v20 }
 0xe76   :  { %v926_v43 = vpop.f32.mrf.mxu0 }
 0xe77   :  { %v930_v18 = vadd.f32 %v926_v43, %v851_v42 }
 0xe78   :  { %v4328_v44 = vpop.f32.mrf.mxu0 }
 0xe79   :  { %4617 = vtanh.f32 %v930_v18  ;;  %v4057_v46 = vmul.f32 -1.442695, %v930_v18 }
 0xe7b   :  { %4619 = vpow2.f32 %v4057_v46 }
 0xe86   :  { %v4618_v45 = vpop.eup %4617 }
 0xe87   :  { %945 = vrot.lane.b32.xlu0 %v4618_v45, %s4762_s3 }
 0xe88   :  { %v4620_v21 = vpop.eup %4619 }
 0xe89   :  { %v934_v47 = vadd.f32 1.0, %v4620_v21 }
 0xe8b   :  { %4621 = vrcp.f32 %v934_v47  ;;  %v1229_v47 = vld [vmem:[%s5534_s4 + $0x18] sm:$0xff] }
 0xe8c   :  { %4351 = vmatprep.subr.mxu1 %v1229_v47 }
 0xe98   :  { %v4622_v23 = vpop.eup %4621 }
 0xe99   :  { %v943_v50 = vmul.f32 %v4622_v23, %v941_v28 }
 0xef9   :  { %v946_v48 = vpop.permute.xlu0 %945 }
 0xefa   :  { %v948_v49 = vmul.f32 %v4622_v23, %v946_v48  ;;  %v1227_v48 = vld [vmem:[%s5534_s4 + $0x8] sm:$0xff] }
 0xefc   :  { %950 = vrot.lane.b32.xlu0 %v948_v49, %s4762_s3  ;;  %v1226_v49 = vld [vmem:[%s5534_s4] sm:$0xff] }
 0xf6e   :  { %v951_v51 = vpop.permute.xlu0 %950 }
 0xf6f   :  { %v953_v52 = vadd.f32 %v951_v51, %v943_v50 }
 0xf71   :  { %4623 = vtanh.f32 %v953_v52 }
 0xf7e   :  { %v4624_v53 = vpop.eup %4623 }
 0xf7f   :  { %956 = vrot.lane.b32.xlu1 %v4624_v53, %s4762_s3  ;;  %v5100_v53 = vld [vmem:[%s5535_s5 + $0x10] sm:$0xff] }
 0xf83   :  { %961 = vrot.lane.b32.xlu1 %v953_v52, %s4763_s24  ;;  %v5095_v52 = vld [vmem:[%s5535_s5 + $0x18] sm:$0xff] }
 0xff1   :  { %v957_v54 = vpop.permute.xlu1 %956 }
 0xff2   :  { %v959_v55 = vmul.f32 %v4622_v23, %v957_v54  ;;  %v1228_v23 = vld [vmem:[%s5534_s4 + $0x10] sm:$0xff]  ;;  %v5111_v54 = vld [vmem:[%s5535_s5 + $0x8] sm:$0xff] }
 0xff4   :  { %966 = vrot.lane.b32.xlu0 %v959_v55, %s4764_s1  ;;  %v5118_v55 = vld [vmem:[%s5535_s5] sm:$0xff] }
 0xff5   :  { %v962_v56 = vpop.permute.xlu1 %961 }
 0xff6   :  { %964 = vst.msk [vmem:[#allocation6] sm:$0x3] %vm238_vm0, %v962_v56 }
 0xffd   :  { %v1060_v57 = vld [vmem:[#allocation6] sm:$0x3] }
 0xffe   :  { %1062 = vrot.lane.b32.xlu1 %v1060_v57, %s4762_s3 }
0x1066   :  { %v967_v61 = vpop.permute.xlu0 %966 }
0x1067   :  { %969 = vst.msk [vmem:[#allocation5] sm:$0x3] %vm238_vm0, %v967_v61  ;;  %971 = vst.msk [vmem:[#allocation3 + $0xa] sm:$0x3] %vm238_vm0, %v967_v61 }
0x106e   :  { %v974_v3 = vld [vmem:[#allocation5] sm:$0x3]  ;;  %v1223_v58 = vld [vmem:[#allocation3 + $0xa] sm:$0x3] }
0x106f   :  { %4338 = vmatmul.mubr.msk.f32.vlgmr.msra.gmra.mxu1 %vm247_vm3, %v974_v3  ;;  %v1262_v60 = vcombine.low %v1222_v59, %v1223_v58 }
0x1070   :  { %4359 = vmatprep.mubr.msk.f32.mxu1 %vm247_vm3, %v1261_v4  ;;  %v1063_v16 = vpop.permute.xlu1 %1062  ;;  %4352 = vmatpush3.msra.mxu1 %v1229_v47 }
0x1071   :  { %4353 = vmatprep.subr.mxu1 %v1228_v23  ;;  %v1270_v1 = vrot.slane %v1262_v60, %v4889_v22 }
0x1072   :  { %4354 = vmatpush3.msra.mxu1 %v1228_v23 }
0x1073   :  { %4355 = vmatprep.subr.mxu1 %v1227_v48 }
0x1074   :  { %4356 = vmatpush3.msra.mxu1 %v1227_v48 }
0x1075   :  { %4357 = vmatprep.subr.mxu1 %v1226_v49 }
0x1076   :  { %4358 = vmatpush3.msra.mxu1 %v1226_v49 }
0x1077   :  { %4373 = vmatprep.subr.mxu1 %v4760_v20 }
0x112f   :  { %v1048_v6 = vpop.f32.mrf.mxu1 }
0x1130   :  { %v1052_v7 = vadd.f32 %v1048_v6, %v973_v5  ;;  %v4062_v5 = vld [vmem:[%s5536_s6] ss:$0 sm:$0xff]  ;;  %s4769_s6 = smov 16  }
0x1131   :  { %v4339_v8 = vpop.f32.mrf.mxu1 }
0x1132   :  { %4625 = vtanh.f32 %v1052_v7  ;;  %v4059_v10 = vmul.f32 -1.442695, %v1052_v7 }
0x1134   :  { %4627 = vpow2.f32 %v4059_v10 }
0x113f   :  { %v4626_v9 = vpop.eup %4625 }
0x1140   :  { %1067 = vrot.lane.b32.xlu0 %v4626_v9, %s4762_s3 }
0x1141   :  { %v4628_v11 = vpop.eup %4627 }
0x1142   :  { %v1056_v12 = vadd.f32 1.0, %v4628_v11 }
0x1144   :  { %4629 = vrcp.f32 %v1056_v12 }
0x1151   :  { %v4630_v13 = vpop.eup %4629 }
0x1152   :  { %v1065_v17 = vmul.f32 %v4630_v13, %v1063_v16 }
0x11b2   :  { %v1068_v14 = vpop.permute.xlu0 %1067 }
0x11b3   :  { %v1070_v15 = vmul.f32 %v4630_v13, %v1068_v14 }
0x11b5   :  { %1072 = vrot.lane.b32.xlu0 %v1070_v15, %s4762_s3 }
0x1227   :  { %v1073_v19 = vpop.permute.xlu0 %1072 }
0x1228   :  { %v1075_v24 = vadd.f32 %v1073_v19, %v1065_v17 }
0x122a   :  { %4631 = vtanh.f32 %v1075_v24 }
0x1237   :  { %v4632_v25 = vpop.eup %4631 }
0x1238   :  { %1078 = vrot.lane.b32.xlu1 %v4632_v25, %s4762_s3 }
0x123c   :  { %1083 = vrot.lane.b32.xlu1 %v1075_v24, %s4763_s24 }
0x12aa   :  { %v1079_v26 = vpop.permute.xlu1 %1078 }
0x12ab   :  { %v1081_v27 = vmul.f32 %v4630_v13, %v1079_v26 }
0x12ad   :  { %1088 = vrot.lane.b32.xlu0 %v1081_v27, %s4764_s1 }
0x12ae   :  { %v1084_v29 = vpop.permute.xlu1 %1083 }
0x12af   :  { %1086 = vst.msk [vmem:[#allocation6] sm:$0x3] %vm238_vm0, %v1084_v29 }
0x12b6   :  { %v1182_v30 = vld [vmem:[#allocation6] sm:$0x3] }
0x12b7   :  { %1184 = vrot.lane.b32.xlu1 %v1182_v30, %s4762_s3 }
0x131f   :  { %v1089_v31 = vpop.permute.xlu0 %1088 }
0x1320   :  { %1091 = vst.msk [vmem:[#allocation5] sm:$0x3] %vm238_vm0, %v1089_v31  ;;  %1093 = vst.msk [vmem:[#allocation3 + $0xc] sm:$0x3] %vm238_vm0, %v1089_v31 }
0x1327   :  { %v1096_v32 = vld [vmem:[#allocation5] sm:$0x3]  ;;  %v1224_v62 = vld [vmem:[#allocation3 + $0xc] sm:$0x3] }
0x1328   :  { %4349 = vmatmul.mubr.msk.f32.vlgmr.msra.gmra.mxu0 %vm247_vm3, %v1096_v32 }
0x1329   :  { %4370 = vmatprep.mubr.msk.f32.mxu0 %vm4761_vm1, %v4760_v20  ;;  %v1185_v18 = vpop.permute.xlu1 %1184  ;;  %4363 = vmatpush3.msra.mxu0 %v5095_v52 }
0x132a   :  { %4364 = vmatprep.subr.mxu0 %v4760_v20 }
0x132b   :  { %4365 = vmatpush3.msra.mxu0 %v5100_v53 }
0x132c   :  { %4366 = vmatprep.subr.mxu0 %v4760_v20 }
0x132d   :  { %4367 = vmatpush3.msra.mxu0 %v5111_v54 }
0x132e   :  { %4368 = vmatprep.subr.mxu0 %v4760_v20 }
0x132f   :  { %4369 = vmatpush3.msra.mxu0 %v5118_v55 }
0x1330   :  { %4384 = vmatprep.subr.mxu0 %v4760_v20 }
0x13e8   :  { %v1170_v34 = vpop.f32.mrf.mxu0 }
0x13e9   :  { %v1174_v35 = vadd.f32 %v1170_v34, %v1095_v33 }
0x13ea   :  { %v4350_v36 = vpop.f32.mrf.mxu0 }
0x13eb   :  { %4633 = vtanh.f32 %v1174_v35  ;;  %v4061_v38 = vmul.f32 -1.442695, %v1174_v35 }
0x13ed   :  { %4635 = vpow2.f32 %v4061_v38 }
0x13f8   :  { %v4634_v37 = vpop.eup %4633 }
0x13f9   :  { %1189 = vrot.lane.b32.xlu0 %v4634_v37, %s4762_s3 }
0x13fa   :  { %v4636_v39 = vpop.eup %4635 }
0x13fb   :  { %v1178_v40 = vadd.f32 1.0, %v4636_v39 }
0x13fd   :  { %4637 = vrcp.f32 %v1178_v40 }
0x140a   :  { %v4638_v41 = vpop.eup %4637 }
0x140b   :  { %v1187_v44 = vmul.f32 %v4638_v41, %v1185_v18 }
0x146b   :  { %v1190_v42 = vpop.permute.xlu0 %1189 }
0x146c   :  { %v1192_v43 = vmul.f32 %v4638_v41, %v1190_v42 }
0x146e   :  { %1194 = vrot.lane.b32.xlu0 %v1192_v43, %s4762_s3 }
0x14e0   :  { %v1195_v45 = vpop.permute.xlu0 %1194 }
0x14e1   :  { %v1197_v46 = vadd.f32 %v1195_v45, %v1187_v44 }
0x14e3   :  { %4639 = vtanh.f32 %v1197_v46 }
0x14f0   :  { %v4640_v21 = vpop.eup %4639 }
0x14f1   :  { %1200 = vrot.lane.b32.xlu1 %v4640_v21, %s4762_s3 }
0x14f5   :  { %1205 = vrot.lane.b32.xlu1 %v1197_v46, %s4763_s24 }
0x1563   :  { %v1201_v28 = vpop.permute.xlu1 %1200 }
0x1564   :  { %v1203_v50 = vmul.f32 %v4638_v41, %v1201_v28 }
0x1566   :  { %1210 = vrot.lane.b32.xlu0 %v1203_v50, %s4764_s1 }
0x1567   :  { %v1206_v51 = vpop.permute.xlu1 %1205 }
0x1568   :  { %1208 = vst.msk [vmem:[#allocation6] sm:$0x3] %vm238_vm0, %v1206_v51 }
0x1569   :  { %1411 = vst.msk [vmem:[#allocation6] sm:$0x3] %vm238_vm0, %v4760_v20 }
0x1570   :  { %v1499_v56 = vld [vmem:[#allocation6] sm:$0x3] }
0x1571   :  { %1501 = vrot.lane.b32.xlu1 %v1499_v56, %s4762_s3 }
0x15d8   :  { %v1211_v57 = vpop.permute.xlu0 %1210 }
0x15d9   :  { %1213 = vst.msk [vmem:[#allocation5] sm:$0x3] %vm238_vm0, %v1211_v57  ;;  %1215 = vst.msk [vmem:[#allocation3 + $0xe] sm:$0x3] %vm238_vm0, %v1211_v57 }
0x15e0   :  { %v1216_v61 = vld [vmem:[#allocation5] sm:$0x3]  ;;  %v1225_v63 = vld [vmem:[#allocation3 + $0xe] sm:$0x3] }
0x15e1   :  { %1217 = vst.msk [vmem:[#allocation7] sm:$0x3] %vm238_vm0, %v1216_v61  ;;  %1410 = vst.msk [vmem:[#allocation5] sm:$0x3] %vm238_vm0, %v4760_v20  ;;  %v1263_v0 = vcombine.low %v1224_v62, %v1225_v63 }
0x15e3   :  { %v1277_v2 = vrot.slane %v1263_v0, %v4889_v22  ;;  %v1502_v37 = vpop.permute.xlu1 %1501 }
0x15e5   :  { %v1278_v3 = vcombine.low %v1270_v1, %v1277_v2 }
0x15e7   :  { %4360 = vmatmul.mubr.msk.f32.vlgmr.msra.gmra.mxu1 %vm247_vm3, %v1278_v3 }
0x15e8   :  { %v1413_v4 = vld [vmem:[#allocation5] sm:$0x3]  ;;  %4374 = vmatpush3.msra.mxu1 %v5095_v52  ;;  %4381 = vmatprep.mubr.msk.f32.mxu1 %vm4761_vm1, %v4760_v20 }
0x15e9   :  { %4371 = vmatmul.mubr.msk.f32.vlgmr.msra.gmra.mxu0 %vm247_vm3, %v1413_v4  ;;  %4375 = vmatprep.subr.mxu1 %v4760_v20 }
0x15ea   :  { %4376 = vmatpush3.msra.mxu1 %v5100_v53  ;;  %4385 = vmatpush3.msra.mxu0 %v5095_v52 }
0x15eb   :  { %4377 = vmatprep.subr.mxu1 %v4760_v20  ;;  %4386 = vmatprep.subr.mxu0 %v4760_v20 }
0x15ec   :  { %4378 = vmatpush3.msra.mxu1 %v5111_v54  ;;  %4387 = vmatpush3.msra.mxu0 %v5100_v53 }
0x15ed   :  { %4379 = vmatprep.subr.mxu1 %v4760_v20  ;;  %4388 = vmatprep.subr.mxu0 %v4760_v20 }
0x15ee   :  { %4380 = vmatpush3.msra.mxu1 %v5118_v55  ;;  %4389 = vmatpush3.msra.mxu0 %v5111_v54 }
0x15ef   :  { %4390 = vmatprep.subr.mxu0 %v4760_v20  ;;  %4392 = vmatprep.mubr.msk.f32.mxu0 %vm4761_vm1, %v4760_v20 }
0x15f0   :  { %4391 = vmatpush3.msra.mxu0 %v5118_v55  ;;  %4395 = vmatprep.subr.mxu1 %v4760_v20 }
0x15f1   :  { %4406 = vmatprep.subr.mxu0 %v4760_v20 }
0x16a7   :  { %v4361_v6 = vpop.f32.mrf.mxu1 }
0x16a8   :  { %v1355_v7 = vadd.f32 %v4361_v6, %v4062_v5 }
0x16a9   :  { %v1349_v8 = vpop.f32.mrf.mxu1  ;;  %v1487_v9 = vpop.f32.mrf.mxu0 }
0x16aa   :  { %v1377_v10 = vcombine.high %v1355_v7, %v1355_v7  ;;  %v1384_v11 = vrot.slane %v1355_v7, %v4889_v22  ;;  %4067 = vst.sshfl [vmem:[#allocation2 + $0x8] sm:$0x3 pattern:$0x76325410] %v1355_v7  ;;  %v1350_v12 = vadd.f32 %v4062_v5, %v1349_v8 }
0x16ab   :  { %v4372_v13 = vpop.f32.mrf.mxu0 }
0x16ac   :  { %v1391_v14 = vrot.slane %v1377_v10, %v4889_v22  ;;  %v1392_v15 = vcombine.high %v1384_v11, %v1384_v11  ;;  %4068 = vst.sshfl [vmem:[#allocation2 + $0xc] sm:$0x3 pattern:$0x76325410] %v1377_v10  ;;  %v1360_v16 = vcombine.high %v1350_v12, %v1350_v12  ;;  %v1367_v17 = vrot.slane %v1350_v12, %v4889_v22 }
0x16ad   :  { %4065 = vst.sshfl [vmem:[#allocation2] sm:$0x3 pattern:$0x76325410] %v1350_v12 }
0x16ae   :  { %v1393_v19 = vcombine.high %v1391_v14, %v1391_v14  ;;  %1407 = vst [vmem:[#allocation2 + $0xa] sm:$0x3] %v1392_v15  ;;  %v1374_v24 = vrot.slane %v1360_v16, %v4889_v22  ;;  %v1375_v25 = vcombine.high %v1367_v17, %v1367_v17  ;;  %4066 = vst.sshfl [vmem:[#allocation2 + $0x4] sm:$0x3 pattern:$0x76325410] %v1360_v16 }
0x16b0   :  { %1409 = vst [vmem:[#allocation2 + $0xe] sm:$0x3] %v1393_v19  ;;  %v1376_v26 = vcombine.high %v1374_v24, %v1374_v24  ;;  %1403 = vst [vmem:[#allocation2 + $0x2] sm:$0x3] %v1375_v25 }
0x16b2   :  { %1405 = vst [vmem:[#allocation2 + $0x6] sm:$0x3] %v1376_v26 }
0x16b4   :  { %v1412_v27 = vld [vmem:[#allocation2] sm:$0x3] }
0x16b5   :  { %v1491_v29 = vadd.f32 %v1487_v9, %v1412_v27  ;;  %v1656_v6 = vld [vmem:[#allocation2 + $0x4] sm:$0x3] }
0x16b7   :  { %4641 = vtanh.f32 %v1491_v29  ;;  %v4070_v31 = vmul.f32 -1.442695, %v1491_v29  ;;  %v1535_v21 = vld [vmem:[#allocation2 + $0x2] sm:$0x3] }
0x16b9   :  { %4643 = vpow2.f32 %v4070_v31 }
0x16c4   :  { %v4642_v30 = vpop.eup %4641 }
0x16c5   :  { %1506 = vrot.lane.b32.xlu0 %v4642_v30, %s4762_s3 }
0x16c6   :  { %v4644_v32 = vpop.eup %4643 }
0x16c7   :  { %v1495_v33 = vadd.f32 1.0, %v4644_v32 }
0x16c9   :  { %4645 = vrcp.f32 %v1495_v33 }
0x16d6   :  { %v4646_v34 = vpop.eup %4645 }
0x16d7   :  { %v1504_v38 = vmul.f32 %v4646_v34, %v1502_v37 }
0x1737   :  { %v1507_v35 = vpop.permute.xlu0 %1506 }
0x1738   :  { %v1509_v36 = vmul.f32 %v4646_v34, %v1507_v35 }
0x173a   :  { %1511 = vrot.lane.b32.xlu0 %v1509_v36, %s4762_s3 }
0x17ac   :  { %v1512_v39 = vpop.permute.xlu0 %1511 }
0x17ad   :  { %v1514_v40 = vadd.f32 %v1512_v39, %v1504_v38 }
0x17af   :  { %4647 = vtanh.f32 %v1514_v40 }
0x17bc   :  { %v4648_v41 = vpop.eup %4647 }
0x17bd   :  { %1517 = vrot.lane.b32.xlu1 %v4648_v41, %s4762_s3 }
0x17c1   :  { %1522 = vrot.lane.b32.xlu1 %v1514_v40, %s4763_s24 }
0x182f   :  { %v1518_v42 = vpop.permute.xlu1 %1517 }
0x1830   :  { %v1520_v43 = vmul.f32 %v4646_v34, %v1518_v42  ;;  %v1777_v34 = vld [vmem:[#allocation2 + $0x6] sm:$0x3] }
0x1832   :  { %1527 = vrot.lane.b32.xlu0 %v1520_v43, %s4764_s1 }
0x1833   :  { %v1523_v18 = vpop.permute.xlu1 %1522 }
0x1834   :  { %1525 = vst.msk [vmem:[#allocation6] sm:$0x3] %vm238_vm0, %v1523_v18 }
0x183b   :  { %v1622_v44 = vld [vmem:[#allocation6] sm:$0x3] }
0x183c   :  { %1624 = vrot.lane.b32.xlu1 %v1622_v44, %s4762_s3 }
0x18a4   :  { %v1528_v45 = vpop.permute.xlu0 %1527 }
0x18a5   :  { %1530 = vst.msk [vmem:[#allocation5] sm:$0x3] %vm238_vm0, %v1528_v45 }
0x18a6   :  { %1532 = vst.msk [vmem:[#allocation4] sm:$0x1] %vm1531_vm4, %v1528_v45 }
0x18a7   :  { %1534 = vst.msk [vmem:[#allocation4 + $0x7] sm:$0x2] %vm1533_vm5, %v1528_v45 }
0x18ac   :  { %v1536_v46 = vld [vmem:[#allocation5] sm:$0x3] }
0x18ad   :  { %4382 = vmatmul.mubr.msk.f32.vlgmr.msra.gmra.mxu1 %vm247_vm3, %v1536_v46 }
0x18ae   :  { %4396 = vmatpush3.msra.mxu1 %v5095_v52  ;;  %4403 = vmatprep.mubr.msk.f32.mxu1 %vm4761_vm1, %v4760_v20  ;;  %v1625_v59 = vpop.permute.xlu1 %1624 }
0x18af   :  { %4397 = vmatprep.subr.mxu1 %v4760_v20 }
0x18b0   :  { %4398 = vmatpush3.msra.mxu1 %v5100_v53 }
0x18b1   :  { %4399 = vmatprep.subr.mxu1 %v4760_v20 }
0x18b2   :  { %4400 = vmatpush3.msra.mxu1 %v5111_v54 }
0x18b3   :  { %4401 = vmatprep.subr.mxu1 %v4760_v20 }
0x18b4   :  { %4402 = vmatpush3.msra.mxu1 %v5118_v55 }
0x18b5   :  { %4417 = vmatprep.subr.mxu1 %v4760_v20 }
0x196d   :  { %v1610_v47 = vpop.f32.mrf.mxu1 }
0x196e   :  { %v1614_v23 = vadd.f32 %v1610_v47, %v1535_v21 }
0x196f   :  { %v4383_v48 = vpop.f32.mrf.mxu1 }
0x1970   :  { %4649 = vtanh.f32 %v1614_v23  ;;  %v4072_v28 = vmul.f32 -1.442695, %v1614_v23 }
0x1972   :  { %4651 = vpow2.f32 %v4072_v28 }
0x197d   :  { %v4650_v49 = vpop.eup %4649 }
0x197e   :  { %1629 = vrot.lane.b32.xlu0 %v4650_v49, %s4762_s3 }
0x197f   :  { %v4652_v50 = vpop.eup %4651 }
0x1980   :  { %v1618_v51 = vadd.f32 1.0, %v4652_v50 }
0x1982   :  { %4653 = vrcp.f32 %v1618_v51 }
0x198f   :  { %v4654_v56 = vpop.eup %4653 }
0x1990   :  { %v1627_v60 = vmul.f32 %v4654_v56, %v1625_v59 }
0x19f0   :  { %v1630_v57 = vpop.permute.xlu0 %1629 }
0x19f1   :  { %v1632_v58 = vmul.f32 %v4654_v56, %v1630_v57 }
0x19f3   :  { %1634 = vrot.lane.b32.xlu0 %v1632_v58, %s4762_s3 }
0x1a65   :  { %v1635_v61 = vpop.permute.xlu0 %1634 }
0x1a66   :  { %v1637_v62 = vadd.f32 %v1635_v61, %v1627_v60 }
0x1a68   :  { %4655 = vtanh.f32 %v1637_v62 }
0x1a75   :  { %v4656_v63 = vpop.eup %4655 }
0x1a76   :  { %1640 = vrot.lane.b32.xlu1 %v4656_v63, %s4762_s3 }
0x1a7a   :  { %1645 = vrot.lane.b32.xlu1 %v1637_v62, %s4763_s24 }
0x1ae8   :  { %v1641_v0 = vpop.permute.xlu1 %1640 }
0x1ae9   :  { %v1643_v1 = vmul.f32 %v4654_v56, %v1641_v0  ;;  %v1898_v56 = vld [vmem:[#allocation2 + $0x8] sm:$0x3] }
0x1aeb   :  { %1650 = vrot.lane.b32.xlu0 %v1643_v1, %s4764_s1 }
0x1aec   :  { %v1646_v2 = vpop.permute.xlu1 %1645 }
0x1aed   :  { %1648 = vst.msk [vmem:[#allocation6] sm:$0x3] %vm238_vm0, %v1646_v2 }
0x1af4   :  { %v1743_v3 = vld [vmem:[#allocation6] sm:$0x3] }
0x1af5   :  { %1745 = vrot.lane.b32.xlu1 %v1743_v3, %s4762_s3 }
0x1b5d   :  { %v1651_v4 = vpop.permute.xlu0 %1650 }
0x1b5e   :  { %1654 = vst.msk [vmem:[#allocation4 + $0x1] sm:$0x1] %vm1531_vm4, %v1651_v4 }
0x1b5f   :  { %1655 = vst.msk [vmem:[#allocation4 + $0x8] sm:$0x2] %vm1533_vm5, %v1651_v4 }
0x1b60   :  { %1653 = vst.msk [vmem:[#allocation5] sm:$0x3] %vm238_vm0, %v1651_v4 }
0x1b67   :  { %v1657_v5 = vld [vmem:[#allocation5] sm:$0x3]  ;;  %v1746_v17 = vpop.permute.xlu1 %1745 }
0x1b68   :  { %4393 = vmatmul.mubr.msk.f32.vlgmr.msra.gmra.mxu0 %vm247_vm3, %v1657_v5 }
0x1b69   :  { %4407 = vmatpush3.msra.mxu0 %v5095_v52  ;;  %4414 = vmatprep.mubr.msk.f32.mxu0 %vm4761_vm1, %v4760_v20 }
0x1b6a   :  { %4408 = vmatprep.subr.mxu0 %v4760_v20 }
0x1b6b   :  { %4409 = vmatpush3.msra.mxu0 %v5100_v53 }
0x1b6c   :  { %4410 = vmatprep.subr.mxu0 %v4760_v20 }
0x1b6d   :  { %4411 = vmatpush3.msra.mxu0 %v5111_v54 }
0x1b6e   :  { %4412 = vmatprep.subr.mxu0 %v4760_v20 }
0x1b6f   :  { %4413 = vmatpush3.msra.mxu0 %v5118_v55 }
0x1b70   :  { %4428 = vmatprep.subr.mxu0 %v4760_v20 }
0x1c28   :  { %v1731_v7 = vpop.f32.mrf.mxu0 }
0x1c29   :  { %v1735_v8 = vadd.f32 %v1731_v7, %v1656_v6 }
0x1c2a   :  { %v4394_v9 = vpop.f32.mrf.mxu0 }
0x1c2b   :  { %4657 = vtanh.f32 %v1735_v8  ;;  %v4074_v11 = vmul.f32 -1.442695, %v1735_v8 }
0x1c2d   :  { %4659 = vpow2.f32 %v4074_v11 }
0x1c38   :  { %v4658_v10 = vpop.eup %4657 }
0x1c39   :  { %1750 = vrot.lane.b32.xlu0 %v4658_v10, %s4762_s3 }
0x1c3a   :  { %v4660_v12 = vpop.eup %4659 }
0x1c3b   :  { %v1739_v13 = vadd.f32 1.0, %v4660_v12 }
0x1c3d   :  { %4661 = vrcp.f32 %v1739_v13 }
0x1c4a   :  { %v4662_v14 = vpop.eup %4661 }
0x1c4b   :  { %v1748_v19 = vmul.f32 %v4662_v14, %v1746_v17 }
0x1cab   :  { %v1751_v15 = vpop.permute.xlu0 %1750 }
0x1cac   :  { %v1753_v16 = vmul.f32 %v4662_v14, %v1751_v15 }
0x1cae   :  { %1755 = vrot.lane.b32.xlu0 %v1753_v16, %s4762_s3 }
0x1d20   :  { %v1756_v24 = vpop.permute.xlu0 %1755 }
0x1d21   :  { %v1758_v25 = vadd.f32 %v1756_v24, %v1748_v19 }
0x1d23   :  { %4663 = vtanh.f32 %v1758_v25 }
0x1d30   :  { %v4664_v26 = vpop.eup %4663 }
0x1d31   :  { %1761 = vrot.lane.b32.xlu1 %v4664_v26, %s4762_s3 }
0x1d35   :  { %1766 = vrot.lane.b32.xlu1 %v1758_v25, %s4763_s24 }
0x1da3   :  { %v1762_v27 = vpop.permute.xlu1 %1761 }
0x1da4   :  { %v1764_v29 = vmul.f32 %v4662_v14, %v1762_v27  ;;  %v2019_v14 = vld [vmem:[#allocation2 + $0xa] sm:$0x3] }
0x1da6   :  { %1771 = vrot.lane.b32.xlu0 %v1764_v29, %s4764_s1 }
0x1da7   :  { %v1767_v30 = vpop.permute.xlu1 %1766 }
0x1da8   :  { %1769 = vst.msk [vmem:[#allocation6] sm:$0x3] %vm238_vm0, %v1767_v30 }
0x1daf   :  { %v1864_v31 = vld [vmem:[#allocation6] sm:$0x3] }
0x1db0   :  { %1866 = vrot.lane.b32.xlu1 %v1864_v31, %s4762_s3 }
0x1e18   :  { %v1772_v32 = vpop.permute.xlu0 %1771 }
0x1e19   :  { %1775 = vst.msk [vmem:[#allocation4 + $0x2] sm:$0x1] %vm1531_vm4, %v1772_v32 }
0x1e1a   :  { %1776 = vst.msk [vmem:[#allocation4 + $0x9] sm:$0x2] %vm1533_vm5, %v1772_v32 }
0x1e1b   :  { %1774 = vst.msk [vmem:[#allocation5] sm:$0x3] %vm238_vm0, %v1772_v32 }
0x1e22   :  { %v1778_v33 = vld [vmem:[#allocation5] sm:$0x3]  ;;  %v1867_v44 = vpop.permute.xlu1 %1866 }
0x1e23   :  { %4404 = vmatmul.mubr.msk.f32.vlgmr.msra.gmra.mxu1 %vm247_vm3, %v1778_v33 }
0x1e24   :  { %4418 = vmatpush3.msra.mxu1 %v5095_v52  ;;  %4425 = vmatprep.mubr.msk.f32.mxu1 %vm4761_vm1, %v4760_v20 }
0x1e25   :  { %4419 = vmatprep.subr.mxu1 %v4760_v20 }
0x1e26   :  { %4420 = vmatpush3.msra.mxu1 %v5100_v53 }
0x1e27   :  { %4421 = vmatprep.subr.mxu1 %v4760_v20 }
0x1e28   :  { %4422 = vmatpush3.msra.mxu1 %v5111_v54 }
0x1e29   :  { %4423 = vmatprep.subr.mxu1 %v4760_v20 }
0x1e2a   :  { %4424 = vmatpush3.msra.mxu1 %v5118_v55 }
0x1e2b   :  { %4439 = vmatprep.subr.mxu1 %v4760_v20 }
0x1ee3   :  { %v1852_v35 = vpop.f32.mrf.mxu1 }
0x1ee4   :  { %v1856_v36 = vadd.f32 %v1852_v35, %v1777_v34 }
0x1ee5   :  { %v4405_v37 = vpop.f32.mrf.mxu1 }
0x1ee6   :  { %4665 = vtanh.f32 %v1856_v36  ;;  %v4076_v39 = vmul.f32 -1.442695, %v1856_v36 }
0x1ee8   :  { %4667 = vpow2.f32 %v4076_v39 }
0x1ef3   :  { %v4666_v38 = vpop.eup %4665 }
0x1ef4   :  { %1871 = vrot.lane.b32.xlu0 %v4666_v38, %s4762_s3  ;;  %v2140_v38 = vld [vmem:[#allocation2 + $0xc] sm:$0x3] }
0x1ef5   :  { %v4668_v40 = vpop.eup %4667 }
0x1ef6   :  { %v1860_v41 = vadd.f32 1.0, %v4668_v40 }
0x1ef8   :  { %4669 = vrcp.f32 %v1860_v41 }
0x1f05   :  { %v4670_v42 = vpop.eup %4669 }
0x1f06   :  { %v1869_v45 = vmul.f32 %v4670_v42, %v1867_v44 }
0x1f66   :  { %v1872_v43 = vpop.permute.xlu0 %1871 }
0x1f67   :  { %v1874_v18 = vmul.f32 %v4670_v42, %v1872_v43 }
0x1f69   :  { %1876 = vrot.lane.b32.xlu0 %v1874_v18, %s4762_s3 }
0x1fdb   :  { %v1877_v46 = vpop.permute.xlu0 %1876 }
0x1fdc   :  { %v1879_v21 = vadd.f32 %v1877_v46, %v1869_v45 }
0x1fde   :  { %4671 = vtanh.f32 %v1879_v21 }
0x1feb   :  { %v4672_v47 = vpop.eup %4671 }
0x1fec   :  { %1882 = vrot.lane.b32.xlu1 %v4672_v47, %s4762_s3 }
0x1ff0   :  { %1887 = vrot.lane.b32.xlu1 %v1879_v21, %s4763_s24 }
0x205e   :  { %v1883_v23 = vpop.permute.xlu1 %1882 }
0x205f   :  { %v1885_v48 = vmul.f32 %v4670_v42, %v1883_v23 }
0x2061   :  { %1892 = vrot.lane.b32.xlu0 %v1885_v48, %s4764_s1 }
0x2062   :  { %v1888_v49 = vpop.permute.xlu1 %1887 }
0x2063   :  { %1890 = vst.msk [vmem:[#allocation6] sm:$0x3] %vm238_vm0, %v1888_v49 }
0x206a   :  { %v1985_v28 = vld [vmem:[#allocation6] sm:$0x3] }
0x206b   :  { %1987 = vrot.lane.b32.xlu1 %v1985_v28, %s4762_s3 }
0x20d3   :  { %v1893_v50 = vpop.permute.xlu0 %1892 }
0x20d4   :  { %1896 = vst.msk [vmem:[#allocation4 + $0x3] sm:$0x1] %vm1531_vm4, %v1893_v50 }
0x20d5   :  { %1897 = vst.msk [vmem:[#allocation4 + $0xa] sm:$0x2] %vm1533_vm5, %v1893_v50 }
0x20d6   :  { %1895 = vst.msk [vmem:[#allocation5] sm:$0x3] %vm238_vm0, %v1893_v50 }
0x20dd   :  { %v1899_v51 = vld [vmem:[#allocation5] sm:$0x3]  ;;  %v1988_v3 = vpop.permute.xlu1 %1987 }
0x20de   :  { %4415 = vmatmul.mubr.msk.f32.vlgmr.msra.gmra.mxu0 %vm247_vm3, %v1899_v51 }
0x20df   :  { %4429 = vmatpush3.msra.mxu0 %v5095_v52  ;;  %4436 = vmatprep.mubr.msk.f32.mxu0 %vm4761_vm1, %v4760_v20 }
0x20e0   :  { %4430 = vmatprep.subr.mxu0 %v4760_v20 }
0x20e1   :  { %4431 = vmatpush3.msra.mxu0 %v5100_v53 }
0x20e2   :  { %4432 = vmatprep.subr.mxu0 %v4760_v20 }
0x20e3   :  { %4433 = vmatpush3.msra.mxu0 %v5111_v54 }
0x20e4   :  { %4434 = vmatprep.subr.mxu0 %v4760_v20 }
0x20e5   :  { %4435 = vmatpush3.msra.mxu0 %v5118_v55 }
0x20e6   :  { %4450 = vmatprep.subr.mxu0 %v4760_v20 }
0x219e   :  { %v1973_v57 = vpop.f32.mrf.mxu0 }
0x219f   :  { %v1977_v58 = vadd.f32 %v1973_v57, %v1898_v56 }
0x21a0   :  { %v4416_v59 = vpop.f32.mrf.mxu0 }
0x21a1   :  { %4673 = vtanh.f32 %v1977_v58  ;;  %v4078_v61 = vmul.f32 -1.442695, %v1977_v58 }
0x21a3   :  { %4675 = vpow2.f32 %v4078_v61 }
0x21ae   :  { %v4674_v60 = vpop.eup %4673 }
0x21af   :  { %1992 = vrot.lane.b32.xlu0 %v4674_v60, %s4762_s3  ;;  %v2261_v60 = vld [vmem:[#allocation2 + $0xe] sm:$0x3] }
0x21b0   :  { %v4676_v62 = vpop.eup %4675 }
0x21b1   :  { %v1981_v63 = vadd.f32 1.0, %v4676_v62 }
0x21b3   :  { %4677 = vrcp.f32 %v1981_v63 }
0x21c0   :  { %v4678_v0 = vpop.eup %4677 }
0x21c1   :  { %v1990_v4 = vmul.f32 %v4678_v0, %v1988_v3 }
0x2221   :  { %v1993_v1 = vpop.permute.xlu0 %1992 }
0x2222   :  { %v1995_v2 = vmul.f32 %v4678_v0, %v1993_v1 }
0x2224   :  { %1997 = vrot.lane.b32.xlu0 %v1995_v2, %s4762_s3 }
0x2296   :  { %v1998_v5 = vpop.permute.xlu0 %1997 }
0x2297   :  { %v2000_v6 = vadd.f32 %v1998_v5, %v1990_v4 }
0x2299   :  { %4679 = vtanh.f32 %v2000_v6 }
0x22a6   :  { %v4680_v7 = vpop.eup %4679 }
0x22a7   :  { %2003 = vrot.lane.b32.xlu1 %v4680_v7, %s4762_s3 }
0x22ab   :  { %2008 = vrot.lane.b32.xlu1 %v2000_v6, %s4763_s24 }
0x2319   :  { %v2004_v8 = vpop.permute.xlu1 %2003 }
0x231a   :  { %v2006_v9 = vmul.f32 %v4678_v0, %v2004_v8 }
0x231c   :  { %2013 = vrot.lane.b32.xlu0 %v2006_v9, %s4764_s1 }
0x231d   :  { %v2009_v10 = vpop.permute.xlu1 %2008 }
0x231e   :  { %2011 = vst.msk [vmem:[#allocation6] sm:$0x3] %vm238_vm0, %v2009_v10 }
0x2325   :  { %v2106_v11 = vld [vmem:[#allocation6] sm:$0x3] }
0x2326   :  { %2108 = vrot.lane.b32.xlu1 %v2106_v11, %s4762_s3 }
0x238e   :  { %v2014_v12 = vpop.permute.xlu0 %2013 }
0x238f   :  { %2017 = vst.msk [vmem:[#allocation4 + $0x4] sm:$0x1] %vm1531_vm4, %v2014_v12 }
0x2390   :  { %2018 = vst.msk [vmem:[#allocation4 + $0xb] sm:$0x2] %vm1533_vm5, %v2014_v12 }
0x2391   :  { %2016 = vst.msk [vmem:[#allocation5] sm:$0x3] %vm238_vm0, %v2014_v12  ;;  %v2483_v12 = vld [vmem:[%s5539_s9 + $0x18] sm:$0xff] }
0x2398   :  { %v2020_v13 = vld [vmem:[#allocation5] sm:$0x3]  ;;  %v2109_v27 = vpop.permute.xlu1 %2108 }
0x2399   :  { %4426 = vmatmul.mubr.msk.f32.vlgmr.msra.gmra.mxu1 %vm247_vm3, %v2020_v13  ;;  %v2482_v13 = vld [vmem:[%s5539_s9 + $0x10] sm:$0xff] }
0x239a   :  { %4440 = vmatpush3.msra.mxu1 %v5095_v52  ;;  %4447 = vmatprep.mubr.msk.f32.mxu1 %vm4761_vm1, %v4760_v20 }
0x239b   :  { %4441 = vmatprep.subr.mxu1 %v4760_v20 }
0x239c   :  { %4442 = vmatpush3.msra.mxu1 %v5100_v53 }
0x239d   :  { %4443 = vmatprep.subr.mxu1 %v4760_v20 }
0x239e   :  { %4444 = vmatpush3.msra.mxu1 %v5111_v54 }
0x239f   :  { %4445 = vmatprep.subr.mxu1 %v4760_v20 }
0x23a0   :  { %4446 = vmatpush3.msra.mxu1 %v5118_v55 }
0x23a1   :  { %4461 = vmatprep.subr.mxu1 %v2483_v12 }
0x2459   :  { %v2094_v15 = vpop.f32.mrf.mxu1 }
0x245a   :  { %v2098_v16 = vadd.f32 %v2094_v15, %v2019_v14  ;;  %v2388_v14 = vld [vmem:[%s5537_s7 + $0x18] sm:$0xff]  ;;  %v2481_v15 = vld [vmem:[%s5539_s9 + $0x8] sm:$0xff] }
0x245b   :  { %v4427_v17 = vpop.f32.mrf.mxu1 }
0x245c   :  { %4681 = vtanh.f32 %v2098_v16  ;;  %v4080_v19 = vmul.f32 -1.442695, %v2098_v16  ;;  %v2480_v16 = vld [vmem:[%s5539_s9] sm:$0xff]  ;;  %v2387_v17 = vld [vmem:[%s5537_s7 + $0x10] sm:$0xff] }
0x245e   :  { %4683 = vpow2.f32 %v4080_v19 }
0x2469   :  { %v4682_v52 = vpop.eup %4681 }
0x246a   :  { %2113 = vrot.lane.b32.xlu0 %v4682_v52, %s4762_s3  ;;  %v2386_v52 = vld [vmem:[%s5537_s7 + $0x8] sm:$0xff] }
0x246b   :  { %v4684_v24 = vpop.eup %4683 }
0x246c   :  { %v2102_v53 = vadd.f32 1.0, %v4684_v24 }
0x246e   :  { %4685 = vrcp.f32 %v2102_v53  ;;  %v2385_v53 = vld [vmem:[%s5537_s7] sm:$0xff] }
0x247b   :  { %v4686_v25 = vpop.eup %4685 }
0x247c   :  { %v2111_v55 = vmul.f32 %v4686_v25, %v2109_v27 }
0x24dc   :  { %v2114_v26 = vpop.permute.xlu0 %2113 }
0x24dd   :  { %v2116_v54 = vmul.f32 %v4686_v25, %v2114_v26 }
0x24df   :  { %2118 = vrot.lane.b32.xlu0 %v2116_v54, %s4762_s3 }
0x2551   :  { %v2119_v29 = vpop.permute.xlu0 %2118 }
0x2552   :  { %v2121_v30 = vadd.f32 %v2119_v29, %v2111_v55 }
0x2554   :  { %4687 = vtanh.f32 %v2121_v30 }
0x2561   :  { %v4688_v31 = vpop.eup %4687 }
0x2562   :  { %2124 = vrot.lane.b32.xlu1 %v4688_v31, %s4762_s3  ;;  %v2573_v31 = vld [vmem:[%s5541_s11 + $0x8] sm:$0xff] }
0x2566   :  { %2129 = vrot.lane.b32.xlu1 %v2121_v30, %s4763_s24  ;;  %v2574_v30 = vld [vmem:[%s5541_s11 + $0x10] sm:$0xff] }
0x25d4   :  { %v2125_v32 = vpop.permute.xlu1 %2124 }
0x25d5   :  { %v2127_v33 = vmul.f32 %v4686_v25, %v2125_v32  ;;  %v2575_v25 = vld [vmem:[%s5541_s11 + $0x18] sm:$0xff]  ;;  %v2572_v32 = vld [vmem:[%s5541_s11] sm:$0xff]  ;;  %s4765_s11 = smov 120  }
0x25d7   :  { %2134 = vrot.lane.b32.xlu0 %v2127_v33, %s4764_s1  ;;  %v4087_v33 = vld [vmem:[%s5540_s10] ss:$0 sm:$0xff]  ;;  %s4766_s10 = smov 112  }
0x25d8   :  { %v2130_v34 = vpop.permute.xlu1 %2129 }
0x25d9   :  { %2132 = vst.msk [vmem:[#allocation6] sm:$0x3] %vm238_vm0, %v2130_v34 }
0x25e0   :  { %v2227_v35 = vld [vmem:[#allocation6] sm:$0x3] }
0x25e1   :  { %2229 = vrot.lane.b32.xlu1 %v2227_v35, %s4762_s3 }
0x2649   :  { %v2135_v36 = vpop.permute.xlu0 %2134 }
0x264a   :  { %2138 = vst.msk [vmem:[#allocation4 + $0x5] sm:$0x1] %vm1531_vm4, %v2135_v36 }
0x264b   :  { %2139 = vst.msk [vmem:[#allocation4 + $0xc] sm:$0x2] %vm1533_vm5, %v2135_v36 }
0x264c   :  { %2137 = vst.msk [vmem:[#allocation5] sm:$0x3] %vm238_vm0, %v2135_v36 }
0x2653   :  { %v2141_v37 = vld [vmem:[#allocation5] sm:$0x3]  ;;  %v2230_v47 = vpop.permute.xlu1 %2229 }
0x2654   :  { %4437 = vmatmul.mubr.msk.f32.vlgmr.msra.gmra.mxu0 %vm247_vm3, %v2141_v37 }
0x2655   :  { %4458 = vmatprep.mubr.msk.f32.mxu0 %vm4761_vm1, %v4760_v20  ;;  %4451 = vmatpush3.msra.mxu0 %v2388_v14 }
0x2656   :  { %4452 = vmatprep.subr.mxu0 %v4760_v20 }
0x2657   :  { %4453 = vmatpush3.msra.mxu0 %v2387_v17 }
0x2658   :  { %4454 = vmatprep.subr.mxu0 %v4760_v20 }
0x2659   :  { %4455 = vmatpush3.msra.mxu0 %v2386_v52 }
0x265a   :  { %4456 = vmatprep.subr.mxu0 %v4760_v20 }
0x265b   :  { %4457 = vmatpush3.msra.mxu0 %v2385_v53 }
0x265c   :  { %4472 = vmatprep.subr.mxu0 %v2575_v25 }
0x2714   :  { %v2215_v39 = vpop.f32.mrf.mxu0 }
0x2715   :  { %v2219_v40 = vadd.f32 %v2215_v39, %v2140_v38  ;;  %v4085_v38 = vld [vmem:[%s5538_s8] ss:$0 sm:$0xff] }
0x2716   :  { %v4438_v41 = vpop.f32.mrf.mxu0 }
0x2717   :  { %4689 = vtanh.f32 %v2219_v40  ;;  %v4082_v43 = vmul.f32 -1.442695, %v2219_v40 }
0x2719   :  { %4691 = vpow2.f32 %v4082_v43 }
0x2724   :  { %v4690_v42 = vpop.eup %4689 }
0x2725   :  { %2234 = vrot.lane.b32.xlu0 %v4690_v42, %s4762_s3 }
0x2726   :  { %v4692_v18 = vpop.eup %4691 }
0x2727   :  { %v2223_v44 = vadd.f32 1.0, %v4692_v18 }
0x2729   :  { %4693 = vrcp.f32 %v2223_v44 }
0x2736   :  { %v4694_v45 = vpop.eup %4693 }
0x2737   :  { %v2232_v23 = vmul.f32 %v4694_v45, %v2230_v47 }
0x2797   :  { %v2235_v46 = vpop.permute.xlu0 %2234 }
0x2798   :  { %v2237_v21 = vmul.f32 %v4694_v45, %v2235_v46 }
0x279a   :  { %2239 = vrot.lane.b32.xlu0 %v2237_v21, %s4762_s3 }
0x280c   :  { %v2240_v48 = vpop.permute.xlu0 %2239 }
0x280d   :  { %v2242_v49 = vadd.f32 %v2240_v48, %v2232_v23 }
0x280f   :  { %4695 = vtanh.f32 %v2242_v49 }
0x281c   :  { %v4696_v28 = vpop.eup %4695 }
0x281d   :  { %2245 = vrot.lane.b32.xlu1 %v4696_v28, %s4762_s3  ;;  %v4090_v28 = vld [vmem:[%s5542_s12] ss:$0 sm:$0xff] }
0x2821   :  { %2250 = vrot.lane.b32.xlu1 %v2242_v49, %s4763_s24 }
0x288f   :  { %v2246_v50 = vpop.permute.xlu1 %2245 }
0x2890   :  { %v2248_v51 = vmul.f32 %v4694_v45, %v2246_v50 }
0x2892   :  { %2255 = vrot.lane.b32.xlu0 %v2248_v51, %s4764_s1 }
0x2893   :  { %v2251_v56 = vpop.permute.xlu1 %2250 }
0x2894   :  { %2253 = vst.msk [vmem:[#allocation6] sm:$0x3] %vm238_vm0, %v2251_v56 }
0x289b   :  { %v2348_v57 = vld [vmem:[#allocation6] sm:$0x3] }
0x289c   :  { %2350 = vrot.lane.b32.xlu1 %v2348_v57, %s4762_s3 }
0x2904   :  { %v2256_v58 = vpop.permute.xlu0 %2255 }
0x2905   :  { %2259 = vst.msk [vmem:[#allocation4 + $0x6] sm:$0x1] %vm1531_vm4, %v2256_v58 }
0x2906   :  { %2260 = vst.msk [vmem:[#allocation4 + $0xd] sm:$0x2] %vm1533_vm5, %v2256_v58 }
0x2907   :  { %2258 = vst.msk [vmem:[#allocation5] sm:$0x3] %vm238_vm0, %v2256_v58 }
0x290e   :  { %v2262_v59 = vld [vmem:[#allocation5] sm:$0x3]  ;;  %v2351_v7 = vpop.permute.xlu1 %2350 }
0x290f   :  { %4448 = vmatmul.mubr.msk.f32.vlgmr.msra.gmra.mxu1 %vm247_vm3, %v2262_v59 }
0x2910   :  { %4462 = vmatpush3.msra.mxu1 %v2483_v12 }
0x2911   :  { %4463 = vmatprep.subr.mxu1 %v2482_v13 }
0x2912   :  { %4464 = vmatpush3.msra.mxu1 %v2482_v13 }
0x2913   :  { %4465 = vmatprep.subr.mxu1 %v2481_v15 }
0x2914   :  { %4466 = vmatpush3.msra.mxu1 %v2481_v15 }
0x2915   :  { %4467 = vmatprep.subr.mxu1 %v2480_v16 }
0x2916   :  { %4468 = vmatpush3.msra.mxu1 %v2480_v16 }
0x2917   :  { %4483 = vmatprep.subr.mxu1 %v4760_v20 }
0x29cf   :  { %v2336_v61 = vpop.f32.mrf.mxu1 }
0x29d0   :  { %v2340_v62 = vadd.f32 %v2336_v61, %v2261_v60 }
0x29d1   :  { %v4449_v63 = vpop.f32.mrf.mxu1 }
0x29d2   :  { %4697 = vtanh.f32 %v2340_v62  ;;  %v4084_v1 = vmul.f32 -1.442695, %v2340_v62 }
0x29d4   :  { %4699 = vpow2.f32 %v4084_v1 }
0x29df   :  { %v4698_v0 = vpop.eup %4697 }
0x29e0   :  { %2355 = vrot.lane.b32.xlu0 %v4698_v0, %s4762_s3 }
0x29e1   :  { %v4700_v2 = vpop.eup %4699 }
0x29e2   :  { %v2344_v3 = vadd.f32 1.0, %v4700_v2 }
0x29e4   :  { %4701 = vrcp.f32 %v2344_v3 }
0x29f1   :  { %v4702_v4 = vpop.eup %4701 }
0x29f2   :  { %v2353_v8 = vmul.f32 %v4702_v4, %v2351_v7 }
0x2a52   :  { %v2356_v5 = vpop.permute.xlu0 %2355 }
0x2a53   :  { %v2358_v6 = vmul.f32 %v4702_v4, %v2356_v5 }
0x2a55   :  { %2360 = vrot.lane.b32.xlu0 %v2358_v6, %s4762_s3 }
0x2ac7   :  { %v2361_v9 = vpop.permute.xlu0 %2360 }
0x2ac8   :  { %v5291_v10 = vadd.f32 %v2361_v9, %v2353_v8 }
0x2aca   :  { %4703 = vtanh.f32 %v5291_v10 }
0x2ad7   :  { %v4704_v11 = vpop.eup %4703 }
0x2ad8   :  { %2366 = vrot.lane.b32.xlu1 %v4704_v11, %s4762_s3 }
0x2b4a   :  { %v2367_v19 = vpop.permute.xlu1 %2366 }
0x2b4b   :  { %v2369_v24 = vmul.f32 %v4702_v4, %v2367_v19 }
0x2b4d   :  { %2376 = vrot.lane.b32.xlu0 %v2369_v24, %s4764_s1 }
0x2bbf   :  { %v2377_v26 = vpop.permute.xlu0 %2376 }
0x2bc0   :  { %2380 = vst.msk [vmem:[#allocation4 + $0x7] sm:$0x1] %vm1531_vm4, %v2377_v26 }
0x2bc1   :  { %2381 = vst.msk [vmem:[#allocation4 + $0xe] sm:$0x2] %vm1533_vm5, %v2377_v26 }
0x2bc2   :  { %2379 = vst.msk [vmem:[#allocation5] sm:$0x3] %vm238_vm0, %v2377_v26 }
0x2bc7   :  { %v2478_v54 = vld [vmem:[#allocation4] sm:$0xff] }
0x2bc8   :  { %v2479_v27 = vld [vmem:[#allocation4 + $0x8] sm:$0xff]  ;;  %4469 = vmatprep.mubr.msk.f32.mxu1 %vm247_vm3, %v2478_v54 }
0x2bc9   :  { %v2382_v55 = vld [vmem:[#allocation5] sm:$0x3]  ;;  %4470 = vmatmul.mubr.msk.f32.vlgmr.msra.gmra.mxu1 %vm247_vm3, %v2479_v27 }
0x2bca   :  { %2383 = vst.msk [vmem:[#allocation7 + $0x2] sm:$0x3] %vm238_vm0, %v2382_v55  ;;  %4485 = vmatprep.mubr.msk.f32.mxu1 %vm4761_vm1, %v4760_v20 }
0x2bd1   :  { %v2384_v29 = vld [vmem:[#allocation7] sm:$0xf] }
0x2bd2   :  { %4459 = vmatmul.mubr.msk.f32.vlgmr.msra.gmra.mxu0 %vm247_vm3, %v2384_v29 }
0x2bd3   :  { %4473 = vmatpush3.msra.mxu0 %v2575_v25  ;;  %4480 = vmatprep.mubr.msk.f32.mxu0 %vm247_vm3, %v2478_v54 }
0x2bd4   :  { %4474 = vmatprep.subr.mxu0 %v2574_v30 }
0x2bd5   :  { %4475 = vmatpush3.msra.mxu0 %v2574_v30 }
0x2bd6   :  { %4476 = vmatprep.subr.mxu0 %v2573_v31 }
0x2bd7   :  { %4477 = vmatpush3.msra.mxu0 %v2573_v31 }
0x2bd8   :  { %4478 = vmatprep.subr.mxu0 %v2572_v32 }
0x2bd9   :  { %4479 = vmatpush3.msra.mxu0 %v2572_v32 }
0x2bda   :  { %4481 = vmatmul.mubr.msk.f32.vlgmr.msra.gmra.mxu0 %vm247_vm3, %v2479_v27  ;;  %4488 = vmatprep.subr.mxu0 %v4760_v20 }
0x2bdb   :  { %4490 = vmatprep.mubr.msk.f32.mxu0 %vm4761_vm1, %v4760_v20 }
0x2c89   :  { %v4471_v34 = vpop.f32.mrf.mxu1 }
0x2c8a   :  { %v2569_v35 = vadd.f32 %v4471_v34, %v4087_v33 }
0x2c8b   :  { %v2563_v36 = vpop.f32.mrf.mxu1 }
0x2c8c   :  { %v2564_v37 = vadd.f32 %v4087_v33, %v2563_v36  ;;  %2674 = vrot.lane.b32.xlu0 %v2569_v35, %s4765_s11  ;;  %4489 = vmatpush3.xpose.msk.msra.mxu0 %vm2704_vm6, %v2569_v35 }
0x2c8d   :  { %4498 = vmatprep.subr.mxu0 %v4760_v20 }
0x2c8e   :  { %2672 = vrot.lane.b32.xlu1 %v2564_v37, %s4765_s11  ;;  %4484 = vmatpush3.xpose.msk.msra.mxu1 %vm2704_vm6, %v2564_v37 }
0x2c8f   :  { %4493 = vmatprep.subr.mxu1 %v4760_v20 }
0x2c90   :  { %2678 = vrot.lane.b32.xlu0 %v2569_v35, %s4766_s10 }
0x2c92   :  { %v2465_v39 = vpop.f32.mrf.mxu0  ;;  %2676 = vrot.lane.b32.xlu1 %v2564_v37, %s4766_s10 }
0x2c93   :  { %v2466_v40 = vadd.f32 %v4085_v38, %v2465_v39 }
0x2c94   :  { %v4460_v41 = vpop.f32.mrf.mxu0  ;;  %2682 = vrot.lane.b32.xlu0 %v2569_v35, %s4767_s28 }
0x2c95   :  { %v2476_v42 = vrot.slane %v2466_v40, %v4889_v22 }
0x2c96   :  { %2680 = vrot.lane.b32.xlu1 %v2564_v37, %s4767_s28 }
0x2c97   :  { %4486 = vmatmul.mubr.msk.f32.vlgmr.msra.gmra.mxu1 %vm2704_vm6, %v2476_v42  ;;  %v2477_v43 = vcombine.high %v2476_v42, %v2476_v42 }
0x2c98   :  { %4495 = vmatprep.mubr.msk.f32.mxu1 %vm4761_vm1, %v4760_v20 }
0x2c99   :  { %4491 = vmatmul.mubr.msk.f32.vlgmr.msra.gmra.mxu0 %vm2704_vm6, %v2477_v43  ;;  %2660 = vrot.lane.b32.xlu0 %v2477_v43, %s4765_s11 }
0x2c9a   :  { %4500 = vmatprep.mubr.msk.f32.mxu0 %vm4761_vm1, %v4760_v20  ;;  %2658 = vrot.lane.b32.xlu1 %v2476_v42, %s4765_s11  ;;  %v4482_v48 = vpop.f32.mrf.mxu0 }
0x2c9b   :  { %v5402_v56 = vadd.f32 %v4482_v48, %v4090_v28 }
0x2c9c   :  { %v2649_v51 = vpop.f32.mrf.mxu0 }
0x2c9d   :  { %2664 = vrot.lane.b32.xlu0 %v2477_v43, %s4766_s10  ;;  %v5409_v58 = vadd.f32 %v4090_v28, %v2649_v51 }
0x2c9e   :  { %2662 = vrot.lane.b32.xlu1 %v2476_v42, %s4766_s10 }
0x2ca1   :  { %2668 = vrot.lane.b32.xlu0 %v2477_v43, %s4767_s28 }
0x2ca2   :  { %2666 = vrot.lane.b32.xlu1 %v2476_v42, %s4767_s28 }
0x2cfe   :  { %v2675_v22 = vpop.permute.xlu0 %2674 }
0x2cff   :  { %4499 = vmatpush3.xpose.msk.msra.mxu0 %vm2704_vm6, %v2675_v22 }
0x2d00   :  { %v2673_v18 = vpop.permute.xlu1 %2672  ;;  %4508 = vmatprep.subr.mxu0 %v4760_v20 }
0x2d01   :  { %4494 = vmatpush3.xpose.msk.msra.mxu1 %vm2704_vm6, %v2673_v18 }
0x2d02   :  { %v2679_v44 = vpop.permute.xlu0 %2678  ;;  %4503 = vmatprep.subr.mxu1 %v4760_v20 }
0x2d04   :  { %v2677_v45 = vpop.permute.xlu1 %2676 }
0x2d06   :  { %v2683_v46 = vpop.permute.xlu0 %2682 }
0x2d08   :  { %v2681_v21 = vpop.permute.xlu1 %2680 }
0x2d0b   :  { %v2661_v47 = vpop.permute.xlu0 %2660 }
0x2d0c   :  { %4501 = vmatmul.mubr.msk.f32.vlgmr.msra.gmra.mxu0 %vm2704_vm6, %v2661_v47  ;;  %v2659_v23 = vpop.permute.xlu1 %2658 }
0x2d0d   :  { %4509 = vmatpush3.xpose.msk.msra.mxu0 %vm2704_vm6, %v2679_v44  ;;  %4510 = vmatprep.mubr.msk.f32.mxu0 %vm4761_vm1, %v4760_v20 }
0x2d0e   :  { %4496 = vmatmul.mubr.msk.f32.vlgmr.msra.gmra.mxu1 %vm2704_vm6, %v2659_v23  ;;  %4518 = vmatprep.subr.mxu0 %v4760_v20 }
0x2d0f   :  { %4504 = vmatpush3.xpose.msk.msra.mxu1 %vm2704_vm6, %v2677_v45  ;;  %v2665_v49 = vpop.permute.xlu0 %2664  ;;  %4505 = vmatprep.mubr.msk.f32.mxu1 %vm4761_vm1, %v4760_v20 }
0x2d10   :  { %4511 = vmatmul.mubr.msk.f32.vlgmr.msra.gmra.mxu0 %vm2704_vm6, %v2665_v49  ;;  %4513 = vmatprep.subr.mxu1 %v4760_v20  ;;  %v2663_v50 = vpop.permute.xlu1 %2662 }
0x2d11   :  { %4519 = vmatpush3.xpose.msk.msra.mxu0 %vm2704_vm6, %v2683_v46  ;;  %4520 = vmatprep.mubr.msk.f32.mxu0 %vm4761_vm1, %v4760_v20 }
0x2d12   :  { %4506 = vmatmul.mubr.msk.f32.vlgmr.msra.gmra.mxu1 %vm2704_vm6, %v2663_v50  ;;  %4528 = vmatprep.subr.mxu0 %v4760_v20 }
0x2d13   :  { %4514 = vmatpush3.xpose.msk.msra.mxu1 %vm2704_vm6, %v2681_v21  ;;  %v2669_v57 = vpop.permute.xlu0 %2668  ;;  %4515 = vmatprep.mubr.msk.f32.mxu1 %vm4761_vm1, %v4760_v20 }
0x2d14   :  { %4521 = vmatmul.mubr.msk.f32.vlgmr.msra.gmra.mxu0 %vm2704_vm6, %v2669_v57  ;;  %4523 = vmatprep.subr.mxu1 %v4760_v20  ;;  %v2667_v59 = vpop.permute.xlu1 %2666 }
0x2d15   :  { %4529 = vmatpush3.msra.mxu0 %v5402_v56  ;;  %4530 = vmatprep.mubr.msk.f32.mxu0 %vm4761_vm1, %v4760_v20 }
0x2d16   :  { %4516 = vmatmul.mubr.msk.f32.vlgmr.msra.gmra.mxu1 %vm2704_vm6, %v2667_v59  ;;  %4538 = vmatprep.subr.mxu0 %v4760_v20 }
0x2d17   :  { %4524 = vmatpush3.msra.mxu1 %v5409_v58  ;;  %4525 = vmatprep.mubr.msk.f32.mxu1 %vm4761_vm1, %v4760_v20 }
0x2d18   :  { %4533 = vmatprep.subr.mxu1 %v4760_v20 }
0x2d57   :  { %v2775_v60 = vpop.f32.mrf.mxu1 }
0x2d58   :  { %v3297_v61 = vmul.f32 0.35355338, %v2775_v60 }
0x2d59   :  { %v4487_v62 = vpop.f32.mrf.mxu1  ;;  %v2849_v63 = vpop.f32.mrf.mxu0 }
0x2d5a   :  { %v3298_v0 = vmul.f32 0.35355338, %v2849_v63  ;;  %v3306_v1 = vsel %vm3305_vm7, %v3297_v61, -inf }
0x2d5b   :  { %3307 = vmax.xlane.f32.xlu1 %v3306_v1  ;;  %v4492_v2 = vpop.f32.mrf.mxu0 }
0x2d5c   :  { %v3309_v3 = vsel %vm3305_vm7, %v3298_v0, -inf }
0x2d5d   :  { %3310 = vmax.xlane.f32.xlu0 %v3309_v3 }
0x2dcc   :  { %v2997_v4 = vpop.f32.mrf.mxu0 }
0x2dcd   :  { %v3300_v5 = vmul.f32 0.35355338, %v2997_v4 }
0x2dce   :  { %v2923_v6 = vpop.f32.mrf.mxu1  ;;  %v4502_v7 = vpop.f32.mrf.mxu0 }
0x2dcf   :  { %v3299_v8 = vmul.f32 0.35355338, %v2923_v6  ;;  %v3315_v9 = vsel %vm3305_vm7, %v3300_v5, -inf }
0x2dd0   :  { %v4497_v11 = vpop.f32.mrf.mxu1  ;;  %3316 = vmax.xlane.f32.xlu1 %v3315_v9  ;;  %v3145_v12 = vpop.f32.mrf.mxu0 }
0x2dd1   :  { %v3302_v13 = vmul.f32 0.35355338, %v3145_v12  ;;  %v3312_v14 = vsel %vm3305_vm7, %v3299_v8, -inf }
0x2dd2   :  { %v3071_v15 = vpop.f32.mrf.mxu1  ;;  %3313 = vmax.xlane.f32.xlu0 %v3312_v14  ;;  %v4512_v16 = vpop.f32.mrf.mxu0 }
0x2dd3   :  { %v3301_v17 = vmul.f32 0.35355338, %v3071_v15  ;;  %v3321_v52 = vsel %vm3305_vm7, %v3302_v13, -inf }
0x2dd4   :  { %v4507_v19 = vpop.f32.mrf.mxu1  ;;  %3322 = vmax.xlane.f32.xlu1 %v3321_v52  ;;  %v3293_v24 = vpop.f32.mrf.mxu0 }
0x2dd5   :  { %v3304_v53 = vmul.f32 0.35355338, %v3293_v24  ;;  %v3318_v25 = vsel %vm3305_vm7, %v3301_v17, -inf }
0x2dd6   :  { %v3219_v26 = vpop.f32.mrf.mxu1  ;;  %3319 = vmax.xlane.f32.xlu0 %v3318_v25  ;;  %v4522_v54 = vpop.f32.mrf.mxu0 }
0x2dd7   :  { %v3303_v27 = vmul.f32 0.35355338, %v3219_v26  ;;  %v3327_v55 = vsel %vm3305_vm7, %v3304_v53, -inf }
0x2dd8   :  { %v4517_v29 = vpop.f32.mrf.mxu1  ;;  %3328 = vmax.xlane.f32.xlu1 %v3327_v55 }
0x2dd9   :  { %v3324_v30 = vsel %vm3305_vm7, %v3303_v27, -inf }
0x2dda   :  { %3325 = vmax.xlane.f32.xlu0 %v3324_v30 }
0x2de4   :  { %v3308_v32 = vpop.xlane.xlu1 %3307 }
0x2de5   :  { %v3330_v34 = vsub.f32 %v3297_v61, %v3308_v32 }
0x2de6   :  { %v3311_v31 = vpop.xlane.xlu0 %3310 }
0x2de7   :  { %v3331_v33 = vsub.f32 %v3298_v0, %v3311_v31  ;;  %v3338_v36 = vmul.f32 1.442695, %v3330_v34 }
0x2de9   :  { %2688 = vrot.lane.b32.xlu1 %v5402_v56, %s4765_s11  ;;  %v3340_v35 = vmul.f32 1.442695, %v3331_v33 }
0x2deb   :  { %4705 = vpow2.f32 %v3340_v35 }
0x2dec   :  { %4707 = vpow2.f32 %v3338_v36 }
0x2ded   :  { %2692 = vrot.lane.b32.xlu1 %v5409_v58, %s4766_s10 }
0x2df0   :  { %2686 = vrot.lane.b32.xlu0 %v5409_v58, %s4765_s11 }
0x2df4   :  { %2694 = vrot.lane.b32.xlu0 %v5402_v56, %s4766_s10 }
0x2df8   :  { %v4706_v37 = vpop.eup %4705 }
0x2df9   :  { %v4708_v38 = vpop.eup %4707  ;;  %v3357_v39 = vsel %vm3305_vm7, %v4706_v37, 0.0 }
0x2dfa   :  { %v3354_v40 = vsel %vm3305_vm7, %v4708_v38, 0.0 }
0x2e11   :  { %3358 = vadd.xlane.f32.xlu1 %v3357_v39 }
0x2e13   :  { %3355 = vadd.xlane.f32.xlu0 %v3354_v40 }
0x2e59   :  { %v3317_v41 = vpop.xlane.xlu1 %3316 }
0x2e5a   :  { %v3333_v42 = vsub.f32 %v3300_v5, %v3317_v41 }
0x2e5b   :  { %v3314_v43 = vpop.xlane.xlu0 %3313 }
0x2e5c   :  { %v3344_v22 = vmul.f32 1.442695, %v3333_v42  ;;  %v3332_v18 = vsub.f32 %v3299_v8, %v3314_v43 }
0x2e5d   :  { %v3323_v44 = vpop.xlane.xlu1 %3322 }
0x2e5e   :  { %4709 = vpow2.f32 %v3344_v22  ;;  %v3342_v45 = vmul.f32 1.442695, %v3332_v18  ;;  %v3335_v46 = vsub.f32 %v3302_v13, %v3323_v44 }
0x2e5f   :  { %v3320_v21 = vpop.xlane.xlu0 %3319 }
0x2e60   :  { %4711 = vpow2.f32 %v3342_v45  ;;  %v3348_v47 = vmul.f32 1.442695, %v3335_v46  ;;  %v3334_v23 = vsub.f32 %v3301_v17, %v3320_v21 }
0x2e61   :  { %v3329_v48 = vpop.xlane.xlu1 %3328 }
0x2e62   :  { %4713 = vpow2.f32 %v3348_v47  ;;  %v3346_v49 = vmul.f32 1.442695, %v3334_v23  ;;  %v3337_v28 = vsub.f32 %v3304_v53, %v3329_v48 }
0x2e63   :  { %v3326_v50 = vpop.xlane.xlu0 %3325 }
0x2e64   :  { %4715 = vpow2.f32 %v3346_v49  ;;  %v3352_v51 = vmul.f32 1.442695, %v3337_v28  ;;  %v3336_v57 = vsub.f32 %v3303_v27, %v3326_v50 }
0x2e65   :  { %v2689_v8 = vpop.permute.xlu1 %2688 }
0x2e66   :  { %4717 = vpow2.f32 %v3352_v51  ;;  %v3350_v59 = vmul.f32 1.442695, %v3336_v57 }
0x2e67   :  { %v2687_v9 = vpop.permute.xlu0 %2686 }
0x2e68   :  { %4719 = vpow2.f32 %v3350_v59 }
0x2e69   :  { %v2693_v11 = vpop.permute.xlu1 %2692 }
0x2e6b   :  { %v4710_v60 = vpop.eup %4709  ;;  %v2695_v12 = vpop.permute.xlu0 %2694 }
0x2e6c   :  { %v3363_v61 = vsel %vm3305_vm7, %v4710_v60, 0.0 }
0x2e6d   :  { %v4712_v62 = vpop.eup %4711  ;;  %3364 = vadd.xlane.f32.xlu1 %v3363_v61 }
0x2e6e   :  { %v3360_v63 = vsel %vm3305_vm7, %v4712_v62, 0.0 }
0x2e6f   :  { %v4714_v0 = vpop.eup %4713  ;;  %3361 = vadd.xlane.f32.xlu0 %v3360_v63 }
0x2e70   :  { %v3369_v1 = vsel %vm3305_vm7, %v4714_v0, 0.0 }
0x2e71   :  { %v5441_v2 = vpop.eup %4715  ;;  %3370 = vadd.xlane.f32.xlu1 %v3369_v1 }
0x2e72   :  { %v3366_v3 = vsel %vm3305_vm7, %v5441_v2, 0.0 }
0x2e73   :  { %v5445_v4 = vpop.eup %4717  ;;  %3367 = vadd.xlane.f32.xlu0 %v3366_v3 }
0x2e74   :  { %v3375_v5 = vsel %vm3305_vm7, %v5445_v4, 0.0 }
0x2e75   :  { %v5449_v6 = vpop.eup %4719  ;;  %3376 = vadd.xlane.f32.xlu1 %v3375_v5 }
0x2e76   :  { %v3372_v7 = vsel %vm3305_vm7, %v5449_v6, 0.0 }
0x2e77   :  { %3373 = vadd.xlane.f32.xlu0 %v3372_v7 }
0x2e86   :  { %2698 = vrot.lane.b32.xlu1 %v5409_v58, %s4767_s28 }
0x2e8d   :  { %2700 = vrot.lane.b32.xlu0 %v5402_v56, %s4767_s28 }
0x2e9a   :  { %v3359_v13 = vpop.xlane.xlu1 %3358 }
0x2e9b   :  { %4721 = vrcp.f32 %v3359_v13 }
0x2e9c   :  { %v3356_v14 = vpop.xlane.xlu0 %3355 }
0x2e9d   :  { %4723 = vrcp.f32 %v3356_v14 }
0x2ea8   :  { %v4722_v15 = vpop.eup %4721 }
0x2ea9   :  { %v3387_v16 = vmul.f32 %v4722_v15, %v4706_v37 }
0x2eaa   :  { %v4724_v17 = vpop.eup %4723 }
0x2eab   :  { %3395 = vst.msk [vmem:[%s5544_s14 + $0x2] sm:$0x3] %vm3305_vm7, %v3387_v16  ;;  %4531 = vmatmul.mubr.msk.f32.vlgmr.msra.gmra.mxu0 %vm2704_vm6, %v3387_v16  ;;  %v3386_v58 = vmul.f32 %v4724_v17, %v4708_v38 }
0x2eac   :  { %4539 = vmatpush3.msra.mxu0 %v2689_v8  ;;  %4540 = vmatprep.mubr.msk.f32.mxu0 %vm4761_vm1, %v4760_v20 }
0x2ead   :  { %3394 = vst.msk [vmem:[%s5544_s14] sm:$0x3] %vm3305_vm7, %v3386_v58  ;;  %4526 = vmatmul.mubr.msk.f32.vlgmr.msra.gmra.mxu1 %vm2704_vm6, %v3386_v58  ;;  %4548 = vmatprep.subr.mxu0 %v4760_v20 }
0x2eae   :  { %4534 = vmatpush3.msra.mxu1 %v2687_v9  ;;  %4535 = vmatprep.mubr.msk.f32.mxu1 %vm4761_vm1, %v4760_v20 }
0x2eaf   :  { %4543 = vmatprep.subr.mxu1 %v4760_v20 }
0x2ef6   :  { %v3365_v56 = vpop.xlane.xlu1 %3364 }
0x2ef7   :  { %4725 = vrcp.f32 %v3365_v56 }
0x2ef8   :  { %v3362_v52 = vpop.xlane.xlu0 %3361 }
0x2ef9   :  { %4727 = vrcp.f32 %v3362_v52 }
0x2efa   :  { %v3371_v19 = vpop.xlane.xlu1 %3370 }
0x2efb   :  { %4729 = vrcp.f32 %v3371_v19 }
0x2efc   :  { %v3368_v24 = vpop.xlane.xlu0 %3367 }
0x2efd   :  { %4731 = vrcp.f32 %v3368_v24 }
0x2efe   :  { %v3377_v53 = vpop.xlane.xlu1 %3376 }
0x2eff   :  { %4733 = vrcp.f32 %v3377_v53 }
0x2f00   :  { %v3374_v25 = vpop.xlane.xlu0 %3373 }
0x2f01   :  { %4735 = vrcp.f32 %v3374_v25 }
0x2f02   :  { %v2699_v35 = vpop.permute.xlu1 %2698 }
0x2f04   :  { %v4726_v26 = vpop.eup %4725  ;;  %v2701_v32 = vpop.permute.xlu0 %2700 }
0x2f05   :  { %v3389_v54 = vmul.f32 %v4726_v26, %v4710_v60 }
0x2f06   :  { %v4728_v27 = vpop.eup %4727 }
0x2f07   :  { %3397 = vst.msk [vmem:[%s5544_s14 + $0x6] sm:$0x3] %vm3305_vm7, %v3389_v54  ;;  %4541 = vmatmul.mubr.msk.f32.vlgmr.msra.gmra.mxu0 %vm2704_vm6, %v3389_v54  ;;  %v3388_v55 = vmul.f32 %v4728_v27, %v4712_v62 }
0x2f08   :  { %v4730_v29 = vpop.eup %4729  ;;  %4549 = vmatpush3.msra.mxu0 %v2695_v12  ;;  %4550 = vmatprep.mubr.msk.f32.mxu0 %vm4761_vm1, %v4760_v20 }
0x2f09   :  { %3396 = vst.msk [vmem:[%s5544_s14 + $0x4] sm:$0x3] %vm3305_vm7, %v3388_v55  ;;  %4536 = vmatmul.mubr.msk.f32.vlgmr.msra.gmra.mxu1 %vm2704_vm6, %v3388_v55  ;;  %4558 = vmatprep.subr.mxu0 %v4760_v20  ;;  %v3391_v30 = vmul.f32 %v4730_v29, %v4714_v0 }
0x2f0a   :  { %v4732_v31 = vpop.eup %4731  ;;  %4544 = vmatpush3.msra.mxu1 %v2693_v11  ;;  %4545 = vmatprep.mubr.msk.f32.mxu1 %vm4761_vm1, %v4760_v20 }
0x2f0b   :  { %3399 = vst.msk [vmem:[%s5544_s14 + $0xa] sm:$0x3] %vm3305_vm7, %v3391_v30  ;;  %4551 = vmatmul.mubr.msk.f32.vlgmr.msra.gmra.mxu0 %vm2704_vm6, %v3391_v30  ;;  %4553 = vmatprep.subr.mxu1 %v4760_v20  ;;  %v3390_v33 = vmul.f32 %v4732_v31, %v5441_v2 }
0x2f0c   :  { %v4734_v34 = vpop.eup %4733  ;;  %4559 = vmatpush3.msra.mxu0 %v2701_v32  ;;  %4560 = vmatprep.mubr.msk.f32.mxu0 %vm4761_vm1, %v4760_v20 }
0x2f0d   :  { %3398 = vst.msk [vmem:[%s5544_s14 + $0x8] sm:$0x3] %vm3305_vm7, %v3390_v33  ;;  %4546 = vmatmul.mubr.msk.f32.vlgmr.msra.gmra.mxu1 %vm2704_vm6, %v3390_v33  ;;  %v3393_v36 = vmul.f32 %v4734_v34, %v5445_v4 }
0x2f0e   :  { %v4736_v37 = vpop.eup %4735  ;;  %4554 = vmatpush3.msra.mxu1 %v2699_v35  ;;  %4555 = vmatprep.mubr.msk.f32.mxu1 %vm4761_vm1, %v4760_v20 }
0x2f0f   :  { %3401 = vst.msk [vmem:[%s5544_s14 + $0xe] sm:$0x3] %vm3305_vm7, %v3393_v36  ;;  %4561 = vmatmul.mubr.msk.f32.vlgmr.msra.gmra.mxu0 %vm2704_vm6, %v3393_v36  ;;  %v3392_v38 = vmul.f32 %v4736_v37, %v5449_v6 }
0x2f11   :  { %3400 = vst.msk [vmem:[%s5544_s14 + $0xc] sm:$0x3] %vm3305_vm7, %v3392_v38  ;;  %4556 = vmatmul.mubr.msk.f32.vlgmr.msra.gmra.mxu1 %vm2704_vm6, %v3392_v38  ;;  %s4770_s14 = smov 24  }
0x2f6b   :  { %v3544_v39 = vpop.f32.mrf.mxu0 }
0x2f6d   :  { %v3471_v40 = vpop.f32.mrf.mxu1  ;;  %v4532_v41 = vpop.f32.mrf.mxu0 }
0x2f6f   :  { %v4527_v20 = vpop.f32.mrf.mxu1 }
0x2fc7   :  { %v3690_v42 = vpop.f32.mrf.mxu0 }
0x2fc8   :  { %3990 = vrot.lane.b32.xlu0 %v3690_v42, %s4768_s2 }
0x2fc9   :  { %v3617_v43 = vpop.f32.mrf.mxu1  ;;  %v4542_v22 = vpop.f32.mrf.mxu0 }
0x2fca   :  { %3988 = vrot.lane.b32.xlu1 %v3617_v43, %s4768_s2 }
0x2fcb   :  { %v4537_v18 = vpop.f32.mrf.mxu1  ;;  %v3836_v44 = vpop.f32.mrf.mxu0 }
0x2fcc   :  { %3998 = vrot.lane.b32.xlu0 %v3836_v44, %s4769_s6 }
0x2fcd   :  { %v3763_v45 = vpop.f32.mrf.mxu1  ;;  %v4552_v46 = vpop.f32.mrf.mxu0 }
0x2fce   :  { %3996 = vrot.lane.b32.xlu1 %v3763_v45, %s4769_s6 }
0x2fcf   :  { %v4547_v21 = vpop.f32.mrf.mxu1  ;;  %v3982_v47 = vpop.f32.mrf.mxu0 }
0x2fd0   :  { %4006 = vrot.lane.b32.xlu0 %v3982_v47, %s4770_s14 }
0x2fd1   :  { %v3909_v23 = vpop.f32.mrf.mxu1  ;;  %v4562_v48 = vpop.f32.mrf.mxu0 }
0x2fd2   :  { %4004 = vrot.lane.b32.xlu1 %v3909_v23, %s4770_s14 }
0x2fd3   :  { %v4557_v49 = vpop.f32.mrf.mxu1 }
0x2fd6   :  { %2371 = vrot.lane.b32.xlu1 %v5291_v10, %s4763_s24  ;;  %s4737_s24 = scalar_lea.vmem %s4025_s25, 64 }
0x2fd7   :  { %p4738_p0 = scmp.ne.s32.totalorder %s4025_s25, %s4737_s24  ;;  %p4743_p2 = scmp.lt.s32.totalorder %s4737_s24, %s4737_s24 }
0x2fd9   :  { %p4744_p3 = por %p4743_p2, %p4742_p1 }
0x2fdb   :  { %p4745_p4 = pnand %p4744_p3, %p4738_p0 }
0x303a   :  { %v3991_v28 = vpop.permute.xlu0 %3990 }
0x303b   :  { %v4011_v59 = vsel %vm2704_vm6, %v3544_v39, %v3991_v28 }
0x303c   :  { %v3989_v50 = vpop.permute.xlu1 %3988 }
0x303d   :  { %v4010_v62 = vsel %vm2704_vm6, %v3471_v40, %v3989_v50 }
0x303e   :  { %v3999_v51 = vpop.permute.xlu0 %3998 }
0x303f   :  { %v4013_v60 = vsel %vm106_vm2, %v4011_v59, %v3999_v51 }
0x3040   :  { %v3997_v57 = vpop.permute.xlu1 %3996 }
0x3041   :  { %v4012_v0 = vsel %vm106_vm2, %v4010_v62, %v3997_v57 }
0x3042   :  { %v4007_v61 = vpop.permute.xlu0 %4006 }
0x3043   :  { %v4016_v63 = vsel %vm4014_vm8, %v4013_v60, %v4007_v61 }
0x3044   :  { %4018 = vst.msk [vmem:[#allocation8 + $0x2] sm:$0x3] %vm238_vm0, %v4016_v63  ;;  %v4005_v10 = vpop.permute.xlu1 %4004 }
0x3045   :  { %v4015_v1 = vsel %vm4014_vm8, %v4012_v0, %v4005_v10 }
0x3046   :  { %4017 = vst.msk [vmem:[#allocation8] sm:$0x3] %vm238_vm0, %v4015_v1 }
0x3047   :  { %4748 = shalt.err (!%p4745_p4)
}
0x3048   :  { %s4772_s11 = smov 2   ;;  %v2372_v2 = vpop.permute.xlu1 %2371 }
0x3049   :  { %4030 = dma.vmem_to_hbm [thread:$0]  %s4025_s25, 64, %s5543_s13, [#allocation9], %s4762_s3, %s4762_s3, %s4772_s11   ;;  %2374 = vst.msk [vmem:[#allocation6] sm:$0x3] %vm238_vm0, %v2372_v2 }
0x304a   :  { %4757 = dma.done.wait [#allocation9], 64  }
0x304b   :  { %4758 = vsyncadd [#allocation9], 4294967232 }
0x304c   :  { %4038 = vsyncpa [#allocation9], 1 }

</bundles_post_ra>
